<compile_context>
chip_gen: v6e
topology: v6e:2x2x1
jax: 0.10.0
libtpu: 0.0.40
codegen_flags: <defaults>
</compile_context>

<pallas_src>
import functools

import numpy as np
import jax
import jax.numpy as jnp
from jax.experimental import pallas as pl
from jax.experimental.pallas import tpu as pltpu


def _dcap_kernel(L, H, hd, F, E, IX, BT,
                 x_ref, wq_ref, bq_ref, wk_ref, bk_ref, wo_ref, bo_ref,
                 kmat_ref, pool_ref, rsel_ref, csel_ref, y_ref):
    """All L layers for one batch tile of BT examples, fully register-resident."""
    scale = hd ** -0.5

    x0_flat = x_ref[...].reshape(BT * F, E)          # (BT*F, E), layer-0 input (x0)
    rsel = rsel_ref[...]                             # (IX, F) one-hot row selector
    csel = csel_ref[...]                             # (IX, F) one-hot col selector
    pool = pool_ref[...]                             # (F, IX) adaptive-avg-pool matrix

    def split_heads(t):
        # (BT*F, E) -> (BT*H, F, hd), flattened index = b*H + h (torch ordering)
        return jnp.stack(
            [t[b * F:(b + 1) * F, h * hd:(h + 1) * hd]
             for b in range(BT) for h in range(H)],
            axis=0)

    x_flat = x0_flat
    kpq_store = [[None] * L for _ in range(BT)]

    for l in range(L):                               # static unroll over layers
        # ---- multi-head self-attention (v = x, no value projection) ----
        q = jnp.dot(x_flat, wq_ref[l], preferred_element_type=jnp.float32) + bq_ref[l]
        k = jnp.dot(x_flat, wk_ref[l], preferred_element_type=jnp.float32) + bk_ref[l]
        v = x_flat

        qh = split_heads(q) * scale                  # (BT*H, F, hd)
        kh = split_heads(k)
        vh = split_heads(v)

        s = jax.lax.dot_general(qh, kh, (((2,), (2,)), ((0,), (0,))),
                                preferred_element_type=jnp.float32)   # (BT*H, F, F)
        s = s - jnp.max(s, axis=-1, keepdims=True)
        e = jnp.exp(s)
        p = e / jnp.sum(e, axis=-1, keepdims=True)
        # TODO(synk): training-mode dropout on p omitted (eval semantics).
        o = jax.lax.dot_general(p, vh, (((2,), (1,)), ((0,), (0,))),
                                preferred_element_type=jnp.float32)   # (BT*H, F, hd)

        attn = jnp.concatenate(
            [jnp.concatenate([o[b * H + h] for h in range(H)], axis=-1)  # (F, E)
             for b in range(BT)], axis=0)                                 # (BT*F, E)
        attn = jnp.dot(attn, wo_ref[l], preferred_element_type=jnp.float32) + bo_ref[l]

        # ---- pairwise cross product with the 'mat' kernel ----
        kmat_l = kmat_ref[l]                         # (IX, E_out, E_in)
        x_new_rows = []
        for b in range(BT):
            attn_b = attn[b * F:(b + 1) * F]         # (F, E)
            x0_b = x0_flat[b * F:(b + 1) * F]        # (F, E)
            p_rows = jnp.dot(rsel, attn_b, preferred_element_type=jnp.float32)  # (IX, E)
            q_cols = jnp.dot(csel, x0_b, preferred_element_type=jnp.float32)    # (IX, E)
            # kp[x, e] = sum_d p_rows[x, d] * kmat[x, e, d]   (batched MXU matmul)
            kp = jax.lax.dot_general(
                p_rows.reshape(IX, 1, E), kmat_l,
                (((2,), (2,)), ((0,), (0,))),
                preferred_element_type=jnp.float32).reshape(IX, E)               # (IX, E)
            kpq = kp * q_cols                                                    # (IX, E)
            kpq_store[b][l] = kpq
            # AdaptiveAvgPool1d(F) over the pair axis, expressed as a matmul.
            x_new_rows.append(jnp.dot(pool, kpq, preferred_element_type=jnp.float32))
        x_flat = jnp.concatenate(x_new_rows, axis=0)  # (BT*F, E) — next layer input

    # ---- lane-dense y writeback: one full-block store of (BT, L, IX) ----
    kpq_all = jnp.stack(
        [kpq_store[b][l] for b in range(BT) for l in range(L)], axis=0)  # (BT*L, IX, E)
    y2 = jnp.sum(kpq_all, axis=-1)                                        # (BT*L, IX)
    y_ref[...] = y2.reshape(BT, L, IX)


def make_dcap_fn(B, F, E, IX, H, L):
    hd = E // H
    assert hd * H == E
    # 2 parallel batch tiles when possible (lets v7x use both TensorCores);
    # otherwise a single fully-collapsed step.
    NB = 2 if (B >= 2 and B % 2 == 0) else 1
    BT = B // NB
    kern = functools.partial(_dcap_kernel, L, H, hd, F, E, IX, BT)

    def rep(shape):  # replicated (non-batched) operand: full-array block
        n = len(shape)
        return pl.BlockSpec(shape, lambda b, _n=n: (0,) * _n)

    grid_spec = pltpu.PrefetchScalarGridSpec(
        num_scalar_prefetch=0,
        grid=(NB,),
        in_specs=[
            pl.BlockSpec((BT, F, E), lambda b: (b, 0, 0)),   # x
            rep((L, E, E)), rep((L, 1, E)),                  # Wq^T, bq (stacked)
            rep((L, E, E)), rep((L, 1, E)),                  # Wk^T, bk
            rep((L, E, E)), rep((L, 1, E)),                  # Wo^T, bo
            rep((L, IX, E, E)),                              # cross kernels (L,IX,E_out,E_in)
            rep((F, IX)),                                    # adaptive-avg-pool matrix
            rep((IX, F)), rep((IX, F)),                      # row / col one-hot selectors
        ],
        out_specs=pl.BlockSpec((BT, L, IX), lambda b: (b, 0, 0)),
    )
    return pl.pallas_call(
        kern,
        grid_spec=grid_spec,
        out_shape=jax.ShapeDtypeStruct((B, L, IX), jnp.float32),
        compiler_params=pltpu.CompilerParams(dimension_semantics=("parallel",)),
    )


def cross_attentional_product_network(x, stacked, pool_mat, rsel, csel, fn):
    y = fn(x, stacked["wqT"], stacked["bq"], stacked["wkT"], stacked["bk"],
           stacked["woT"], stacked["bo"], stacked["kmat_t"], pool_mat, rsel, csel)
    B, L, IX = y.shape
    return y.reshape(B, L * IX)   # matches torch.cat(ys, dim=1) (layer-major)


# ---------------- pure-JAX reference (for correctness check) ----------------
def ref_forward(x, layers, row, col, pool_mat, H):
    hp = dict(precision=jax.lax.Precision.HIGHEST)
    B, F, E = x.shape
    hd = E // H
    scale = hd ** -0.5
    x0 = x
    ys = []
    for lp in layers:
        q = jnp.einsum('bfe,eo->bfo', x, lp["wqT"], **hp) + lp["bq"]
        k = jnp.einsum('bfe,eo->bfo', x, lp["wkT"], **hp) + lp["bk"]
        v = x
        qh = q.reshape(B, F, H, hd).transpose(0, 2, 1, 3) * scale
        kh = k.reshape(B, F, H, hd).transpose(0, 2, 1, 3)
        vh = v.reshape(B, F, H, hd).transpose(0, 2, 1, 3)
        s = jnp.einsum('bhfd,bhgd->bhfg', qh, kh, **hp)
        p = jax.nn.softmax(s, axis=-1)
        o = jnp.einsum('bhfg,bhgd->bhfd', p, vh, **hp)
        attn = o.transpose(0, 2, 1, 3).reshape(B, F, E)
        attn = jnp.einsum('bfe,eo->bfo', attn, lp["woT"], **hp) + lp["bo"]
        pr = attn[:, row]
        qc = x0[:, col]
        kp = jnp.einsum('bxd,xed->bxe', pr, lp["kmat_t"], **hp)
        kpq = kp * qc
        x = jnp.einsum('fx,bxe->bfe', pool_mat, kpq, **hp)
        ys.append(jnp.sum(kpq, axis=-1))
    return jnp.concatenate(ys, axis=1)


if __name__ == "__main__":
    B, F, E, H, L = 2, 8, 32, 4, 2            # batch, num_fields, embed_dim, heads, layers
    IX = F * (F - 1) // 2                      # num pairwise cross terms

    # static pair indices (row < col)
    row, col = [], []
    for i in range(F - 1):
        for j in range(i + 1, F):
            row.append(i)
            col.append(j)
    row = np.array(row)
    col = np.array(col)

    rsel = np.zeros((IX, F), np.float32); rsel[np.arange(IX), row] = 1.0
    csel = np.zeros((IX, F), np.float32); csel[np.arange(IX), col] = 1.0

    # AdaptiveAvgPool1d(F) over length IX, as a (F, IX) averaging matrix
    pool_mat = np.zeros((F, IX), np.float32)
    for i in range(F):
        s = (i * IX) // F
        e = -((-(i + 1) * IX) // F)   # ceil((i+1)*IX/F)
        pool_mat[i, s:e] = 1.0 / (e - s)

    # deterministic parameter init
    key = jax.random.PRNGKey(0)
    layers = []
    for _ in range(L):
        key, *ks = jax.random.split(key, 8)

        def lin(kw, kb, fin, fout):
            bound = 1.0 / np.sqrt(fin)
            w = jax.random.uniform(kw, (fin, fout), jnp.float32, -bound, bound)
            b = jax.random.uniform(kb, (1, fout), jnp.float32, -bound, bound)
            return w, b

        wqT, bq = lin(ks[0], ks[1], E, E)
        wkT, bk = lin(ks[2], ks[3], E, E)
        woT, bo = lin(ks[4], ks[5], E, E)
        xav = float(np.sqrt(6.0 / (E + E)))
        kmat = jax.random.uniform(ks[6], (E, IX, E), jnp.float32, -xav, xav)  # torch layout
        layers.append(dict(wqT=wqT, bq=bq, wkT=wkT, bk=bk, woT=woT, bo=bo,
                           kmat_t=jnp.transpose(kmat, (1, 0, 2))))            # (IX, E_out, E_in)

    key, kx = jax.random.split(key)
    x = jax.random.normal(kx, (B, F, E), jnp.float32)

    # stack all layers' parameters along a leading layer axis for the fused kernel
    stacked = dict(
        wqT=jnp.stack([lp["wqT"] for lp in layers]),
        bq=jnp.stack([lp["bq"] for lp in layers]),
        wkT=jnp.stack([lp["wkT"] for lp in layers]),
        bk=jnp.stack([lp["bk"] for lp in layers]),
        woT=jnp.stack([lp["woT"] for lp in layers]),
        bo=jnp.stack([lp["bo"] for lp in layers]),
        kmat_t=jnp.stack([lp["kmat_t"] for lp in layers]),
    )

    fn = make_dcap_fn(B, F, E, IX, H, L)
    out = cross_attentional_product_network(
        x, stacked, jnp.asarray(pool_mat), jnp.asarray(rsel), jnp.asarray(csel), fn)
    out = jax.block_until_ready(out)

    ref = ref_forward(x, layers, row, col, jnp.asarray(pool_mat), H)
    assert out.shape == (B, L * IX), out.shape
    np.testing.assert_allclose(np.asarray(out), np.asarray(ref), rtol=5e-3, atol=5e-3)
    print("KERNEL_OK")
</pallas_src>

<mosaic_0001>
module attributes {stable_mosaic.version = 11 : i64} {
  func.func @_dcap_kernel(%arg0: i32, %arg1: memref<1x8x32xf32, #tpu.memory_space<vmem>>, %arg2: memref<2x32x32xf32, #tpu.memory_space<vmem>>, %arg3: memref<2x1x32xf32, #tpu.memory_space<vmem>>, %arg4: memref<2x32x32xf32, #tpu.memory_space<vmem>>, %arg5: memref<2x1x32xf32, #tpu.memory_space<vmem>>, %arg6: memref<2x32x32xf32, #tpu.memory_space<vmem>>, %arg7: memref<2x1x32xf32, #tpu.memory_space<vmem>>, %arg8: memref<2x28x32x32xf32, #tpu.memory_space<vmem>>, %arg9: memref<8x28xf32, #tpu.memory_space<vmem>>, %arg10: memref<28x8xf32, #tpu.memory_space<vmem>>, %arg11: memref<28x8xf32, #tpu.memory_space<vmem>>, %arg12: memref<1x2x28xf32, #tpu.memory_space<vmem>>) attributes {dimension_semantics = [#tpu.dimension_semantics<parallel>], iteration_bounds = array<i64: 2>, scalar_prefetch = 0 : i64, scratch_operands = 0 : i64, tpu.core_type = #tpu.core_type<tc>, window_params = [{transform_indices = @transform_0, window_bounds = array<i64: 1, 8, 32>}, {pipeline_mode = #tpu.pipeline_mode<synchronous>, transform_indices = @transform_1, window_bounds = array<i64: 2, 32, 32>}, {pipeline_mode = #tpu.pipeline_mode<synchronous>, transform_indices = @transform_2, window_bounds = array<i64: 2, 1, 32>}, {pipeline_mode = #tpu.pipeline_mode<synchronous>, transform_indices = @transform_3, window_bounds = array<i64: 2, 32, 32>}, {pipeline_mode = #tpu.pipeline_mode<synchronous>, transform_indices = @transform_4, window_bounds = array<i64: 2, 1, 32>}, {pipeline_mode = #tpu.pipeline_mode<synchronous>, transform_indices = @transform_5, window_bounds = array<i64: 2, 32, 32>}, {pipeline_mode = #tpu.pipeline_mode<synchronous>, transform_indices = @transform_6, window_bounds = array<i64: 2, 1, 32>}, {pipeline_mode = #tpu.pipeline_mode<synchronous>, transform_indices = @transform_7, window_bounds = array<i64: 2, 28, 32, 32>}, {pipeline_mode = #tpu.pipeline_mode<synchronous>, transform_indices = @transform_8, window_bounds = array<i64: 8, 28>}, {pipeline_mode = #tpu.pipeline_mode<synchronous>, transform_indices = @transform_9, window_bounds = array<i64: 28, 8>}, {pipeline_mode = #tpu.pipeline_mode<synchronous>, transform_indices = @transform_10, window_bounds = array<i64: 28, 8>}, {transform_indices = @transform_11, window_bounds = array<i64: 1, 2, 28>}]} {
    %c0 = arith.constant 0 : index
    %c0_0 = arith.constant 0 : index
    %c0_1 = arith.constant 0 : index
    %0 = vector.load %arg1[%c0, %c0_0, %c0_1] : memref<1x8x32xf32, #tpu.memory_space<vmem>>, vector<1x8x32xf32>
    %1 = vector.shape_cast %0 : vector<1x8x32xf32> to vector<8x32xf32>
    %c0_2 = arith.constant 0 : index
    %c0_3 = arith.constant 0 : index
    %2 = vector.load %arg10[%c0_2, %c0_3] : memref<28x8xf32, #tpu.memory_space<vmem>>, vector<28x8xf32>
    %c0_4 = arith.constant 0 : index
    %c0_5 = arith.constant 0 : index
    %3 = vector.load %arg11[%c0_4, %c0_5] : memref<28x8xf32, #tpu.memory_space<vmem>>, vector<28x8xf32>
    %c0_6 = arith.constant 0 : index
    %c0_7 = arith.constant 0 : index
    %4 = vector.load %arg9[%c0_6, %c0_7] : memref<8x28xf32, #tpu.memory_space<vmem>>, vector<8x28xf32>
    %c0_8 = arith.constant 0 : index
    %c0_9 = arith.constant 0 : index
    %c0_10 = arith.constant 0 : index
    %5 = vector.load %arg2[%c0_8, %c0_9, %c0_10] : memref<2x32x32xf32, #tpu.memory_space<vmem>>, vector<1x32x32xf32>
    %6 = vector.shape_cast %5 : vector<1x32x32xf32> to vector<32x32xf32>
    %cst = arith.constant dense<0.000000e+00> : vector<8x32xf32>
    %7 = tpu.matmul %1, %6, %cst {dimension_numbers = #tpu.dot_dimension_numbers<[1], [0], [0], [1], [0, 0, 1, 1], [], []>} : vector<8x32xf32>, vector<32x32xf32>, vector<8x32xf32> -> vector<8x32xf32>
    %c0_11 = arith.constant 0 : index
    %c0_12 = arith.constant 0 : index
    %c0_13 = arith.constant 0 : index
    %8 = vector.load %arg3[%c0_11, %c0_12, %c0_13] : memref<2x1x32xf32, #tpu.memory_space<vmem>>, vector<1x1x32xf32>
    %9 = vector.shape_cast %8 : vector<1x1x32xf32> to vector<1x32xf32>
    %10 = vector.broadcast %9 : vector<1x32xf32> to vector<8x32xf32>
    %11 = arith.addf %7, %10 : vector<8x32xf32>
    %c0_14 = arith.constant 0 : index
    %c0_15 = arith.constant 0 : index
    %c0_16 = arith.constant 0 : index
    %12 = vector.load %arg4[%c0_14, %c0_15, %c0_16] : memref<2x32x32xf32, #tpu.memory_space<vmem>>, vector<1x32x32xf32>
    %13 = vector.shape_cast %12 : vector<1x32x32xf32> to vector<32x32xf32>
    %cst_17 = arith.constant dense<0.000000e+00> : vector<8x32xf32>
    %14 = tpu.matmul %1, %13, %cst_17 {dimension_numbers = #tpu.dot_dimension_numbers<[1], [0], [0], [1], [0, 0, 1, 1], [], []>} : vector<8x32xf32>, vector<32x32xf32>, vector<8x32xf32> -> vector<8x32xf32>
    %c0_18 = arith.constant 0 : index
    %c0_19 = arith.constant 0 : index
    %c0_20 = arith.constant 0 : index
    %15 = vector.load %arg5[%c0_18, %c0_19, %c0_20] : memref<2x1x32xf32, #tpu.memory_space<vmem>>, vector<1x1x32xf32>
    %16 = vector.shape_cast %15 : vector<1x1x32xf32> to vector<1x32xf32>
    %17 = vector.broadcast %16 : vector<1x32xf32> to vector<8x32xf32>
    %18 = arith.addf %14, %17 : vector<8x32xf32>
    %19 = vector.extract_strided_slice %11 {offsets = [0, 0], sizes = [8, 8], strides = [1, 1]} : vector<8x32xf32> to vector<8x8xf32>
    %20 = vector.extract_strided_slice %11 {offsets = [0, 8], sizes = [8, 8], strides = [1, 1]} : vector<8x32xf32> to vector<8x8xf32>
    %21 = vector.extract_strided_slice %11 {offsets = [0, 16], sizes = [8, 8], strides = [1, 1]} : vector<8x32xf32> to vector<8x8xf32>
    %22 = vector.extract_strided_slice %11 {offsets = [0, 24], sizes = [8, 8], strides = [1, 1]} : vector<8x32xf32> to vector<8x8xf32>
    %23 = vector.shape_cast %19 : vector<8x8xf32> to vector<1x8x8xf32>
    %24 = vector.shape_cast %20 : vector<8x8xf32> to vector<1x8x8xf32>
    %25 = vector.shape_cast %21 : vector<8x8xf32> to vector<1x8x8xf32>
    %26 = vector.shape_cast %22 : vector<8x8xf32> to vector<1x8x8xf32>
    %27 = tpu.concatenate %23, %24, %25, %26 in 0 : vector<1x8x8xf32>, vector<1x8x8xf32>, vector<1x8x8xf32>, vector<1x8x8xf32> -> vector<4x8x8xf32>
    %cst_21 = arith.constant 0.353553385 : f32
    %28 = vector.broadcast %cst_21 : f32 to vector<4x8x8xf32>
    %29 = arith.mulf %27, %28 : vector<4x8x8xf32>
    %30 = vector.extract_strided_slice %18 {offsets = [0, 0], sizes = [8, 8], strides = [1, 1]} : vector<8x32xf32> to vector<8x8xf32>
    %31 = vector.extract_strided_slice %18 {offsets = [0, 8], sizes = [8, 8], strides = [1, 1]} : vector<8x32xf32> to vector<8x8xf32>
    %32 = vector.extract_strided_slice %18 {offsets = [0, 16], sizes = [8, 8], strides = [1, 1]} : vector<8x32xf32> to vector<8x8xf32>
    %33 = vector.extract_strided_slice %18 {offsets = [0, 24], sizes = [8, 8], strides = [1, 1]} : vector<8x32xf32> to vector<8x8xf32>
    %34 = vector.shape_cast %30 : vector<8x8xf32> to vector<1x8x8xf32>
    %35 = vector.shape_cast %31 : vector<8x8xf32> to vector<1x8x8xf32>
    %36 = vector.shape_cast %32 : vector<8x8xf32> to vector<1x8x8xf32>
    %37 = vector.shape_cast %33 : vector<8x8xf32> to vector<1x8x8xf32>
    %38 = tpu.concatenate %34, %35, %36, %37 in 0 : vector<1x8x8xf32>, vector<1x8x8xf32>, vector<1x8x8xf32>, vector<1x8x8xf32> -> vector<4x8x8xf32>
    %39 = vector.extract_strided_slice %1 {offsets = [0, 0], sizes = [8, 8], strides = [1, 1]} : vector<8x32xf32> to vector<8x8xf32>
    %40 = vector.extract_strided_slice %1 {offsets = [0, 8], sizes = [8, 8], strides = [1, 1]} : vector<8x32xf32> to vector<8x8xf32>
    %41 = vector.extract_strided_slice %1 {offsets = [0, 16], sizes = [8, 8], strides = [1, 1]} : vector<8x32xf32> to vector<8x8xf32>
    %42 = vector.extract_strided_slice %1 {offsets = [0, 24], sizes = [8, 8], strides = [1, 1]} : vector<8x32xf32> to vector<8x8xf32>
    %43 = vector.shape_cast %39 : vector<8x8xf32> to vector<1x8x8xf32>
    %44 = vector.shape_cast %40 : vector<8x8xf32> to vector<1x8x8xf32>
    %45 = vector.shape_cast %41 : vector<8x8xf32> to vector<1x8x8xf32>
    %46 = vector.shape_cast %42 : vector<8x8xf32> to vector<1x8x8xf32>
    %47 = tpu.concatenate %43, %44, %45, %46 in 0 : vector<1x8x8xf32>, vector<1x8x8xf32>, vector<1x8x8xf32>, vector<1x8x8xf32> -> vector<4x8x8xf32>
    %cst_22 = arith.constant dense<0.000000e+00> : vector<4x8x8xf32>
    %48 = tpu.matmul %29, %38, %cst_22 {dimension_numbers = #tpu.dot_dimension_numbers<[2], [2], [1], [1], [0, 0, 0, 1, 1, 1], [0], [0]>} : vector<4x8x8xf32>, vector<4x8x8xf32>, vector<4x8x8xf32> -> vector<4x8x8xf32>
    %cst_23 = arith.constant dense<0xFF800000> : vector<4x8xf32>
    %49 = vector.multi_reduction <maximumf>, %48, %cst_23 [2] : vector<4x8x8xf32> to vector<4x8xf32>
    %50 = vector.shape_cast %49 : vector<4x8xf32> to vector<4x8x1xf32>
    %51 = vector.broadcast %50 : vector<4x8x1xf32> to vector<4x8x8xf32>
    %52 = arith.subf %48, %51 : vector<4x8x8xf32>
    %53 = math.exp %52 : vector<4x8x8xf32>
    %cst_24 = arith.constant dense<0.000000e+00> : vector<4x8xf32>
    %54 = vector.multi_reduction <add>, %53, %cst_24 [2] : vector<4x8x8xf32> to vector<4x8xf32>
    %55 = vector.shape_cast %54 : vector<4x8xf32> to vector<4x8x1xf32>
    %56 = vector.broadcast %55 : vector<4x8x1xf32> to vector<4x8x8xf32>
    %57 = arith.divf %53, %56 : vector<4x8x8xf32>
    %cst_25 = arith.constant dense<0.000000e+00> : vector<4x8x8xf32>
    %58 = tpu.matmul %57, %47, %cst_25 {dimension_numbers = #tpu.dot_dimension_numbers<[2], [1], [1], [2], [0, 0, 0, 1, 1, 2], [0], [0]>} : vector<4x8x8xf32>, vector<4x8x8xf32>, vector<4x8x8xf32> -> vector<4x8x8xf32>
    %59 = vector.extract_strided_slice %58 {offsets = [0, 0, 0], sizes = [1, 8, 8], strides = [1, 1, 1]} : vector<4x8x8xf32> to vector<1x8x8xf32>
    %60 = vector.shape_cast %59 : vector<1x8x8xf32> to vector<8x8xf32>
    %61 = vector.extract_strided_slice %58 {offsets = [1, 0, 0], sizes = [1, 8, 8], strides = [1, 1, 1]} : vector<4x8x8xf32> to vector<1x8x8xf32>
    %62 = vector.shape_cast %61 : vector<1x8x8xf32> to vector<8x8xf32>
    %63 = vector.extract_strided_slice %58 {offsets = [2, 0, 0], sizes = [1, 8, 8], strides = [1, 1, 1]} : vector<4x8x8xf32> to vector<1x8x8xf32>
    %64 = vector.shape_cast %63 : vector<1x8x8xf32> to vector<8x8xf32>
    %65 = vector.extract_strided_slice %58 {offsets = [3, 0, 0], sizes = [1, 8, 8], strides = [1, 1, 1]} : vector<4x8x8xf32> to vector<1x8x8xf32>
    %66 = vector.shape_cast %65 : vector<1x8x8xf32> to vector<8x8xf32>
    %67 = tpu.concatenate %60, %62, %64, %66 in 1 : vector<8x8xf32>, vector<8x8xf32>, vector<8x8xf32>, vector<8x8xf32> -> vector<8x32xf32>
    %c0_26 = arith.constant 0 : index
    %c0_27 = arith.constant 0 : index
    %c0_28 = arith.constant 0 : index
    %68 = vector.load %arg6[%c0_26, %c0_27, %c0_28] : memref<2x32x32xf32, #tpu.memory_space<vmem>>, vector<1x32x32xf32>
    %69 = vector.shape_cast %68 : vector<1x32x32xf32> to vector<32x32xf32>
    %cst_29 = arith.constant dense<0.000000e+00> : vector<8x32xf32>
    %70 = tpu.matmul %67, %69, %cst_29 {dimension_numbers = #tpu.dot_dimension_numbers<[1], [0], [0], [1], [0, 0, 1, 1], [], []>} : vector<8x32xf32>, vector<32x32xf32>, vector<8x32xf32> -> vector<8x32xf32>
    %c0_30 = arith.constant 0 : index
    %c0_31 = arith.constant 0 : index
    %c0_32 = arith.constant 0 : index
    %71 = vector.load %arg7[%c0_30, %c0_31, %c0_32] : memref<2x1x32xf32, #tpu.memory_space<vmem>>, vector<1x1x32xf32>
    %72 = vector.shape_cast %71 : vector<1x1x32xf32> to vector<1x32xf32>
    %73 = vector.broadcast %72 : vector<1x32xf32> to vector<8x32xf32>
    %74 = arith.addf %70, %73 : vector<8x32xf32>
    %c0_33 = arith.constant 0 : index
    %c0_34 = arith.constant 0 : index
    %c0_35 = arith.constant 0 : index
    %c0_36 = arith.constant 0 : index
    %75 = vector.load %arg8[%c0_33, %c0_34, %c0_35, %c0_36] : memref<2x28x32x32xf32, #tpu.memory_space<vmem>>, vector<1x28x32x32xf32>
    %76 = vector.shape_cast %75 : vector<1x28x32x32xf32> to vector<28x32x32xf32>
    %cst_37 = arith.constant dense<0.000000e+00> : vector<28x32xf32>
    %77 = tpu.matmul %2, %74, %cst_37 {dimension_numbers = #tpu.dot_dimension_numbers<[1], [0], [0], [1], [0, 0, 1, 1], [], []>} : vector<28x8xf32>, vector<8x32xf32>, vector<28x32xf32> -> vector<28x32xf32>
    %cst_38 = arith.constant dense<0.000000e+00> : vector<28x32xf32>
    %78 = tpu.matmul %3, %1, %cst_38 {dimension_numbers = #tpu.dot_dimension_numbers<[1], [0], [0], [1], [0, 0, 1, 1], [], []>} : vector<28x8xf32>, vector<8x32xf32>, vector<28x32xf32> -> vector<28x32xf32>
    %79 = vector.shape_cast %77 : vector<28x32xf32> to vector<28x1x32xf32>
    %cst_39 = arith.constant dense<0.000000e+00> : vector<28x1x32xf32>
    %80 = tpu.matmul %79, %76, %cst_39 {dimension_numbers = #tpu.dot_dimension_numbers<[2], [2], [1], [1], [0, 0, 0, 1, 1, 1], [0], [0]>} : vector<28x1x32xf32>, vector<28x32x32xf32>, vector<28x1x32xf32> -> vector<28x1x32xf32>
    %81 = vector.shape_cast %80 : vector<28x1x32xf32> to vector<28x32xf32>
    %82 = arith.mulf %81, %78 : vector<28x32xf32>
    %cst_40 = arith.constant dense<0.000000e+00> : vector<8x32xf32>
    %83 = tpu.matmul %4, %82, %cst_40 {dimension_numbers = #tpu.dot_dimension_numbers<[1], [0], [0], [1], [0, 0, 1, 1], [], []>} : vector<8x28xf32>, vector<28x32xf32>, vector<8x32xf32> -> vector<8x32xf32>
    %c1 = arith.constant 1 : index
    %c0_41 = arith.constant 0 : index
    %c0_42 = arith.constant 0 : index
    %84 = vector.load %arg2[%c1, %c0_41, %c0_42] : memref<2x32x32xf32, #tpu.memory_space<vmem>>, vector<1x32x32xf32>
    %85 = vector.shape_cast %84 : vector<1x32x32xf32> to vector<32x32xf32>
    %cst_43 = arith.constant dense<0.000000e+00> : vector<8x32xf32>
    %86 = tpu.matmul %83, %85, %cst_43 {dimension_numbers = #tpu.dot_dimension_numbers<[1], [0], [0], [1], [0, 0, 1, 1], [], []>} : vector<8x32xf32>, vector<32x32xf32>, vector<8x32xf32> -> vector<8x32xf32>
    %c1_44 = arith.constant 1 : index
    %c0_45 = arith.constant 0 : index
    %c0_46 = arith.constant 0 : index
    %87 = vector.load %arg3[%c1_44, %c0_45, %c0_46] : memref<2x1x32xf32, #tpu.memory_space<vmem>>, vector<1x1x32xf32>
    %88 = vector.shape_cast %87 : vector<1x1x32xf32> to vector<1x32xf32>
    %89 = vector.broadcast %88 : vector<1x32xf32> to vector<8x32xf32>
    %90 = arith.addf %86, %89 : vector<8x32xf32>
    %c1_47 = arith.constant 1 : index
    %c0_48 = arith.constant 0 : index
    %c0_49 = arith.constant 0 : index
    %91 = vector.load %arg4[%c1_47, %c0_48, %c0_49] : memref<2x32x32xf32, #tpu.memory_space<vmem>>, vector<1x32x32xf32>
    %92 = vector.shape_cast %91 : vector<1x32x32xf32> to vector<32x32xf32>
    %cst_50 = arith.constant dense<0.000000e+00> : vector<8x32xf32>
    %93 = tpu.matmul %83, %92, %cst_50 {dimension_numbers = #tpu.dot_dimension_numbers<[1], [0], [0], [1], [0, 0, 1, 1], [], []>} : vector<8x32xf32>, vector<32x32xf32>, vector<8x32xf32> -> vector<8x32xf32>
    %c1_51 = arith.constant 1 : index
    %c0_52 = arith.constant 0 : index
    %c0_53 = arith.constant 0 : index
    %94 = vector.load %arg5[%c1_51, %c0_52, %c0_53] : memref<2x1x32xf32, #tpu.memory_space<vmem>>, vector<1x1x32xf32>
    %95 = vector.shape_cast %94 : vector<1x1x32xf32> to vector<1x32xf32>
    %96 = vector.broadcast %95 : vector<1x32xf32> to vector<8x32xf32>
    %97 = arith.addf %93, %96 : vector<8x32xf32>
    %98 = vector.extract_strided_slice %90 {offsets = [0, 0], sizes = [8, 8], strides = [1, 1]} : vector<8x32xf32> to vector<8x8xf32>
    %99 = vector.extract_strided_slice %90 {offsets = [0, 8], sizes = [8, 8], strides = [1, 1]} : vector<8x32xf32> to vector<8x8xf32>
    %100 = vector.extract_strided_slice %90 {offsets = [0, 16], sizes = [8, 8], strides = [1, 1]} : vector<8x32xf32> to vector<8x8xf32>
    %101 = vector.extract_strided_slice %90 {offsets = [0, 24], sizes = [8, 8], strides = [1, 1]} : vector<8x32xf32> to vector<8x8xf32>
    %102 = vector.shape_cast %98 : vector<8x8xf32> to vector<1x8x8xf32>
    %103 = vector.shape_cast %99 : vector<8x8xf32> to vector<1x8x8xf32>
    %104 = vector.shape_cast %100 : vector<8x8xf32> to vector<1x8x8xf32>
    %105 = vector.shape_cast %101 : vector<8x8xf32> to vector<1x8x8xf32>
    %106 = tpu.concatenate %102, %103, %104, %105 in 0 : vector<1x8x8xf32>, vector<1x8x8xf32>, vector<1x8x8xf32>, vector<1x8x8xf32> -> vector<4x8x8xf32>
    %cst_54 = arith.constant 0.353553385 : f32
    %107 = vector.broadcast %cst_54 : f32 to vector<4x8x8xf32>
    %108 = arith.mulf %106, %107 : vector<4x8x8xf32>
    %109 = vector.extract_strided_slice %97 {offsets = [0, 0], sizes = [8, 8], strides = [1, 1]} : vector<8x32xf32> to vector<8x8xf32>
    %110 = vector.extract_strided_slice %97 {offsets = [0, 8], sizes = [8, 8], strides = [1, 1]} : vector<8x32xf32> to vector<8x8xf32>
    %111 = vector.extract_strided_slice %97 {offsets = [0, 16], sizes = [8, 8], strides = [1, 1]} : vector<8x32xf32> to vector<8x8xf32>
    %112 = vector.extract_strided_slice %97 {offsets = [0, 24], sizes = [8, 8], strides = [1, 1]} : vector<8x32xf32> to vector<8x8xf32>
    %113 = vector.shape_cast %109 : vector<8x8xf32> to vector<1x8x8xf32>
    %114 = vector.shape_cast %110 : vector<8x8xf32> to vector<1x8x8xf32>
    %115 = vector.shape_cast %111 : vector<8x8xf32> to vector<1x8x8xf32>
    %116 = vector.shape_cast %112 : vector<8x8xf32> to vector<1x8x8xf32>
    %117 = tpu.concatenate %113, %114, %115, %116 in 0 : vector<1x8x8xf32>, vector<1x8x8xf32>, vector<1x8x8xf32>, vector<1x8x8xf32> -> vector<4x8x8xf32>
    %118 = vector.extract_strided_slice %83 {offsets = [0, 0], sizes = [8, 8], strides = [1, 1]} : vector<8x32xf32> to vector<8x8xf32>
    %119 = vector.extract_strided_slice %83 {offsets = [0, 8], sizes = [8, 8], strides = [1, 1]} : vector<8x32xf32> to vector<8x8xf32>
    %120 = vector.extract_strided_slice %83 {offsets = [0, 16], sizes = [8, 8], strides = [1, 1]} : vector<8x32xf32> to vector<8x8xf32>
    %121 = vector.extract_strided_slice %83 {offsets = [0, 24], sizes = [8, 8], strides = [1, 1]} : vector<8x32xf32> to vector<8x8xf32>
    %122 = vector.shape_cast %118 : vector<8x8xf32> to vector<1x8x8xf32>
    %123 = vector.shape_cast %119 : vector<8x8xf32> to vector<1x8x8xf32>
    %124 = vector.shape_cast %120 : vector<8x8xf32> to vector<1x8x8xf32>
    %125 = vector.shape_cast %121 : vector<8x8xf32> to vector<1x8x8xf32>
    %126 = tpu.concatenate %122, %123, %124, %125 in 0 : vector<1x8x8xf32>, vector<1x8x8xf32>, vector<1x8x8xf32>, vector<1x8x8xf32> -> vector<4x8x8xf32>
    %cst_55 = arith.constant dense<0.000000e+00> : vector<4x8x8xf32>
    %127 = tpu.matmul %108, %117, %cst_55 {dimension_numbers = #tpu.dot_dimension_numbers<[2], [2], [1], [1], [0, 0, 0, 1, 1, 1], [0], [0]>} : vector<4x8x8xf32>, vector<4x8x8xf32>, vector<4x8x8xf32> -> vector<4x8x8xf32>
    %cst_56 = arith.constant dense<0xFF800000> : vector<4x8xf32>
    %128 = vector.multi_reduction <maximumf>, %127, %cst_56 [2] : vector<4x8x8xf32> to vector<4x8xf32>
    %129 = vector.shape_cast %128 : vector<4x8xf32> to vector<4x8x1xf32>
    %130 = vector.broadcast %129 : vector<4x8x1xf32> to vector<4x8x8xf32>
    %131 = arith.subf %127, %130 : vector<4x8x8xf32>
    %132 = math.exp %131 : vector<4x8x8xf32>
    %cst_57 = arith.constant dense<0.000000e+00> : vector<4x8xf32>
    %133 = vector.multi_reduction <add>, %132, %cst_57 [2] : vector<4x8x8xf32> to vector<4x8xf32>
    %134 = vector.shape_cast %133 : vector<4x8xf32> to vector<4x8x1xf32>
    %135 = vector.broadcast %134 : vector<4x8x1xf32> to vector<4x8x8xf32>
    %136 = arith.divf %132, %135 : vector<4x8x8xf32>
    %cst_58 = arith.constant dense<0.000000e+00> : vector<4x8x8xf32>
    %137 = tpu.matmul %136, %126, %cst_58 {dimension_numbers = #tpu.dot_dimension_numbers<[2], [1], [1], [2], [0, 0, 0, 1, 1, 2], [0], [0]>} : vector<4x8x8xf32>, vector<4x8x8xf32>, vector<4x8x8xf32> -> vector<4x8x8xf32>
    %138 = vector.extract_strided_slice %137 {offsets = [0, 0, 0], sizes = [1, 8, 8], strides = [1, 1, 1]} : vector<4x8x8xf32> to vector<1x8x8xf32>
    %139 = vector.shape_cast %138 : vector<1x8x8xf32> to vector<8x8xf32>
    %140 = vector.extract_strided_slice %137 {offsets = [1, 0, 0], sizes = [1, 8, 8], strides = [1, 1, 1]} : vector<4x8x8xf32> to vector<1x8x8xf32>
    %141 = vector.shape_cast %140 : vector<1x8x8xf32> to vector<8x8xf32>
    %142 = vector.extract_strided_slice %137 {offsets = [2, 0, 0], sizes = [1, 8, 8], strides = [1, 1, 1]} : vector<4x8x8xf32> to vector<1x8x8xf32>
    %143 = vector.shape_cast %142 : vector<1x8x8xf32> to vector<8x8xf32>
    %144 = vector.extract_strided_slice %137 {offsets = [3, 0, 0], sizes = [1, 8, 8], strides = [1, 1, 1]} : vector<4x8x8xf32> to vector<1x8x8xf32>
    %145 = vector.shape_cast %144 : vector<1x8x8xf32> to vector<8x8xf32>
    %146 = tpu.concatenate %139, %141, %143, %145 in 1 : vector<8x8xf32>, vector<8x8xf32>, vector<8x8xf32>, vector<8x8xf32> -> vector<8x32xf32>
    %c1_59 = arith.constant 1 : index
    %c0_60 = arith.constant 0 : index
    %c0_61 = arith.constant 0 : index
    %147 = vector.load %arg6[%c1_59, %c0_60, %c0_61] : memref<2x32x32xf32, #tpu.memory_space<vmem>>, vector<1x32x32xf32>
    %148 = vector.shape_cast %147 : vector<1x32x32xf32> to vector<32x32xf32>
    %cst_62 = arith.constant dense<0.000000e+00> : vector<8x32xf32>
    %149 = tpu.matmul %146, %148, %cst_62 {dimension_numbers = #tpu.dot_dimension_numbers<[1], [0], [0], [1], [0, 0, 1, 1], [], []>} : vector<8x32xf32>, vector<32x32xf32>, vector<8x32xf32> -> vector<8x32xf32>
    %c1_63 = arith.constant 1 : index
    %c0_64 = arith.constant 0 : index
    %c0_65 = arith.constant 0 : index
    %150 = vector.load %arg7[%c1_63, %c0_64, %c0_65] : memref<2x1x32xf32, #tpu.memory_space<vmem>>, vector<1x1x32xf32>
    %151 = vector.shape_cast %150 : vector<1x1x32xf32> to vector<1x32xf32>
    %152 = vector.broadcast %151 : vector<1x32xf32> to vector<8x32xf32>
    %153 = arith.addf %149, %152 : vector<8x32xf32>
    %c1_66 = arith.constant 1 : index
    %c0_67 = arith.constant 0 : index
    %c0_68 = arith.constant 0 : index
    %c0_69 = arith.constant 0 : index
    %154 = vector.load %arg8[%c1_66, %c0_67, %c0_68, %c0_69] : memref<2x28x32x32xf32, #tpu.memory_space<vmem>>, vector<1x28x32x32xf32>
    %155 = vector.shape_cast %154 : vector<1x28x32x32xf32> to vector<28x32x32xf32>
    %cst_70 = arith.constant dense<0.000000e+00> : vector<28x32xf32>
    %156 = tpu.matmul %2, %153, %cst_70 {dimension_numbers = #tpu.dot_dimension_numbers<[1], [0], [0], [1], [0, 0, 1, 1], [], []>} : vector<28x8xf32>, vector<8x32xf32>, vector<28x32xf32> -> vector<28x32xf32>
    %cst_71 = arith.constant dense<0.000000e+00> : vector<28x32xf32>
    %157 = tpu.matmul %3, %1, %cst_71 {dimension_numbers = #tpu.dot_dimension_numbers<[1], [0], [0], [1], [0, 0, 1, 1], [], []>} : vector<28x8xf32>, vector<8x32xf32>, vector<28x32xf32> -> vector<28x32xf32>
    %158 = vector.shape_cast %156 : vector<28x32xf32> to vector<28x1x32xf32>
    %cst_72 = arith.constant dense<0.000000e+00> : vector<28x1x32xf32>
    %159 = tpu.matmul %158, %155, %cst_72 {dimension_numbers = #tpu.dot_dimension_numbers<[2], [2], [1], [1], [0, 0, 0, 1, 1, 1], [0], [0]>} : vector<28x1x32xf32>, vector<28x32x32xf32>, vector<28x1x32xf32> -> vector<28x1x32xf32>
    %160 = vector.shape_cast %159 : vector<28x1x32xf32> to vector<28x32xf32>
    %161 = arith.mulf %160, %157 : vector<28x32xf32>
    %162 = vector.shape_cast %82 : vector<28x32xf32> to vector<1x28x32xf32>
    %163 = vector.shape_cast %161 : vector<28x32xf32> to vector<1x28x32xf32>
    %164 = tpu.concatenate %162, %163 in 0 : vector<1x28x32xf32>, vector<1x28x32xf32> -> vector<2x28x32xf32>
    %cst_73 = arith.constant dense<0.000000e+00> : vector<2x28xf32>
    %165 = vector.multi_reduction <add>, %164, %cst_73 [2] : vector<2x28x32xf32> to vector<2x28xf32>
    %166 = vector.shape_cast %165 : vector<2x28xf32> to vector<1x2x28xf32>
    %c0_74 = arith.constant 0 : index
    %c0_75 = arith.constant 0 : index
    %c0_76 = arith.constant 0 : index
    %167 = vector.load %arg12[%c0_74, %c0_75, %c0_76] : memref<1x2x28xf32, #tpu.memory_space<vmem>>, vector<1x2x28xf32>
    tpu.vector_store %arg12[%c0_74, %c0_75, %c0_76], %166 {strides = array<i32>} : memref<1x2x28xf32, #tpu.memory_space<vmem>>, vector<1x2x28xf32>,
    return
  }
  func.func @transform_0(%arg0: i32) -> (i32, i32, i32) {
    %c0_i32 = arith.constant 0 : i32
    %c0_i32_0 = arith.constant 0 : i32
    %c0_i32_1 = arith.constant 0 : i32
    return %arg0, %c0_i32, %c0_i32_0 : i32, i32, i32
  }
  func.func @transform_1(%arg0: i32) -> (i32, i32, i32) {
    %c0_i32 = arith.constant 0 : i32
    %c0_i32_0 = arith.constant 0 : i32
    %c0_i32_1 = arith.constant 0 : i32
    %c0_i32_2 = arith.constant 0 : i32
    return %c0_i32, %c0_i32_0, %c0_i32_1 : i32, i32, i32
  }
  func.func @transform_2(%arg0: i32) -> (i32, i32, i32) {
    %c0_i32 = arith.constant 0 : i32
    %c0_i32_0 = arith.constant 0 : i32
    %c0_i32_1 = arith.constant 0 : i32
    %c0_i32_2 = arith.constant 0 : i32
    return %c0_i32, %c0_i32_0, %c0_i32_1 : i32, i32, i32
  }
  func.func @transform_3(%arg0: i32) -> (i32, i32, i32) {
    %c0_i32 = arith.constant 0 : i32
    %c0_i32_0 = arith.constant 0 : i32
    %c0_i32_1 = arith.constant 0 : i32
    %c0_i32_2 = arith.constant 0 : i32
    return %c0_i32, %c0_i32_0, %c0_i32_1 : i32, i32, i32
  }
  func.func @transform_4(%arg0: i32) -> (i32, i32, i32) {
    %c0_i32 = arith.constant 0 : i32
    %c0_i32_0 = arith.constant 0 : i32
    %c0_i32_1 = arith.constant 0 : i32
    %c0_i32_2 = arith.constant 0 : i32
    return %c0_i32, %c0_i32_0, %c0_i32_1 : i32, i32, i32
  }
  func.func @transform_5(%arg0: i32) -> (i32, i32, i32) {
    %c0_i32 = arith.constant 0 : i32
    %c0_i32_0 = arith.constant 0 : i32
    %c0_i32_1 = arith.constant 0 : i32
    %c0_i32_2 = arith.constant 0 : i32
    return %c0_i32, %c0_i32_0, %c0_i32_1 : i32, i32, i32
  }
  func.func @transform_6(%arg0: i32) -> (i32, i32, i32) {
    %c0_i32 = arith.constant 0 : i32
    %c0_i32_0 = arith.constant 0 : i32
    %c0_i32_1 = arith.constant 0 : i32
    %c0_i32_2 = arith.constant 0 : i32
    return %c0_i32, %c0_i32_0, %c0_i32_1 : i32, i32, i32
  }
  func.func @transform_7(%arg0: i32) -> (i32, i32, i32, i32) {
    %c0_i32 = arith.constant 0 : i32
    %c0_i32_0 = arith.constant 0 : i32
    %c0_i32_1 = arith.constant 0 : i32
    %c0_i32_2 = arith.constant 0 : i32
    %c0_i32_3 = arith.constant 0 : i32
    return %c0_i32, %c0_i32_0, %c0_i32_1, %c0_i32_2 : i32, i32, i32, i32
  }
  func.func @transform_8(%arg0: i32) -> (i32, i32) {
    %c0_i32 = arith.constant 0 : i32
    %c0_i32_0 = arith.constant 0 : i32
    %c0_i32_1 = arith.constant 0 : i32
    return %c0_i32, %c0_i32_0 : i32, i32
  }
  func.func @transform_9(%arg0: i32) -> (i32, i32) {
    %c0_i32 = arith.constant 0 : i32
    %c0_i32_0 = arith.constant 0 : i32
    %c0_i32_1 = arith.constant 0 : i32
    return %c0_i32, %c0_i32_0 : i32, i32
  }
  func.func @transform_10(%arg0: i32) -> (i32, i32) {
    %c0_i32 = arith.constant 0 : i32
    %c0_i32_0 = arith.constant 0 : i32
    %c0_i32_1 = arith.constant 0 : i32
    return %c0_i32, %c0_i32_0 : i32, i32
  }
  func.func @transform_11(%arg0: i32) -> (i32, i32, i32) {
    %c0_i32 = arith.constant 0 : i32
    %c0_i32_0 = arith.constant 0 : i32
    %c0_i32_1 = arith.constant 0 : i32
    return %arg0, %c0_i32, %c0_i32_0 : i32, i32, i32
  }
}

</mosaic_0001>

<bundles_post_ra>
// kernel: tpu_custom_call.1
= control target key start
LH: loop header
LB: loop body
LE: loop exit
PB: predicated region body
PF: predicated region fallthrough
CT: control target
= control target key end

     0   :  { %16 = vsyncpa [#allocation3], 0  ;;  %s11873_s0 = inlined_call_operand.vmem [shape: f32[2,8,32], index: 0, kind: input, shape index: {}]   ;;  %s11874_s1 = inlined_call_operand.vmem [shape: f32[2,32,32], index: 1, kind: input, shape index: {}]   ;;  %s11875_s2 = inlined_call_operand.hbm [shape: f32[2,1,32], index: 2, kind: input, shape index: {}]   ;;  %s11876_s3 = inlined_call_operand.hbm [shape: f32[2,32,32], index: 3, kind: input, shape index: {}]   ;;  %s11877_s4 = inlined_call_operand.hbm [shape: f32[2,1,32], index: 4, kind: input, shape index: {}]   ;;  %s11878_s5 = inlined_call_operand.hbm [shape: f32[2,32,32], index: 5, kind: input, shape index: {}]   ;;  %s11879_s6 = inlined_call_operand.hbm [shape: f32[2,1,32], index: 6, kind: input, shape index: {}]   ;;  %s11880_s7 = inlined_call_operand.hbm [shape: f32[2,28,32,32], index: 7, kind: input, shape index: {}]   ;;  %s11881_s8 = inlined_call_operand.hbm [shape: f32[8,28], index: 8, kind: input, shape index: {}]   ;;  %s11882_s9 = inlined_call_operand.vmem [shape: f32[28,8], index: 9, kind: input, shape index: {}]   ;;  %s11883_s10 = inlined_call_operand.vmem [shape: f32[28,8], index: 10, kind: input, shape index: {}]   ;;  %s11884_s11 = inlined_call_operand.hbm [shape: f32[2,2,28], index: 11, kind: output, shape index: {}]  }
   0x1   :  { %17 = vsyncpa [#allocation6], 0 }
   0x2   :  { %18 = vsyncpa [#allocation9], 0 }
   0x3   :  { %19 = vsyncpa [#allocation12], 0 }
   0x4   :  { %20 = vsyncpa [#allocation4], 0 }
   0x5   :  { %22 = vsyncpa [#allocation4 + $0x1], 0  ;;  %s10518_s17 = smov 0   ;;  %s10520_s18 = smov 0  }
   0x6   :  { %s10522_s19 = smov 0   ;;  %s10524_s20 = smov 0  }
   0x7 LB: > { %11891 = sst [smem:[#allocation20_spill]] %s10431_s19  ;;  %s10539_s21 = sadd.s32 4294967295, %s10435_s20   ;;  %s10435_s20 = sphi %s10524_s20, %s11910_s20   ;;  %s10431_s19 = sphi %s10522_s19, %s11912_s19   ;;  %s10427_s18 = sphi %s10520_s18, %s11914_s18   ;;  %s10423_s17 = sphi %s10518_s17, %s11913_s17  }
   0x8   : > { %s8501_s22 = sadd.s32 4294967294, %s10435_s20   ;;  %s10543_s23 = sadd.s32 1, %s10435_s20  }
   0x9   : > { %11892 = sst [smem:[#allocation21_spill]] %s10543_s23  ;;  %s271_s24 = sadd.s32 1, %s10431_s19 }
   0xa   : > { %s268_s25 = ssub.s32 %s10435_s20, %s10543_s23  ;;  %p281_p0 = scmp.ne.s32.totalorder %s10431_s19, %s10427_s18 }
   0xb   : > { %p269_p1 = scmp.eq.s32.totalorder %s268_s25, 0  ;;  %p282_p2 = scmp.eq.s32.totalorder %s10539_s21, 1 }
   0xc   : > { %p287_p3 = scmp.ne.s32.totalorder %s10427_s18, %s10423_s17  ;;  %p288_p4 = scmp.eq.s32.totalorder %s8501_s22, 1 }
   0xd   : > { %s10554_s26 = scalar_select %p269_p1, %s10431_s19, %s271_s24  }
   0xe   : > { %p10556_p5 = por %p282_p2, %p281_p0  ;;  %p10560_p6 = por %p288_p4, %p287_p3 }
   0xf   : > { %11893 = sst [smem:[#allocation22_spill]] %s10554_s26  ;;  %p8502_p7 = scmp.ge.s32.totalorder %s10435_s20, 1 }
  0x10   : > { %s11894_s27 = scalar_select %p10556_p5, 1, 0 }
  0x11   : > { %s11895_s28 = scalar_select %p10560_p6, 1, 0 }
  0x12   : > { %p295_p8 = scmp.lt.s32.totalorder %s10435_s20, 3  ;;  %p11886_p9 = scmp.eq.s32.totalorder %s10539_s21, 0 }
  0x13   : > { %s10437_s30 = smov [#allocation5]   ;;  %s10438_s14 = smov [#allocation8]  }
  0x14   : > { %p10567_p10 = pnand %p8502_p7, %p295_p8  ;;  %s323_s12 = sshll.u32 %s10437_s30, 4  ;;  %s324_s12 = int_to_ptr.vmem [resolvable:$true] %s323_s12 }
  0x15   : > { %s349_s15 = sshll.u32 %s10438_s14, 4  ;;  %s10439_s16 = smov [#allocation11]   ;;  %s350_s15 = int_to_ptr.vmem [resolvable:$true] %s349_s15 }
  0x16   : > { %s11896_s29 = scalar_select %p10567_p10, 1, 0 }
  0x17   : > { %p10048_p11 = pneg %p10567_p10  ;;  %s375_s22 = sshll.u32 %s10439_s16, 4  ;;  %s376_s22 = int_to_ptr.vmem [resolvable:$true] %s375_s22 }
  0x18   : > { %s10188_s25 = scalar_lea.vmem %s324_s12, 1024  ;;  %p10196_p3 = scmp.lt.s32.totalorder %s324_s12, %s324_s12 }
  0x19   : > { %p10575_p12 = pnand %p11886_p9, %p10048_p11  ;;  %p10189_p0 = scmp.ne.s32.totalorder %s324_s12, %s10188_s25 }
  0x1a   : > { %p10197_p4 = scmp.lt.s32.totalorder %s10188_s25, %s10188_s25 }
  0x1b   : > { %p10581_p13 = pneg %p10575_p12 }
  0x1c   : > { %p10198_p7 = por %p10197_p4, %p10196_p3 }
  0x1d   : > { %p10191_p1 = pnand %p10189_p0, %p10581_p13 }
  0x1f   : > { %p10192_p2 = pneg %p10191_p1 }
  0x21   : > { %p10199_p8 = pnand %p10198_p7, %p10192_p2 }
  0x23   : > { %10202 = shalt.err (!%p10199_p8)
}
  0x24   : > { %s10440_s30 = smov 128   ;;  %s10441_s14 = smov 8  }
  0x25   : > { %10054 = dma.hbm_to_vmem [thread:$0]  (!%p10575_p12), %s11876_s3, 1024, %s324_s12, [#allocation6], %s10440_s30, %s10440_s30, %s10441_s14  }
  0x26   : > { %s10214_s19 = scalar_lea.vmem %s350_s15, 1024  ;;  %p10222_p1 = scmp.lt.s32.totalorder %s350_s15, %s350_s15 }
  0x27   : > { %p10215_p11 = scmp.ne.s32.totalorder %s350_s15, %s10214_s19  ;;  %p10223_p6 = scmp.lt.s32.totalorder %s10214_s19, %s10214_s19 }
  0x29   : > { %p10217_p9 = pnand %p10215_p11, %p10581_p13  ;;  %p10224_p5 = por %p10223_p6, %p10222_p1 }
  0x2b   : > { %p10218_p0 = pneg %p10217_p9 }
  0x2d   : > { %p10225_p3 = pnand %p10224_p5, %p10218_p0 }
  0x2f   : > { %10228 = shalt.err (!%p10225_p3)
}
  0x30   : > { %10060 = dma.hbm_to_vmem [thread:$0]  (!%p10575_p12), %s11878_s5, 1024, %s350_s15, [#allocation9], %s10440_s30, %s10440_s30, %s10441_s14  }
  0x31   : > { %s10240_s26 = scalar_lea.vmem %s376_s22, 28672  ;;  %p10248_p8 = scmp.lt.s32.totalorder %s376_s22, %s376_s22 }
  0x32   : > { %p10241_p2 = scmp.ne.s32.totalorder %s376_s22, %s10240_s26  ;;  %p10249_p9 = scmp.lt.s32.totalorder %s10240_s26, %s10240_s26 }
  0x34   : > { %p10243_p4 = pnand %p10241_p2, %p10581_p13  ;;  %p10250_p11 = por %p10249_p9, %p10248_p8 }
  0x36   : > { %p10244_p7 = pneg %p10243_p4 }
  0x38   : > { %p10251_p10 = pnand %p10250_p11, %p10244_p7 }
  0x3a   : > { %10254 = shalt.err (!%p10251_p10)
}
  0x3b   : > { %10066 = dma.hbm_to_vmem [thread:$0]  (!%p10575_p12), %s11880_s7, 28672, %s376_s22, [#allocation12], %s10440_s30, %s10440_s30, %s10441_s14  }
  0x3c   : > { %s10442_s23 = smov [#allocation2]  }
  0x3d   : > { %s310_s15 = sshll.u32 %s10442_s23, 4  ;;  %s311_s15 = int_to_ptr.vmem [resolvable:$true] %s310_s15 }
  0x3e   : > { %s10266_s16 = scalar_lea.vmem %s311_s15, 32  ;;  %p10274_p1 = scmp.lt.s32.totalorder %s311_s15, %s311_s15 }
  0x3f   : > { %p10267_p5 = scmp.ne.s32.totalorder %s311_s15, %s10266_s16  ;;  %p10275_p3 = scmp.lt.s32.totalorder %s10266_s16, %s10266_s16 }
  0x41   : > { %p10269_p6 = pnand %p10267_p5, %p10581_p13  ;;  %p10276_p2 = por %p10275_p3, %p10274_p1 }
  0x43   : > { %p10270_p0 = pneg %p10269_p6 }
  0x45   : > { %p10277_p4 = pnand %p10276_p2, %p10270_p0 }
  0x47   : > { %10280 = shalt.err (!%p10277_p4)
}
  0x48   : > { %s10443_s25 = smov 16   ;;  %s10444_s26 = smov 1  }
  0x49   : > { %10051 = dma.hbm_to_vmem [thread:$0]  (!%p10575_p12), %s11875_s2, 32, %s311_s15, [#allocation3], %s10443_s25, %s10443_s25, %s10444_s26  }
  0x4a   : > { %s10445_s14 = smov [#allocation7]   ;;  %s10446_s12 = smov [#allocation10]  }
  0x4b   : > { %s336_s19 = sshll.u32 %s10445_s14, 4  ;;  %s362_s23 = sshll.u32 %s10446_s12, 4  ;;  %s337_s19 = int_to_ptr.vmem [resolvable:$true] %s336_s19  ;;  %s363_s23 = int_to_ptr.vmem [resolvable:$true] %s362_s23 }
  0x4c   : > { %s10292_s16 = scalar_lea.vmem %s337_s19, 32  ;;  %p10300_p9 = scmp.lt.s32.totalorder %s337_s19, %s337_s19 }
  0x4d   : > { %p10293_p10 = scmp.ne.s32.totalorder %s337_s19, %s10292_s16  ;;  %p10301_p11 = scmp.lt.s32.totalorder %s10292_s16, %s10292_s16 }
  0x4f   : > { %p10295_p7 = pnand %p10293_p10, %p10581_p13  ;;  %p10302_p5 = por %p10301_p11, %p10300_p9 }
  0x51   : > { %p10296_p8 = pneg %p10295_p7 }
  0x53   : > { %p10303_p6 = pnand %p10302_p5, %p10296_p8 }
  0x55   : > { %10306 = shalt.err (!%p10303_p6)
}
  0x56   : > { %10057 = dma.hbm_to_vmem [thread:$0]  (!%p10575_p12), %s11877_s4, 32, %s337_s19, [#allocation6], %s10443_s25, %s10443_s25, %s10444_s26  }
  0x57   : > { %s10318_s30 = scalar_lea.vmem %s363_s23, 32  ;;  %p10326_p2 = scmp.lt.s32.totalorder %s363_s23, %s363_s23 }
  0x58   : > { %p10319_p0 = scmp.ne.s32.totalorder %s363_s23, %s10318_s30  ;;  %p10327_p4 = scmp.lt.s32.totalorder %s10318_s30, %s10318_s30 }
  0x5a   : > { %p10321_p1 = pnand %p10319_p0, %p10581_p13  ;;  %p10328_p10 = por %p10327_p4, %p10326_p2 }
  0x5c   : > { %p10322_p3 = pneg %p10321_p1 }
  0x5e   : > { %p10329_p7 = pnand %p10328_p10, %p10322_p3 }
  0x60   : > { %10332 = shalt.err (!%p10329_p7)
}
  0x61   : > { %10063 = dma.hbm_to_vmem [thread:$0]  (!%p10575_p12), %s11879_s6, 32, %s363_s23, [#allocation9], %s10443_s25, %s10443_s25, %s10444_s26  }
  0x62   : > { %s10447_s19 = smov [#allocation13]  }
  0x63   : > { %s389_s16 = sshll.u32 %s10447_s19, 4  ;;  %s390_s16 = int_to_ptr.vmem [resolvable:$true] %s389_s16 }
  0x64   : > { %s10344_s15 = scalar_lea.vmem %s390_s16, 128  ;;  %p10352_p5 = scmp.lt.s32.totalorder %s390_s16, %s390_s16 }
  0x65   : > { %p10345_p8 = scmp.ne.s32.totalorder %s390_s16, %s10344_s15  ;;  %p10353_p6 = scmp.lt.s32.totalorder %s10344_s15, %s10344_s15 }
  0x67   : > { %p10347_p9 = pnand %p10345_p8, %p10581_p13  ;;  %p10354_p0 = por %p10353_p6, %p10352_p5 }
  0x69   : > { %p10348_p11 = pneg %p10347_p9 }
  0x6b   : > { %p10355_p1 = pnand %p10354_p0, %p10348_p11 }
  0x6d   : > { %10358 = shalt.err (!%p10355_p1)
}
  0x6e   : > { %10069 = dma.hbm_to_vmem [thread:$0]  (!%p10575_p12), %s11881_s8, 128, %s390_s16, [#allocation12]  }
  0x6f   : > { %p11899_p3 = scmp.ne.s32.totalorder %s11896_s29, 0 }
  0x70   : > { %p11900_p2 = scmp.eq.s32.totalorder (!%p11899_p3), %s10539_s21, 0 }
  0x71   : > { %415 = sbr.rel (%p11899_p3) target bundleno = 4373 (0x1115), region = 64 }
  0x76   : > { %10402 = dma.done.wait (%p11900_p2), [#allocation3], 32   ;;  %p11901_p13 = pmov %p11900_p2 }
  0x77   : > { %p11902_p4 = pmov %p11900_p2 }
  0x78   : > { %10404 = vsyncadd (%p11901_p13), [#allocation3], 4294967264 }
  0x79   : > { %10406 = dma.done.wait (%p11902_p4), [#allocation6], 1056   ;;  %p11903_p10 = pmov %p11900_p2 }
  0x7a   : > { %p11904_p7 = pmov %p11900_p2 }
  0x7b   : > { %10408 = vsyncadd (%p11903_p10), [#allocation6], 4294966240 }
  0x7c   : > { %10410 = dma.done.wait (%p11904_p7), [#allocation9], 1056   ;;  %p11905_p12 = pmov %p11900_p2 }
  0x7d   : > { %p11906_p8 = pmov %p11900_p2 }
  0x7e   : > { %10412 = vsyncadd (%p11905_p12), [#allocation9], 4294966240 }
  0x7f   : > { %10414 = dma.done.wait (%p11906_p8), [#allocation12], 28800   ;;  %p11907_p9 = pmov %p11900_p2 }
  0x80   : > { %p478_p11 = scmp.lt.s32.totalorder %s10539_s21, 1  ;;  %v10448_v0 = vmov 0.0   ;;  %vm10449_vm0 = vmmov 0   ;;  %v580_v1 = vld [vmem:[#allocation5 + $0x18] sm:$0xff]  ;;  %v579_v3 = vld [vmem:[#allocation5 + $0x10] sm:$0xff]  ;;  %v578_v5 = vld [vmem:[#allocation5 + $0x8] sm:$0xff] }
  0x81   : > { %10416 = vsyncadd (%p11907_p9), [#allocation12], 4294938496  ;;  %9232 = vmatprep.subr.mxu1 %v10448_v0  ;;  %9221 = vmatprep.subr.mxu0 %v10448_v0  ;;  %v495_v2 = vld [vmem:[%s11874_s1 + $0x18] sm:$0xff]  ;;  %v494_v4 = vld [vmem:[%s11874_s1 + $0x10] sm:$0xff]  ;;  %vm503_vm1 = vcmask 261120   ;;  %vm688_vm2 = vcmask 64512  }
  0x82   : > { %9240 = vmatprep.mubr.msk.f32.mxu1 %vm10449_vm0, %v10448_v0  ;;  %9229 = vmatprep.mubr.msk.f32.mxu0 %vm10449_vm0, %v10448_v0  ;;  %s479_s29 = scalar_select %p478_p11, %s10539_s21, 1  ;;  %v493_v6 = vld [vmem:[%s11874_s1 + $0x8] sm:$0xff]  ;;  %v492_v8 = vld [vmem:[%s11874_s1] sm:$0xff]  ;;  %vm1338_vm3 = vcmask 130048   ;;  %vm1340_vm4 = vcmask 195584   ;;  %vm4372_vm5 = vcmask 1041409  }
  0x83   : > { %9233 = vmatpush3.msra.mxu1 %v580_v1  ;;  %9222 = vmatpush3.msra.mxu0 %v495_v2  ;;  %v577_v7 = vld [vmem:[#allocation5] sm:$0xff]  ;;  %v8521_v11 = vld [vmem:[#allocation2] ss:$0 sm:$0xff]  ;;  %s10452_s24 = smov 104   ;;  %s10453_s25 = smov 16   ;;  %vm4375_vm6 = vcmask 1042434  }
  0x84   : > { %s8520_s13 = sshll.u32 %s479_s29, 3  ;;  %9234 = vmatprep.subr.mxu1 %v10448_v0  ;;  %9223 = vmatprep.subr.mxu0 %v10448_v0  ;;  %v8523_v10 = vld [vmem:[#allocation7] ss:$0 sm:$0xff]  ;;  %s10450_s29 = smov 112   ;;  %vm4378_vm7 = vcmask 1043459   ;;  %vm4381_vm8 = vcmask 1044484  }
  0x85   : > { %s481_s15 = scalar_lea.vmem %s11873_s0, %s8520_s13  ;;  %9235 = vmatpush3.msra.mxu1 %v579_v3  ;;  %9224 = vmatpush3.msra.mxu0 %v494_v4  ;;  %s10451_s13 = smov 120   ;;  %vm4384_vm9 = vcmask 1045509   ;;  %vm4387_vm10 = vcmask 1046534   ;;  %vm4390_vm11 = vcmask 1047559   ;;  %vm4433_vm12 = vcmask 1043456  }
  0x86   : > { %9236 = vmatprep.subr.mxu1 %v10448_v0  ;;  %9225 = vmatprep.subr.mxu0 %v10448_v0  ;;  %v10688_v9 = vld [vmem:[%s481_s15] sm:$0xff]  ;;  %s10454_s26 = smov 8   ;;  %s10455_s23 = smov 24   ;;  %vm4429_vm13 = vcmask 228352   ;;  %vm8285_vm14 = vcmask 257024   ;;  %vm8320_vm15 = vcmask 130112  }
  0x87   : > { %9237 = vmatpush3.msra.mxu1 %v578_v5  ;;  %9226 = vmatpush3.msra.mxu0 %v493_v6  ;;  %s475_s22 = sand.u32 1, %s10427_s18   ;;  %s8856_s14 = sshll.u32 %s10539_s21, 5 }
  0x88   : > { %9238 = vmatprep.subr.mxu1 %v10448_v0  ;;  %9227 = vmatprep.subr.mxu0 %v10448_v0  ;;  %s11826_s30 = sshll.u32 %s475_s22, 1  ;;  %s8360_s21 = scalar_lea.sflag [#allocation4], %s475_s22 }
  0x89   : > { %9239 = vmatpush3.msra.mxu1 %v577_v7  ;;  %9228 = vmatpush3.msra.mxu0 %v492_v8  ;;  %s477_s12 = scalar_lea.vmem [#allocation14], %s11826_s30  ;;  %p11908_p6 = scmp.ne.s32.totalorder %s11894_s27, 0 }
  0x8a   : > { %9241 = vmatmul.mubr.msk.f32.vlgmr.msra.gmra.mxu1 %vm503_vm1, %v10688_v9  ;;  %9230 = vmatmul.mubr.msk.f32.vlgmr.msra.gmra.mxu0 %vm503_vm1, %v10688_v9  ;;  %s8373_s19 = sshll.u32 %s477_s12, 4  ;;  %s8374_s19 = int_to_ptr.vmem [resolvable:$true] %s8373_s19 }
  0x8b   : > { %9243 = vmatprep.subr.mxu0 %v10448_v0  ;;  %9245 = vmatprep.mubr.msk.f32.mxu0 %vm10449_vm0, %v10448_v0 }
  0x8c   : > { %9248 = vmatprep.subr.mxu1 %v10448_v0  ;;  %9250 = vmatprep.mubr.msk.f32.mxu1 %vm10449_vm0, %v10448_v0 }
 0x14a   : > { %v654_v12 = vpop.f32.mrf.mxu1  ;;  %v573_v13 = vpop.f32.mrf.mxu0 }
 0x14b   : > { %v655_v14 = vadd.f32 %v8523_v10, %v654_v12  ;;  %v574_v15 = vadd.f32 %v8521_v11, %v573_v13 }
 0x14c   : > { %v9242_v16 = vpop.f32.mrf.mxu1  ;;  %v9231_v17 = vpop.f32.mrf.mxu0 }
 0x14d   : > { %v668_v18 = vmul.f32 0.35355338, %v574_v15  ;;  %675 = vrot.lane.b32.xlu1 %v655_v14, %s10450_s29  ;;  %673 = vrot.lane.b32.xlu0 %v655_v14, %s10451_s13  ;;  %v1344_v16 = vld [vmem:[#allocation8 + $0x10] sm:$0xff]  ;;  %v1343_v17 = vld [vmem:[#allocation8 + $0x8] sm:$0xff] }
 0x14e   : > { %9244 = vmatpush3.xpose.msk.msra.mxu0 %vm688_vm2, %v655_v14 }
 0x14f   : > { %9253 = vmatprep.subr.mxu0 %v10448_v0 }
 0x151   : > { %9246 = vmatmul.mubr.msk.f32.vlgmr.msra.gmra.mxu0 %vm688_vm2, %v668_v18  ;;  %662 = vrot.lane.b32.xlu1 %v574_v15, %s10450_s29  ;;  %v1342_v18 = vld [vmem:[#allocation8] sm:$0xff] }
 0x152   : > { %659 = vrot.lane.b32.xlu0 %v574_v15, %s10451_s13  ;;  %9255 = vmatprep.mubr.msk.f32.mxu0 %vm10449_vm0, %v10448_v0 }
 0x155   : > { %665 = vrot.lane.b32.xlu1 %v574_v15, %s10452_s24  ;;  %v1345_v15 = vld [vmem:[#allocation8 + $0x18] sm:$0xff] }
 0x156   : > { %677 = vrot.lane.b32.xlu0 %v655_v14, %s10452_s24 }
 0x1bf   : > { %v676_v19 = vpop.permute.xlu1 %675  ;;  %v674_v20 = vpop.permute.xlu0 %673 }
 0x1c0   : > { %9249 = vmatpush3.xpose.msk.msra.mxu1 %vm688_vm2, %v674_v20  ;;  %9254 = vmatpush3.xpose.msk.msra.mxu0 %vm688_vm2, %v676_v19 }
 0x1c1   : > { %9258 = vmatprep.subr.mxu1 %v10448_v0  ;;  %9263 = vmatprep.subr.mxu0 %v10448_v0 }
 0x1c3   : > { %v663_v21 = vpop.permute.xlu1 %662 }
 0x1c4   : > { %v670_v22 = vmul.f32 0.35355338, %v663_v21  ;;  %v660_v23 = vpop.permute.xlu0 %659 }
 0x1c5   : > { %v669_v24 = vmul.f32 0.35355338, %v660_v23 }
 0x1c6   : > { %9256 = vmatmul.mubr.msk.f32.vlgmr.msra.gmra.mxu0 %vm688_vm2, %v670_v22 }
 0x1c7   : > { %9251 = vmatmul.mubr.msk.f32.vlgmr.msra.gmra.mxu1 %vm688_vm2, %v669_v24  ;;  %v666_v25 = vpop.permute.xlu1 %665  ;;  %9264 = vmatpush3.msra.mxu0 %v10688_v9 }
 0x1c8   : > { %v671_v26 = vmul.f32 0.35355338, %v666_v25  ;;  %v678_v27 = vpop.permute.xlu0 %677  ;;  %9260 = vmatprep.mubr.msk.f32.mxu1 %vm10449_vm0, %v10448_v0  ;;  %9265 = vmatprep.mubr.msk.f32.mxu0 %vm10449_vm0, %v10448_v0 }
 0x1c9   : > { %9259 = vmatpush3.xpose.msk.msra.mxu1 %vm688_vm2, %v678_v27  ;;  %9273 = vmatprep.subr.mxu0 %v10448_v0 }
 0x1ca   : > { %9268 = vmatprep.subr.mxu1 %v10448_v0 }
 0x1cc   : > { %9261 = vmatmul.mubr.msk.f32.vlgmr.msra.gmra.mxu1 %vm688_vm2, %v671_v26 }
 0x1cd   : > { %9270 = vmatprep.mubr.msk.f32.mxu1 %vm10449_vm0, %v10448_v0 }
 0x211   : > { %v760_v28 = vpop.f32.mrf.mxu0 }
 0x212   : > { %v989_v29 = vsel %vm688_vm2, %v760_v28, -inf }
 0x213   : > { %990 = vmax.xlane.f32.xlu0 %v989_v29  ;;  %v9247_v30 = vpop.f32.mrf.mxu0 }
 0x286   : > { %v910_v31 = vpop.f32.mrf.mxu0 }
 0x287   : > { %v835_v32 = vpop.f32.mrf.mxu1  ;;  %v995_v33 = vsel %vm688_vm2, %v910_v31, -inf }
 0x288   : > { %v992_v34 = vsel %vm688_vm2, %v835_v32, -inf  ;;  %996 = vmax.xlane.f32.xlu0 %v995_v33  ;;  %v9257_v35 = vpop.f32.mrf.mxu0  ;;  %v488_v33 = vld [vmem:[%s11883_s10 + $0x8] sm:$0xff] }
 0x289   : > { %993 = vmax.xlane.f32.xlu1 %v992_v34  ;;  %v9252_v36 = vpop.f32.mrf.mxu1  ;;  %v1433_v34 = vld [vmem:[#allocation11 + $0x38] sm:$0xff] }
 0x28a   : > { %v8537_v35 = vld [vmem:[#allocation10] ss:$0 sm:$0xff] }
 0x28c   : > { %v985_v37 = vpop.f32.mrf.mxu1 }
 0x28d   : > { %v998_v38 = vsel %vm688_vm2, %v985_v37, -inf }
 0x28e   : > { %v9262_v39 = vpop.f32.mrf.mxu1  ;;  %999 = vmax.xlane.f32.xlu0 %v998_v38 }
 0x28f   : > { %v484_v39 = vld [vmem:[%s11882_s9 + $0x8] sm:$0xff] }
 0x29a   : > { %679 = vrot.lane.b32.xlu1 %v10688_v9, %s10451_s13 }
 0x29c   : > { %v991_v40 = vpop.xlane.xlu0 %990 }
 0x29d   : > { %v1001_v41 = vsub.f32 %v760_v28, %v991_v40  ;;  %v485_v40 = vld [vmem:[%s11882_s9 + $0x10] sm:$0xff] }
 0x29f   : > { %v1005_v42 = vmul.f32 1.442695, %v1001_v41  ;;  %v1429_v41 = vld [vmem:[#allocation11 + $0x18] sm:$0xff] }
 0x2a1   : > { %10141 = vpow2.f32 %v1005_v42  ;;  %v486_v42 = vld [vmem:[%s11882_s9 + $0x18] sm:$0xf] }
 0x2ae   : > { %v10142_v43 = vpop.eup %10141 }
 0x2af   : > { %v1013_v44 = vsel %vm688_vm2, %v10142_v43, 0.0 }
 0x2be   : > { %1014 = vadd.xlane.f32.xlu1 %v1013_v44  ;;  %v1427_v44 = vld [vmem:[#allocation11 + $0x8] sm:$0xff] }
 0x311   : > { %v997_v45 = vpop.xlane.xlu0 %996 }
 0x312   : > { %v994_v46 = vpop.xlane.xlu1 %993  ;;  %v1003_v47 = vsub.f32 %v910_v31, %v997_v45  ;;  %v483_v31 = vld [vmem:[%s11882_s9] sm:$0xff]  ;;  %v1431_v45 = vld [vmem:[#allocation11 + $0x28] sm:$0xff] }
 0x313   : > { %v1002_v48 = vsub.f32 %v835_v32, %v994_v46  ;;  %v487_v32 = vld [vmem:[%s11883_s10] sm:$0xff]  ;;  %v489_v46 = vld [vmem:[%s11883_s10 + $0x10] sm:$0xff] }
 0x314   : > { %v1009_v49 = vmul.f32 1.442695, %v1003_v47  ;;  %v490_v47 = vld [vmem:[%s11883_s10 + $0x18] sm:$0xf] }
 0x315   : > { %v1007_v50 = vmul.f32 1.442695, %v1002_v48  ;;  %v1426_v48 = vld [vmem:[#allocation11] sm:$0xff] }
 0x316   : > { %10143 = vpow2.f32 %v1009_v49  ;;  %v680_v51 = vpop.permute.xlu1 %679  ;;  %v1430_v49 = vld [vmem:[#allocation11 + $0x20] sm:$0xff] }
 0x317   : > { %10145 = vpow2.f32 %v1007_v50  ;;  %v1000_v52 = vpop.xlane.xlu0 %999  ;;  %9269 = vmatpush3.msra.mxu1 %v680_v51  ;;  %v10456_v50 = vmov 1966171168  }
 0x318   : > { %v1004_v53 = vsub.f32 %v985_v37, %v1000_v52  ;;  %9278 = vmatprep.subr.mxu1 %v10448_v0  ;;  %v1738_v51 = vunpack.c.l.s4 %v10456_v50  ;;  %v1740_v52 = vlaneseq  ;;  %v1466_v50 = vld [vmem:[#allocation11 + $0x140] sm:$0xff] }
 0x31a   : > { %v1011_v54 = vmul.f32 1.442695, %v1004_v53  ;;  %v1739_v53 = vunpack.c.0.s8 %v1738_v51  ;;  %v1470_v51 = vld [vmem:[#allocation11 + $0x160] sm:$0xff] }
 0x31c   : > { %10147 = vpow2.f32 %v1011_v54  ;;  %v10823_v54 = vshrl.u32 %v1740_v52, 7 }
 0x323   : > { %v10144_v55 = vpop.eup %10143 }
 0x324   : > { %v10146_v56 = vpop.eup %10145  ;;  %v1019_v57 = vsel %vm688_vm2, %v10144_v55, 0.0 }
 0x325   : > { %v1016_v58 = vsel %vm688_vm2, %v10146_v56, 0.0  ;;  %1020 = vadd.xlane.f32.xlu1 %v1019_v57 }
 0x326   : > { %1017 = vadd.xlane.f32.xlu0 %v1016_v58 }
 0x329   : > { %v10148_v59 = vpop.eup %10147 }
 0x32a   : > { %v1022_v60 = vsel %vm688_vm2, %v10148_v59, 0.0 }
 0x32b   : > { %1023 = vadd.xlane.f32.xlu0 %v1022_v60 }
 0x336   : > { %685 = vrot.lane.b32.xlu1 %v10688_v9, %s10452_s24 }
 0x341   : > { %682 = vrot.lane.b32.xlu0 %v10688_v9, %s10450_s29 }
 0x347   : > { %v1015_v61 = vpop.xlane.xlu1 %1014 }
 0x348   : > { %10149 = vrcp.f32 %v1015_v61  ;;  %v1437_v61 = vld [vmem:[#allocation11 + $0x58] sm:$0xff] }
 0x355   : > { %v10150_v62 = vpop.eup %10149 }
 0x356   : > { %v1026_v63 = vmul.f32 %v10150_v62, %v10142_v43  ;;  %v1428_v43 = vld [vmem:[#allocation11 + $0x10] sm:$0xff] }
 0x358   : > { %9266 = vmatmul.mubr.msk.f32.vlgmr.msra.gmra.mxu0 %vm688_vm2, %v1026_v63  ;;  %v1441_v63 = vld [vmem:[#allocation11 + $0x78] sm:$0xff] }
 0x359   : > { %9275 = vmatprep.mubr.msk.f32.mxu0 %vm10449_vm0, %v10448_v0 }
 0x3ae   : > { %v1021_v1 = vpop.xlane.xlu1 %1020 }
 0x3af   : > { %10151 = vrcp.f32 %v1021_v1  ;;  %v1018_v2 = vpop.xlane.xlu0 %1017  ;;  %v1436_v1 = vld [vmem:[#allocation11 + $0x50] sm:$0xff] }
 0x3b0   : > { %10153 = vrcp.f32 %v1018_v2  ;;  %v1440_v2 = vld [vmem:[#allocation11 + $0x70] sm:$0xff] }
 0x3b2   : > { %v686_v10 = vpop.permute.xlu1 %685 }
 0x3b4   : > { %v1024_v3 = vpop.xlane.xlu0 %1023 }
 0x3b5   : > { %10155 = vrcp.f32 %v1024_v3  ;;  %v1435_v3 = vld [vmem:[#allocation11 + $0x48] sm:$0xff] }
 0x3b8   : > { %v683_v4 = vpop.permute.xlu0 %682 }
 0x3b9   : > { %9274 = vmatpush3.msra.mxu0 %v683_v4  ;;  %v1439_v4 = vld [vmem:[#allocation11 + $0x68] sm:$0xff] }
 0x3ba   : > { %9283 = vmatprep.subr.mxu0 %v10448_v0 }
 0x3bc   : > { %v10152_v5 = vpop.eup %10151 }
 0x3bd   : > { %v10154_v6 = vpop.eup %10153  ;;  %v1030_v7 = vmul.f32 %v10152_v5, %v10144_v55  ;;  %v1434_v5 = vld [vmem:[#allocation11 + $0x40] sm:$0xff] }
 0x3be   : > { %v1028_v8 = vmul.f32 %v10154_v6, %v10146_v56  ;;  %v10828_v56 = vsub.s32 %v1739_v53, %v10823_v54  ;;  %v1438_v6 = vld [vmem:[#allocation11 + $0x60] sm:$0xff] }
 0x3bf   : > { %9276 = vmatmul.mubr.msk.f32.vlgmr.msra.gmra.mxu0 %vm688_vm2, %v1030_v7 }
 0x3c0   : > { %9271 = vmatmul.mubr.msk.f32.vlgmr.msra.gmra.mxu1 %vm688_vm2, %v1028_v8  ;;  %9291 = vmatprep.mubr.msk.f32.mxu0 %vm10449_vm0, %v10448_v0  ;;  %v1445_v8 = vld [vmem:[#allocation11 + $0x98] sm:$0xff] }
 0x3c1   : > { %9279 = vmatpush3.msra.mxu1 %v686_v10  ;;  %9280 = vmatprep.mubr.msk.f32.mxu1 %vm10449_vm0, %v10448_v0 }
 0x3c2   : > { %v10156_v11 = vpop.eup %10155  ;;  %9284 = vmatpush3.msra.mxu0 %v1345_v15  ;;  %v1443_v15 = vld [vmem:[#allocation11 + $0x88] sm:$0xff] }
 0x3c3   : > { %v1032_v12 = vmul.f32 %v10156_v11, %v10148_v59  ;;  %9285 = vmatprep.subr.mxu0 %v10448_v0  ;;  %v1449_v11 = vld [vmem:[#allocation11 + $0xb8] sm:$0xff] }
 0x3c4   : > { %9286 = vmatpush3.msra.mxu0 %v1344_v16 }
 0x3c5   : > { %9281 = vmatmul.mubr.msk.f32.vlgmr.msra.gmra.mxu1 %vm688_vm2, %v1032_v12  ;;  %9287 = vmatprep.subr.mxu0 %v10448_v0  ;;  %v1444_v12 = vld [vmem:[#allocation11 + $0x90] sm:$0xff] }
 0x3c6   : > { %9288 = vmatpush3.msra.mxu0 %v1343_v17  ;;  %9296 = vmatprep.mubr.msk.f32.mxu1 %vm688_vm2, %v483_v31  ;;  %v1447_v17 = vld [vmem:[#allocation11 + $0xa8] sm:$0xff] }
 0x3c7   : > { %9289 = vmatprep.subr.mxu0 %v10448_v0 }
 0x3c8   : > { %9290 = vmatpush3.msra.mxu0 %v1342_v18  ;;  %v1442_v18 = vld [vmem:[#allocation11 + $0x80] sm:$0xff] }
 0x3c9   : > { %9302 = vmatprep.subr.mxu0 %v10688_v9 }
 0x418   : > { %v1102_v13 = vpop.f32.mrf.mxu0 }
 0x41a   : > { %v9267_v14 = vpop.f32.mrf.mxu0 }
 0x41b   : > { %v1448_v14 = vld [vmem:[#allocation11 + $0xb0] sm:$0xff] }
 0x47f   : > { %v1248_v19 = vpop.f32.mrf.mxu0 }
 0x480   : > { %v1175_v20 = vpop.f32.mrf.mxu1  ;;  %1330 = vrot.lane.b32.xlu0 %v1248_v19, %s10453_s25 }
 0x481   : > { %1326 = vrot.lane.b32.xlu1 %v1175_v20, %s10454_s26  ;;  %v9277_v21 = vpop.f32.mrf.mxu0  ;;  %v1446_v20 = vld [vmem:[#allocation11 + $0xa0] sm:$0xff] }
 0x482   : > { %v9272_v22 = vpop.f32.mrf.mxu1 }
 0x483   : > { %v1453_v22 = vld [vmem:[#allocation11 + $0xd8] sm:$0xff] }
 0x485   : > { %v1321_v23 = vpop.f32.mrf.mxu1 }
 0x486   : > { %1334 = vrot.lane.b32.xlu1 %v1321_v23, %s10455_s23 }
 0x487   : > { %v9282_v24 = vpop.f32.mrf.mxu1 }
 0x488   : > { %v1457_v24 = vld [vmem:[#allocation11 + $0xf8] sm:$0xff] }
 0x4f2   : > { %v1331_v27 = vpop.permute.xlu0 %1330 }
 0x4f3   : > { %v1327_v25 = vpop.permute.xlu1 %1326 }
 0x4f4   : > { %v1337_v26 = vsel %vm688_vm2, %v1102_v13, %v1327_v25  ;;  %v1452_v25 = vld [vmem:[#allocation11 + $0xd0] sm:$0xff] }
 0x4f5   : > { %v1339_v28 = vsel %vm1338_vm3, %v1337_v26, %v1331_v27  ;;  %v1456_v26 = vld [vmem:[#allocation11 + $0xf0] sm:$0xff]  ;;  %v1451_v27 = vld [vmem:[#allocation11 + $0xc8] sm:$0xff] }
 0x4f8   : > { %v1335_v29 = vpop.permute.xlu1 %1334 }
 0x4f9   : > { %v1341_v30 = vsel %vm1340_vm4, %v1339_v28, %v1335_v29  ;;  %v1455_v28 = vld [vmem:[#allocation11 + $0xe8] sm:$0xff]  ;;  %v1450_v29 = vld [vmem:[#allocation11 + $0xc0] sm:$0xff] }
 0x4fa   : > { %9292 = vmatmul.mubr.msk.f32.vlgmr.msra.gmra.mxu0 %vm503_vm1, %v1341_v30  ;;  %v1454_v30 = vld [vmem:[#allocation11 + $0xe0] sm:$0xff] }
 0x4fb   : > { %9303 = vmatpush3.msra.mxu0 %v10688_v9  ;;  %9304 = vmatprep.mubr.msk.f32.mxu0 %vm688_vm2, %v487_v32  ;;  %v1432_v9 = vld [vmem:[#allocation11 + $0x30] sm:$0xff]  ;;  %v1461_v32 = vld [vmem:[#allocation11 + $0x118] sm:$0xff] }
 0x4fc   : > { %9321 = vmatprep.subr.mxu0 %v10448_v0 }
 0x4fe   : > { %9305 = vmatmul.mubr.msk.f32.vlgmr.msra.gmra.mxu0 %vm688_vm2, %v488_v33 }
 0x4ff   : > { %9322 = vmatpush3.xpose.msk.msra.mxu0 %vm503_vm1, %v1433_v34  ;;  %9307 = vmatprep.mubr.msk.f32.mxu0 %vm688_vm2, %v489_v46  ;;  %v1465_v34 = vld [vmem:[#allocation11 + $0x138] sm:$0xff]  ;;  %v1468_v46 = vld [vmem:[#allocation11 + $0x150] sm:$0xff] }
 0x500   : > { %9323 = vmatprep.subr.mxu0 %v10448_v0 }
 0x502   : > { %9308 = vmatmul.mubr.msk.f32.gmra.mxu0 %vm688_vm2, %v490_v47  ;;  %v1472_v47 = vld [vmem:[#allocation11 + $0x170] sm:$0xff] }
 0x503   : > { %9324 = vmatpush3.xpose.msk.msra.mxu0 %vm503_vm1, %v1432_v9  ;;  %9329 = vmatprep.mubr.msk.f32.mxu0 %vm10449_vm0, %v10448_v0  ;;  %v1460_v9 = vld [vmem:[#allocation11 + $0x110] sm:$0xff] }
 0x504   : > { %9325 = vmatprep.subr.mxu0 %v10448_v0 }
 0x507   : > { %9326 = vmatpush3.xpose.msk.msra.mxu0 %vm503_vm1, %v1431_v45  ;;  %v1473_v45 = vld [vmem:[#allocation11 + $0x178] sm:$0xff] }
 0x508   : > { %9327 = vmatprep.subr.mxu0 %v10448_v0 }
 0x50b   : > { %9328 = vmatpush3.xpose.msk.msra.mxu0 %vm503_vm1, %v1430_v49  ;;  %v1471_v49 = vld [vmem:[#allocation11 + $0x168] sm:$0xff] }
 0x50c   : > { %9343 = vmatprep.subr.mxu0 %v10448_v0 }
 0x5ba   : > { %v1422_v36 = vpop.f32.mrf.mxu0 }
 0x5bb   : > { %v1423_v37 = vadd.f32 %v8537_v35, %v1422_v36  ;;  %v1464_v35 = vld [vmem:[#allocation11 + $0x130] sm:$0xff]  ;;  %v1459_v36 = vld [vmem:[#allocation11 + $0x108] sm:$0xff] }
 0x5bc   : > { %v9293_v38 = vpop.f32.mrf.mxu0 }
 0x5bd   : > { %9294 = vmatprep.subr.mxu1 %v1423_v37  ;;  %v1463_v38 = vld [vmem:[#allocation11 + $0x128] sm:$0xff] }
 0x5be   : > { %9295 = vmatpush3.msra.mxu1 %v1423_v37 }
 0x5bf   : > { %9297 = vmatmul.mubr.msk.f32.vlgmr.msra.gmra.mxu1 %vm688_vm2, %v484_v39  ;;  %9310 = vmatprep.subr.mxu1 %v10448_v0  ;;  %v1458_v39 = vld [vmem:[#allocation11 + $0x100] sm:$0xff] }
 0x5c0   : > { %9299 = vmatprep.mubr.msk.f32.mxu1 %vm688_vm2, %v485_v40  ;;  %9311 = vmatpush3.xpose.msk.msra.mxu1 %vm503_vm1, %v1429_v41  ;;  %v1462_v41 = vld [vmem:[#allocation11 + $0x120] sm:$0xff] }
 0x5c1   : > { %9312 = vmatprep.subr.mxu1 %v10448_v0 }
 0x5c3   : > { %9300 = vmatmul.mubr.msk.f32.gmra.mxu1 %vm688_vm2, %v486_v42 }
 0x5c4   : > { %9313 = vmatpush3.xpose.msk.msra.mxu1 %vm503_vm1, %v1428_v43  ;;  %9318 = vmatprep.mubr.msk.f32.mxu1 %vm10449_vm0, %v10448_v0  ;;  %v1469_v43 = vld [vmem:[#allocation11 + $0x158] sm:$0xff] }
 0x5c5   : > { %9314 = vmatprep.subr.mxu1 %v10448_v0 }
 0x5c8   : > { %9315 = vmatpush3.xpose.msk.msra.mxu1 %vm503_vm1, %v1427_v44 }
 0x5c9   : > { %9316 = vmatprep.subr.mxu1 %v10448_v0 }
 0x5cc   : > { %9317 = vmatpush3.xpose.msk.msra.mxu1 %vm503_vm1, %v1426_v48  ;;  %v1467_v48 = vld [vmem:[#allocation11 + $0x148] sm:$0xff] }
 0x5cd   : > { %9332 = vmatprep.subr.mxu1 %v10448_v0 }
 0x67f   : > { %v10825_v55 = vpop.f32.mrf.mxu1 }
 0x680   : > { %v1792_v37 = vrot.slane %v10825_v55, %v10828_v56 }
 0x681   : > { %v1616_v57 = vpop.f32.mrf.mxu1 }
 0x682   : > { %v1743_v58 = vrot.slane %v1616_v57, %v10828_v56  ;;  %v1736_v13 = vcombine.high %v1616_v57, %v1616_v57  ;;  %v1800_v40 = vcombine.high %v1792_v37, %v1792_v37  ;;  %v1808_v42 = vrot.slane %v1792_v37, %v10828_v56  ;;  %v1477_v57 = vld [vmem:[#allocation11 + $0x198] sm:$0xff]  ;;  %v1498_v37 = vld [vmem:[#allocation11 + $0x240] sm:$0xff] }
 0x684   : > { %v1751_v59 = vcombine.high %v1743_v58, %v1743_v58  ;;  %v1759_v60 = vrot.slane %v1743_v58, %v10828_v56  ;;  %v1750_v16 = vrot.slane %v1736_v13, %v10828_v56  ;;  %v1822_v44 = vrot.slane %v1800_v40, %v10828_v56  ;;  %v1487_v13 = vld [vmem:[#allocation11 + $0x1e8] sm:$0xff]  ;;  %v1509_v40 = vld [vmem:[#allocation11 + $0x298] sm:$0xff] }
 0x685   : > { %v1830_v53 = vcombine.high %v1808_v42, %v1808_v42 }
 0x686   : > { %v1773_v62 = vrot.slane %v1751_v59, %v10828_v56  ;;  %9319 = vmatmul.mubr.msk.f32.vlgmr.msra.gmra.mxu1 %vm503_vm1, %v1759_v60  ;;  %v1781_v7 = vcombine.high %v1759_v60, %v1759_v60  ;;  %v1752_v19 = vcombine.high %v1750_v16, %v1750_v16  ;;  %v1766_v21 = vrot.slane %v1750_v16, %v10828_v56  ;;  %v1481_v59 = vld [vmem:[#allocation11 + $0x1b8] sm:$0xff]  ;;  %v1476_v60 = vld [vmem:[#allocation11 + $0x190] sm:$0xff] }
 0x687   : > { %9333 = vmatpush3.xpose.msk.msra.mxu1 %vm503_vm1, %v1437_v61  ;;  %9340 = vmatprep.mubr.msk.f32.mxu1 %vm10449_vm0, %v10448_v0  ;;  %v1832_v58 = vcombine.high %v1822_v44, %v1822_v44  ;;  %v1785_v61 = vcombine.high %v10825_v55, %v10825_v55  ;;  %v1474_v55 = vld [vmem:[#allocation11 + $0x180] sm:$0xff] }
 0x688   : > { %9330 = vmatmul.mubr.msk.f32.vlgmr.msra.gmra.mxu0 %vm503_vm1, %v1773_v62  ;;  %9334 = vmatprep.subr.mxu1 %v10448_v0  ;;  %v1783_v10 = vcombine.high %v1773_v62, %v1773_v62  ;;  %v1780_v23 = vrot.slane %v1752_v19, %v10828_v56  ;;  %v1782_v31 = vcombine.high %v1766_v21, %v1766_v21  ;;  %v1480_v62 = vld [vmem:[#allocation11 + $0x1b0] sm:$0xff] }
 0x689   : > { %9344 = vmatpush3.xpose.msk.msra.mxu0 %vm503_vm1, %v1441_v63  ;;  %9351 = vmatprep.mubr.msk.f32.mxu0 %vm10449_vm0, %v10448_v0  ;;  %v1475_v63 = vld [vmem:[#allocation11 + $0x188] sm:$0xff] }
 0x68a   : > { %9345 = vmatprep.subr.mxu0 %v10448_v0  ;;  %v1784_v33 = vcombine.high %v1780_v23, %v1780_v23 }
 0x68b   : > { %9335 = vmatpush3.xpose.msk.msra.mxu1 %vm503_vm1, %v1436_v1  ;;  %v1799_v1 = vrot.slane %v1785_v61, %v10828_v56  ;;  %v1520_v61 = vld [vmem:[#allocation11 + $0x2f0] sm:$0xff] }
 0x68c   : > { %9336 = vmatprep.subr.mxu1 %v10448_v0 }
 0x68d   : > { %9346 = vmatpush3.xpose.msk.msra.mxu0 %vm503_vm1, %v1440_v2  ;;  %v1479_v2 = vld [vmem:[#allocation11 + $0x1a8] sm:$0xff] }
 0x68e   : > { %9347 = vmatprep.subr.mxu0 %v10448_v0 }
 0x68f   : > { %9337 = vmatpush3.xpose.msk.msra.mxu1 %vm503_vm1, %v1435_v3  ;;  %v1801_v3 = vcombine.high %v1799_v1, %v1799_v1 }
 0x690   : > { %9338 = vmatprep.subr.mxu1 %v10448_v0 }
 0x691   : > { %9348 = vmatpush3.xpose.msk.msra.mxu0 %vm503_vm1, %v1439_v4  ;;  %v1478_v4 = vld [vmem:[#allocation11 + $0x1a0] sm:$0xff] }
 0x692   : > { %9349 = vmatprep.subr.mxu0 %v10448_v0 }
 0x693   : > { %9339 = vmatpush3.xpose.msk.msra.mxu1 %vm503_vm1, %v1434_v5  ;;  %v1815_v5 = vrot.slane %v1799_v1, %v10828_v56  ;;  %v1514_v1 = vld [vmem:[#allocation11 + $0x2c0] sm:$0xff] }
 0x694   : > { %9354 = vmatprep.subr.mxu1 %v10448_v0 }
 0x695   : > { %9350 = vmatpush3.xpose.msk.msra.mxu0 %vm503_vm1, %v1438_v6  ;;  %v1485_v6 = vld [vmem:[#allocation11 + $0x1d8] sm:$0xff]  ;;  %v1831_v16 = vcombine.high %v1815_v5, %v1815_v5 }
 0x696   : > { %9341 = vmatmul.mubr.msk.f32.vlgmr.msra.gmra.mxu1 %vm503_vm1, %v1781_v7  ;;  %9365 = vmatprep.subr.mxu0 %v10448_v0  ;;  %v1829_v7 = vrot.slane %v1801_v3, %v10828_v56  ;;  %v1525_v3 = vld [vmem:[#allocation11 + $0x318] sm:$0xff] }
 0x697   : > { %9355 = vmatpush3.xpose.msk.msra.mxu1 %vm503_vm1, %v1445_v8  ;;  %9362 = vmatprep.mubr.msk.f32.mxu1 %vm10449_vm0, %v10448_v0  ;;  %v1489_v8 = vld [vmem:[#allocation11 + $0x1f8] sm:$0xff] }
 0x698   : > { %9352 = vmatmul.mubr.msk.f32.vlgmr.msra.gmra.mxu0 %vm503_vm1, %v1783_v10  ;;  %9356 = vmatprep.subr.mxu1 %v10448_v0  ;;  %v1484_v10 = vld [vmem:[#allocation11 + $0x1d0] sm:$0xff]  ;;  %v1833_v19 = vcombine.high %v1829_v7, %v1829_v7 }
 0x699   : > { %9366 = vmatpush3.xpose.msk.msra.mxu0 %vm503_vm1, %v1449_v11  ;;  %9373 = vmatprep.mubr.msk.f32.mxu0 %vm10449_vm0, %v10448_v0  ;;  %v1488_v11 = vld [vmem:[#allocation11 + $0x1f0] sm:$0xff] }
 0x69a   : > { %9367 = vmatprep.subr.mxu0 %v10448_v0 }
 0x69b   : > { %9357 = vmatpush3.xpose.msk.msra.mxu1 %vm503_vm1, %v1444_v12  ;;  %v1483_v12 = vld [vmem:[#allocation11 + $0x1c8] sm:$0xff] }
 0x69c   : > { %9358 = vmatprep.subr.mxu1 %v10448_v0 }
 0x69d   : > { %9368 = vmatpush3.xpose.msk.msra.mxu0 %vm503_vm1, %v1448_v14  ;;  %v1482_v14 = vld [vmem:[#allocation11 + $0x1c0] sm:$0xff] }
 0x69e   : > { %9369 = vmatprep.subr.mxu0 %v10448_v0 }
 0x69f   : > { %9359 = vmatpush3.xpose.msk.msra.mxu1 %vm503_vm1, %v1443_v15  ;;  %v1486_v15 = vld [vmem:[#allocation11 + $0x1e0] sm:$0xff] }
 0x6a0   : > { %9360 = vmatprep.subr.mxu1 %v10448_v0 }
 0x6a1   : > { %9370 = vmatpush3.xpose.msk.msra.mxu0 %vm503_vm1, %v1447_v17  ;;  %v1493_v17 = vld [vmem:[#allocation11 + $0x218] sm:$0xff] }
 0x6a2   : > { %9371 = vmatprep.subr.mxu0 %v10448_v0 }
 0x6a3   : > { %9361 = vmatpush3.xpose.msk.msra.mxu1 %vm503_vm1, %v1442_v18  ;;  %v10998_v18 = vpop.f32.mrf.mxu1 }
 0x6a4   : > { %9376 = vmatprep.subr.mxu1 %v10448_v0 }
 0x6a5   : > { %9372 = vmatpush3.xpose.msk.msra.mxu0 %vm503_vm1, %v1446_v20  ;;  %v1497_v20 = vld [vmem:[#allocation11 + $0x238] sm:$0xff] }
 0x6a6   : > { %9363 = vmatmul.mubr.msk.f32.vlgmr.msra.gmra.mxu1 %vm503_vm1, %v1766_v21  ;;  %9387 = vmatprep.subr.mxu0 %v10448_v0  ;;  %v1492_v21 = vld [vmem:[#allocation11 + $0x210] sm:$0xff] }
 0x6a7   : > { %9377 = vmatpush3.xpose.msk.msra.mxu1 %vm503_vm1, %v1453_v22  ;;  %9384 = vmatprep.mubr.msk.f32.mxu1 %vm10449_vm0, %v10448_v0  ;;  %v11008_v22 = vpop.f32.mrf.mxu1 }
 0x6a8   : > { %9374 = vmatmul.mubr.msk.f32.vlgmr.msra.gmra.mxu0 %vm503_vm1, %v1780_v23  ;;  %9378 = vmatprep.subr.mxu1 %v10448_v0  ;;  %v1496_v23 = vld [vmem:[#allocation11 + $0x230] sm:$0xff] }
 0x6a9   : > { %9388 = vmatpush3.xpose.msk.msra.mxu0 %vm503_vm1, %v1457_v24  ;;  %9395 = vmatprep.mubr.msk.f32.mxu0 %vm10449_vm0, %v10448_v0  ;;  %v1491_v24 = vld [vmem:[#allocation11 + $0x208] sm:$0xff] }
 0x6aa   : > { %9389 = vmatprep.subr.mxu0 %v10448_v0 }
 0x6ab   : > { %9379 = vmatpush3.xpose.msk.msra.mxu1 %vm503_vm1, %v1452_v25  ;;  %v1841_v25 = vrot.slane %v11008_v22, %v10828_v56 }
 0x6ac   : > { %9380 = vmatprep.subr.mxu1 %v10448_v0 }
 0x6ad   : > { %9390 = vmatpush3.xpose.msk.msra.mxu0 %vm503_vm1, %v1456_v26  ;;  %v1495_v26 = vld [vmem:[#allocation11 + $0x228] sm:$0xff] }
 0x6ae   : > { %9391 = vmatprep.subr.mxu0 %v10448_v0 }
 0x6af   : > { %9381 = vmatpush3.xpose.msk.msra.mxu1 %vm503_vm1, %v1451_v27  ;;  %v1849_v27 = vcombine.high %v1841_v25, %v1841_v25 }
 0x6b0   : > { %9382 = vmatprep.subr.mxu1 %v10448_v0 }
 0x6b1   : > { %9392 = vmatpush3.xpose.msk.msra.mxu0 %vm503_vm1, %v1455_v28  ;;  %v1490_v28 = vld [vmem:[#allocation11 + $0x200] sm:$0xff] }
 0x6b2   : > { %9393 = vmatprep.subr.mxu0 %v10448_v0 }
 0x6b3   : > { %9383 = vmatpush3.xpose.msk.msra.mxu1 %vm503_vm1, %v1450_v29  ;;  %v1857_v29 = vrot.slane %v1841_v25, %v10828_v56 }
 0x6b4   : > { %9398 = vmatprep.subr.mxu1 %v10448_v0 }
 0x6b5   : > { %9394 = vmatpush3.xpose.msk.msra.mxu0 %vm503_vm1, %v1454_v30  ;;  %v1494_v30 = vld [vmem:[#allocation11 + $0x220] sm:$0xff] }
 0x6b6   : > { %9385 = vmatmul.mubr.msk.f32.vlgmr.msra.gmra.mxu1 %vm503_vm1, %v1782_v31  ;;  %9409 = vmatprep.subr.mxu0 %v10448_v0  ;;  %v1871_v31 = vrot.slane %v1849_v27, %v10828_v56  ;;  %v1532_v27 = vld [vmem:[#allocation11 + $0x350] sm:$0xff] }
 0x6b7   : > { %9399 = vmatpush3.xpose.msk.msra.mxu1 %vm503_vm1, %v1461_v32  ;;  %9406 = vmatprep.mubr.msk.f32.mxu1 %vm10449_vm0, %v10448_v0  ;;  %v1501_v32 = vld [vmem:[#allocation11 + $0x258] sm:$0xff] }
 0x6b8   : > { %9396 = vmatmul.mubr.msk.f32.vlgmr.msra.gmra.mxu0 %vm503_vm1, %v1784_v33  ;;  %9400 = vmatprep.subr.mxu1 %v10448_v0  ;;  %v1505_v33 = vld [vmem:[#allocation11 + $0x278] sm:$0xff] }
 0x6b9   : > { %9410 = vmatpush3.xpose.msk.msra.mxu0 %vm503_vm1, %v1465_v34  ;;  %9417 = vmatprep.mubr.msk.f32.mxu0 %vm10449_vm0, %v10448_v0  ;;  %v1500_v34 = vld [vmem:[#allocation11 + $0x250] sm:$0xff] }
 0x6ba   : > { %9411 = vmatprep.subr.mxu0 %v10448_v0 }
 0x6bb   : > { %9401 = vmatpush3.xpose.msk.msra.mxu1 %vm503_vm1, %v1460_v9  ;;  %v1504_v9 = vld [vmem:[#allocation11 + $0x270] sm:$0xff] }
 0x6bc   : > { %9402 = vmatprep.subr.mxu1 %v10448_v0 }
 0x6bd   : > { %9412 = vmatpush3.xpose.msk.msra.mxu0 %vm503_vm1, %v1464_v35  ;;  %v1499_v35 = vld [vmem:[#allocation11 + $0x248] sm:$0xff] }
 0x6be   : > { %9413 = vmatprep.subr.mxu0 %v10448_v0 }
 0x6bf   : > { %9403 = vmatpush3.xpose.msk.msra.mxu1 %vm503_vm1, %v1459_v36  ;;  %v1503_v36 = vld [vmem:[#allocation11 + $0x268] sm:$0xff] }
 0x6c0   : > { %9404 = vmatprep.subr.mxu1 %v10448_v0 }
 0x6c1   : > { %9414 = vmatpush3.xpose.msk.msra.mxu0 %vm503_vm1, %v1463_v38  ;;  %v1502_v38 = vld [vmem:[#allocation11 + $0x260] sm:$0xff] }
 0x6c2   : > { %9415 = vmatprep.subr.mxu0 %v10448_v0 }
 0x6c3   : > { %9405 = vmatpush3.xpose.msk.msra.mxu1 %vm503_vm1, %v1458_v39  ;;  %v1879_v39 = vcombine.high %v1857_v29, %v1857_v29 }
 0x6c4   : > { %9420 = vmatprep.subr.mxu1 %v10448_v0 }
 0x6c5   : > { %9416 = vmatpush3.xpose.msk.msra.mxu0 %vm503_vm1, %v1462_v41  ;;  %v1881_v41 = vcombine.high %v1871_v31, %v1871_v31 }
 0x6c6   : > { %9407 = vmatmul.mubr.msk.f32.vlgmr.msra.gmra.mxu1 %vm503_vm1, %v1808_v42  ;;  %9431 = vmatprep.subr.mxu0 %v10448_v0  ;;  %v1513_v42 = vld [vmem:[#allocation11 + $0x2b8] sm:$0xff] }
 0x6c7   : > { %9421 = vmatpush3.xpose.msk.msra.mxu1 %vm503_vm1, %v1469_v43  ;;  %9428 = vmatprep.mubr.msk.f32.mxu1 %vm10449_vm0, %v10448_v0  ;;  %v1508_v43 = vld [vmem:[#allocation11 + $0x290] sm:$0xff] }
 0x6c8   : > { %9418 = vmatmul.mubr.msk.f32.vlgmr.msra.gmra.mxu0 %vm503_vm1, %v1822_v44  ;;  %9422 = vmatprep.subr.mxu1 %v10448_v0  ;;  %v1834_v44 = vcombine.high %v11008_v22, %v11008_v22 }
 0x6c9   : > { %9432 = vmatpush3.xpose.msk.msra.mxu0 %vm503_vm1, %v1473_v45  ;;  %9439 = vmatprep.mubr.msk.f32.mxu0 %vm10449_vm0, %v10448_v0  ;;  %v1512_v45 = vld [vmem:[#allocation11 + $0x2b0] sm:$0xff] }
 0x6ca   : > { %9433 = vmatprep.subr.mxu0 %v10448_v0 }
 0x6cb   : > { %9423 = vmatpush3.xpose.msk.msra.mxu1 %vm503_vm1, %v1468_v46  ;;  %v1507_v46 = vld [vmem:[#allocation11 + $0x288] sm:$0xff] }
 0x6cc   : > { %9424 = vmatprep.subr.mxu1 %v10448_v0 }
 0x6cd   : > { %9434 = vmatpush3.xpose.msk.msra.mxu0 %vm503_vm1, %v1472_v47  ;;  %v1848_v47 = vrot.slane %v1834_v44, %v10828_v56 }
 0x6ce   : > { %9435 = vmatprep.subr.mxu0 %v10448_v0 }
 0x6cf   : > { %9425 = vmatpush3.xpose.msk.msra.mxu1 %vm503_vm1, %v1467_v48  ;;  %v1511_v48 = vld [vmem:[#allocation11 + $0x2a8] sm:$0xff] }
 0x6d0   : > { %9426 = vmatprep.subr.mxu1 %v10448_v0 }
 0x6d1   : > { %9436 = vmatpush3.xpose.msk.msra.mxu0 %vm503_vm1, %v1471_v49  ;;  %v1506_v49 = vld [vmem:[#allocation11 + $0x280] sm:$0xff] }
 0x6d2   : > { %9437 = vmatprep.subr.mxu0 %v10448_v0 }
 0x6d3   : > { %9427 = vmatpush3.xpose.msk.msra.mxu1 %vm503_vm1, %v1466_v50  ;;  %v1850_v50 = vcombine.high %v1848_v47, %v1848_v47 }
 0x6d4   : > { %9442 = vmatprep.subr.mxu1 %v10448_v0 }
 0x6d5   : > { %9438 = vmatpush3.xpose.msk.msra.mxu0 %vm503_vm1, %v1470_v51  ;;  %v1510_v51 = vld [vmem:[#allocation11 + $0x2a0] sm:$0xff] }
 0x6d6   : > { %9429 = vmatmul.mubr.msk.f32.vlgmr.msra.gmra.mxu1 %vm503_vm1, %v1830_v53  ;;  %9453 = vmatprep.subr.mxu0 %v10448_v0  ;;  %v1864_v53 = vrot.slane %v1848_v47, %v10828_v56 }
 0x6d7   : > { %9443 = vmatpush3.xpose.msk.msra.mxu1 %vm503_vm1, %v1477_v57  ;;  %9450 = vmatprep.mubr.msk.f32.mxu1 %vm10449_vm0, %v10448_v0  ;;  %v1517_v57 = vld [vmem:[#allocation11 + $0x2d8] sm:$0xff] }
 0x6d8   : > { %9440 = vmatmul.mubr.msk.f32.vlgmr.msra.gmra.mxu0 %vm503_vm1, %v1832_v58  ;;  %9444 = vmatprep.subr.mxu1 %v10448_v0  ;;  %v1878_v58 = vrot.slane %v1850_v50, %v10828_v56 }
 0x6d9   : > { %9454 = vmatpush3.xpose.msk.msra.mxu0 %vm503_vm1, %v1481_v59  ;;  %9461 = vmatprep.mubr.msk.f32.mxu0 %vm10449_vm0, %v10448_v0  ;;  %v1521_v59 = vld [vmem:[#allocation11 + $0x2f8] sm:$0xff] }
 0x6da   : > { %9455 = vmatprep.subr.mxu0 %v10448_v0 }
 0x6db   : > { %9445 = vmatpush3.xpose.msk.msra.mxu1 %vm503_vm1, %v1476_v60  ;;  %v1516_v60 = vld [vmem:[#allocation11 + $0x2d0] sm:$0xff] }
 0x6dc   : > { %9446 = vmatprep.subr.mxu1 %v10448_v0 }
 0x6dd   : > { %9456 = vmatpush3.xpose.msk.msra.mxu0 %vm503_vm1, %v1480_v62  ;;  %v1515_v62 = vld [vmem:[#allocation11 + $0x2c8] sm:$0xff] }
 0x6de   : > { %9457 = vmatprep.subr.mxu0 %v10448_v0 }
 0x6df   : > { %9447 = vmatpush3.xpose.msk.msra.mxu1 %vm503_vm1, %v1475_v63  ;;  %v1519_v63 = vld [vmem:[#allocation11 + $0x2e8] sm:$0xff] }
 0x6e0   : > { %9448 = vmatprep.subr.mxu1 %v10448_v0 }
 0x6e1   : > { %9458 = vmatpush3.xpose.msk.msra.mxu0 %vm503_vm1, %v1479_v2  ;;  %v1518_v2 = vld [vmem:[#allocation11 + $0x2e0] sm:$0xff] }
 0x6e2   : > { %9459 = vmatprep.subr.mxu0 %v10448_v0 }
 0x6e3   : > { %9449 = vmatpush3.xpose.msk.msra.mxu1 %vm503_vm1, %v1474_v55  ;;  %v1880_v55 = vcombine.high %v1864_v53, %v1864_v53 }
 0x6e4   : > { %9464 = vmatprep.subr.mxu1 %v10448_v0 }
 0x6e5   : > { %9460 = vmatpush3.xpose.msk.msra.mxu0 %vm503_vm1, %v1478_v4  ;;  %v1882_v4 = vcombine.high %v1878_v58, %v1878_v58 }
 0x6e6   : > { %9451 = vmatmul.mubr.msk.f32.vlgmr.msra.gmra.mxu1 %vm503_vm1, %v1815_v5  ;;  %9475 = vmatprep.subr.mxu0 %v10448_v0  ;;  %v1529_v5 = vld [vmem:[#allocation11 + $0x338] sm:$0xff] }
 0x6e7   : > { %9465 = vmatpush3.xpose.msk.msra.mxu1 %vm503_vm1, %v1485_v6  ;;  %9472 = vmatprep.mubr.msk.f32.mxu1 %vm10449_vm0, %v10448_v0  ;;  %v1524_v6 = vld [vmem:[#allocation11 + $0x310] sm:$0xff] }
 0x6e8   : > { %9462 = vmatmul.mubr.msk.f32.vlgmr.msra.gmra.mxu0 %vm503_vm1, %v1829_v7  ;;  %9466 = vmatprep.subr.mxu1 %v10448_v0  ;;  %v1528_v7 = vld [vmem:[#allocation11 + $0x330] sm:$0xff] }
 0x6e9   : > { %9476 = vmatpush3.xpose.msk.msra.mxu0 %vm503_vm1, %v1489_v8  ;;  %9483 = vmatprep.mubr.msk.f32.mxu0 %vm10449_vm0, %v10448_v0  ;;  %v11111_v8 = vpop.f32.mrf.mxu0 }
 0x6ea   : > { %9477 = vmatprep.subr.mxu0 %v10448_v0 }
 0x6eb   : > { %9467 = vmatpush3.xpose.msk.msra.mxu1 %vm503_vm1, %v1484_v10  ;;  %v1523_v10 = vld [vmem:[#allocation11 + $0x308] sm:$0xff] }
 0x6ec   : > { %9468 = vmatprep.subr.mxu1 %v10448_v0 }
 0x6ed   : > { %9478 = vmatpush3.xpose.msk.msra.mxu0 %vm503_vm1, %v1488_v11  ;;  %v1889_v11 = vrot.slane %v10998_v18, %v10828_v56 }
 0x6ee   : > { %9479 = vmatprep.subr.mxu0 %v10448_v0 }
 0x6ef   : > { %9469 = vmatpush3.xpose.msk.msra.mxu1 %vm503_vm1, %v1483_v12  ;;  %v1527_v12 = vld [vmem:[#allocation11 + $0x328] sm:$0xff]  ;;  %v1897_v18 = vrot.slane %v1889_v11, %v10828_v56 }
 0x6f0   : > { %9470 = vmatprep.subr.mxu1 %v10448_v0 }
 0x6f1   : > { %9480 = vmatpush3.xpose.msk.msra.mxu0 %vm503_vm1, %v1487_v13  ;;  %v11119_v13 = vpop.f32.mrf.mxu0 }
 0x6f2   : > { %9481 = vmatprep.subr.mxu0 %v10448_v0 }
 0x6f3   : > { %9471 = vmatpush3.xpose.msk.msra.mxu1 %vm503_vm1, %v1482_v14  ;;  %v1522_v14 = vld [vmem:[#allocation11 + $0x300] sm:$0xff] }
 0x6f4   : > { %9486 = vmatprep.subr.mxu1 %v10448_v0 }
 0x6f5   : > { %9482 = vmatpush3.xpose.msk.msra.mxu0 %vm503_vm1, %v1486_v15  ;;  %v1890_v15 = vcombine.high %v1889_v11, %v1889_v11 }
 0x6f6   : > { %9473 = vmatmul.mubr.msk.f32.vlgmr.msra.gmra.mxu1 %vm503_vm1, %v1831_v16  ;;  %9497 = vmatprep.subr.mxu0 %v10448_v0  ;;  %v11123_v16 = vpop.f32.mrf.mxu0 }
 0x6f7   : > { %9487 = vmatpush3.xpose.msk.msra.mxu1 %vm503_vm1, %v1493_v17  ;;  %9494 = vmatprep.mubr.msk.f32.mxu1 %vm10449_vm0, %v10448_v0  ;;  %v1526_v17 = vld [vmem:[#allocation11 + $0x320] sm:$0xff] }
 0x6f8   : > { %9484 = vmatmul.mubr.msk.f32.vlgmr.msra.gmra.mxu0 %vm503_vm1, %v1833_v19  ;;  %9488 = vmatprep.subr.mxu1 %v10448_v0  ;;  %v1533_v19 = vld [vmem:[#allocation11 + $0x358] sm:$0xff] }
 0x6f9   : > { %9498 = vmatpush3.xpose.msk.msra.mxu0 %vm503_vm1, %v1497_v20  ;;  %9505 = vmatprep.mubr.msk.f32.mxu0 %vm10449_vm0, %v10448_v0  ;;  %v1904_v20 = vrot.slane %v1890_v15, %v10828_v56 }
 0x6fa   : > { %9499 = vmatprep.subr.mxu0 %v10448_v0 }
 0x6fb   : > { %9489 = vmatpush3.xpose.msk.msra.mxu1 %vm503_vm1, %v1492_v21  ;;  %v11131_v21 = vpop.f32.mrf.mxu0 }
 0x6fc   : > { %9490 = vmatprep.subr.mxu1 %v10448_v0 }
 0x6fd   : > { %9500 = vmatpush3.xpose.msk.msra.mxu0 %vm503_vm1, %v1496_v23  ;;  %v1537_v23 = vld [vmem:[#allocation11 + $0x378] sm:$0xff] }
 0x6fe   : > { %9501 = vmatprep.subr.mxu0 %v10448_v0 }
 0x6ff   : > { %9491 = vmatpush3.xpose.msk.msra.mxu1 %vm503_vm1, %v1491_v24  ;;  %v4263_v24 = vrot.slane %v11119_v13, 1 }
 0x700   : > { %9492 = vmatprep.subr.mxu1 %v10448_v0 }
 0x701   : > { %9502 = vmatpush3.xpose.msk.msra.mxu0 %vm503_vm1, %v1495_v26 }
 0x702   : > { %9503 = vmatprep.subr.mxu0 %v10448_v0 }
 0x703   : > { %9493 = vmatpush3.xpose.msk.msra.mxu1 %vm503_vm1, %v1490_v28 }
 0x704   : > { %9508 = vmatprep.subr.mxu1 %v10448_v0 }
 0x705   : > { %9504 = vmatpush3.xpose.msk.msra.mxu0 %vm503_vm1, %v1494_v30  ;;  %v1536_v30 = vld [vmem:[#allocation11 + $0x370] sm:$0xff] }
 0x706   : > { %9495 = vmatmul.mubr.msk.f32.vlgmr.msra.gmra.mxu1 %vm503_vm1, %v1857_v29  ;;  %9519 = vmatprep.subr.mxu0 %v10448_v0 }
 0x707   : > { %9509 = vmatpush3.xpose.msk.msra.mxu1 %vm503_vm1, %v1501_v32  ;;  %9516 = vmatprep.mubr.msk.f32.mxu1 %vm10449_vm0, %v10448_v0 }
 0x708   : > { %9506 = vmatmul.mubr.msk.f32.vlgmr.msra.gmra.mxu0 %vm503_vm1, %v1871_v31  ;;  %9510 = vmatprep.subr.mxu1 %v10448_v0 }
 0x709   : > { %9520 = vmatpush3.xpose.msk.msra.mxu0 %vm503_vm1, %v1505_v33  ;;  %9527 = vmatprep.mubr.msk.f32.mxu0 %vm10449_vm0, %v10448_v0  ;;  %v1531_v33 = vld [vmem:[#allocation11 + $0x348] sm:$0xff] }
 0x70a   : > { %9521 = vmatprep.subr.mxu0 %v10448_v0 }
 0x70b   : > { %9511 = vmatpush3.xpose.msk.msra.mxu1 %vm503_vm1, %v1500_v34 }
 0x70c   : > { %9512 = vmatprep.subr.mxu1 %v10448_v0 }
 0x70d   : > { %9522 = vmatpush3.xpose.msk.msra.mxu0 %vm503_vm1, %v1504_v9  ;;  %v1535_v9 = vld [vmem:[#allocation11 + $0x368] sm:$0xff] }
 0x70e   : > { %9523 = vmatprep.subr.mxu0 %v10448_v0 }
 0x70f   : > { %9513 = vmatpush3.xpose.msk.msra.mxu1 %vm503_vm1, %v1499_v35  ;;  %v1530_v35 = vld [vmem:[#allocation11 + $0x340] sm:$0xff] }
 0x710   : > { %9514 = vmatprep.subr.mxu1 %v10448_v0 }
 0x711   : > { %9524 = vmatpush3.xpose.msk.msra.mxu0 %vm503_vm1, %v1503_v36  ;;  %v1534_v36 = vld [vmem:[#allocation11 + $0x360] sm:$0xff] }
 0x712   : > { %9525 = vmatprep.subr.mxu0 %v10448_v0 }
 0x713   : > { %9515 = vmatpush3.xpose.msk.msra.mxu1 %vm503_vm1, %v1498_v37  ;;  %v1905_v37 = vcombine.high %v1897_v18, %v1897_v18 }
 0x714   : > { %9530 = vmatprep.subr.mxu1 %v10448_v0 }
 0x715   : > { %9526 = vmatpush3.xpose.msk.msra.mxu0 %vm503_vm1, %v1502_v38  ;;  %v4264_v38 = vrot.slane %v11119_v13, 2 }
 0x716   : > { %9517 = vmatmul.mubr.msk.f32.vlgmr.msra.gmra.mxu1 %vm503_vm1, %v1879_v39  ;;  %9541 = vmatprep.subr.mxu0 %v10448_v0  ;;  %v1906_v39 = vcombine.high %v1904_v20, %v1904_v20 }
 0x717   : > { %9531 = vmatpush3.xpose.msk.msra.mxu1 %vm503_vm1, %v1509_v40  ;;  %9538 = vmatprep.mubr.msk.f32.mxu1 %vm10449_vm0, %v10448_v0 }
 0x718   : > { %9528 = vmatmul.mubr.msk.f32.vlgmr.msra.gmra.mxu0 %vm503_vm1, %v1881_v41  ;;  %9532 = vmatprep.subr.mxu1 %v10448_v0 }
 0x719   : > { %9542 = vmatpush3.xpose.msk.msra.mxu0 %vm503_vm1, %v1513_v42  ;;  %9549 = vmatprep.mubr.msk.f32.mxu0 %vm10449_vm0, %v10448_v0  ;;  %v4265_v42 = vrot.slane %v11119_v13, 3 }
 0x71a   : > { %9543 = vmatprep.subr.mxu0 %v10448_v0 }
 0x71b   : > { %9533 = vmatpush3.xpose.msk.msra.mxu1 %vm503_vm1, %v1508_v43 }
 0x71c   : > { %9534 = vmatprep.subr.mxu1 %v10448_v0 }
 0x71d   : > { %9544 = vmatpush3.xpose.msk.msra.mxu0 %vm503_vm1, %v1512_v45 }
 0x71e   : > { %9545 = vmatprep.subr.mxu0 %v10448_v0 }
 0x71f   : > { %9535 = vmatpush3.xpose.msk.msra.mxu1 %vm503_vm1, %v1507_v46 }
 0x720   : > { %9536 = vmatprep.subr.mxu1 %v10448_v0 }
 0x721   : > { %9546 = vmatpush3.xpose.msk.msra.mxu0 %vm503_vm1, %v1511_v48 }
 0x722   : > { %9547 = vmatprep.subr.mxu0 %v10448_v0 }
 0x723   : > { %9537 = vmatpush3.xpose.msk.msra.mxu1 %vm503_vm1, %v1506_v49 }
 0x724   : > { %9552 = vmatprep.subr.mxu1 %v10448_v0 }
 0x725   : > { %9548 = vmatpush3.xpose.msk.msra.mxu0 %vm503_vm1, %v1510_v51  ;;  %v4266_v51 = vrot.slane %v11119_v13, 4 }
 0x726   : > { %9539 = vmatmul.mubr.msk.f32.vlgmr.msra.gmra.mxu1 %vm503_vm1, %v1864_v53  ;;  %9563 = vmatprep.subr.mxu0 %v10448_v0 }
 0x727   : > { %9553 = vmatpush3.xpose.msk.msra.mxu1 %vm503_vm1, %v1517_v57  ;;  %9560 = vmatprep.mubr.msk.f32.mxu1 %vm10449_vm0, %v10448_v0 }
 0x728   : > { %9550 = vmatmul.mubr.msk.f32.vlgmr.msra.gmra.mxu0 %vm503_vm1, %v1878_v58  ;;  %9554 = vmatprep.subr.mxu1 %v10448_v0  ;;  %v4267_v58 = vrot.slane %v11119_v13, 5 }
 0x729   : > { %9564 = vmatpush3.xpose.msk.msra.mxu0 %vm503_vm1, %v1521_v59  ;;  %9571 = vmatprep.mubr.msk.f32.mxu0 %vm10449_vm0, %v10448_v0 }
 0x72a   : > { %9565 = vmatprep.subr.mxu0 %v10448_v0 }
 0x72b   : > { %9555 = vmatpush3.xpose.msk.msra.mxu1 %vm503_vm1, %v1516_v60 }
 0x72c   : > { %9556 = vmatprep.subr.mxu1 %v10448_v0 }
 0x72d   : > { %9566 = vmatpush3.xpose.msk.msra.mxu0 %vm503_vm1, %v1520_v61 }
 0x72e   : > { %9567 = vmatprep.subr.mxu0 %v10448_v0 }
 0x72f   : > { %9557 = vmatpush3.xpose.msk.msra.mxu1 %vm503_vm1, %v1515_v62 }
 0x730   : > { %9558 = vmatprep.subr.mxu1 %v10448_v0 }
 0x731   : > { %9568 = vmatpush3.xpose.msk.msra.mxu0 %vm503_vm1, %v1519_v63 }
 0x732   : > { %9569 = vmatprep.subr.mxu0 %v10448_v0 }
 0x733   : > { %9559 = vmatpush3.xpose.msk.msra.mxu1 %vm503_vm1, %v1514_v1 }
 0x734   : > { %9574 = vmatprep.subr.mxu1 %v10448_v0 }
 0x735   : > { %9570 = vmatpush3.xpose.msk.msra.mxu0 %vm503_vm1, %v1518_v2 }
 0x736   : > { %9561 = vmatmul.mubr.msk.f32.vlgmr.msra.gmra.mxu1 %vm503_vm1, %v1880_v55  ;;  %9585 = vmatprep.subr.mxu0 %v10448_v0 }
 0x737   : > { %9575 = vmatpush3.xpose.msk.msra.mxu1 %vm503_vm1, %v1525_v3  ;;  %9582 = vmatprep.mubr.msk.f32.mxu1 %vm10449_vm0, %v10448_v0  ;;  %v4268_v3 = vrot.slane %v11119_v13, 6 }
 0x738   : > { %9572 = vmatmul.mubr.msk.f32.vlgmr.msra.gmra.mxu0 %vm503_vm1, %v1882_v4  ;;  %9576 = vmatprep.subr.mxu1 %v10448_v0 }
 0x739   : > { %9586 = vmatpush3.xpose.msk.msra.mxu0 %vm503_vm1, %v1529_v5  ;;  %9593 = vmatprep.mubr.msk.f32.mxu0 %vm10449_vm0, %v10448_v0 }
 0x73a   : > { %9587 = vmatprep.subr.mxu0 %v10448_v0 }
 0x73b   : > { %9577 = vmatpush3.xpose.msk.msra.mxu1 %vm503_vm1, %v1524_v6  ;;  %v4269_v6 = vrot.slane %v11119_v13, 7 }
 0x73c   : > { %9578 = vmatprep.subr.mxu1 %v10448_v0 }
 0x73d   : > { %9588 = vmatpush3.xpose.msk.msra.mxu0 %vm503_vm1, %v1528_v7 }
 0x73e   : > { %9589 = vmatprep.subr.mxu0 %v10448_v0 }
 0x73f   : > { %9579 = vmatpush3.xpose.msk.msra.mxu1 %vm503_vm1, %v1523_v10 }
 0x740   : > { %9580 = vmatprep.subr.mxu1 %v10448_v0 }
 0x741   : > { %9590 = vmatpush3.xpose.msk.msra.mxu0 %vm503_vm1, %v1527_v12 }
 0x742   : > { %9591 = vmatprep.subr.mxu0 %v10448_v0 }
 0x743   : > { %9581 = vmatpush3.xpose.msk.msra.mxu1 %vm503_vm1, %v1522_v14 }
 0x744   : > { %9596 = vmatprep.subr.mxu1 %v10448_v0 }
 0x745   : > { %9592 = vmatpush3.xpose.msk.msra.mxu0 %vm503_vm1, %v1526_v17 }
 0x746   : > { %9583 = vmatmul.mubr.msk.f32.vlgmr.msra.gmra.mxu1 %vm503_vm1, %v1897_v18  ;;  %v1987_v22 = vpop.f32.mrf.mxu1  ;;  %9607 = vmatprep.subr.mxu0 %v10448_v0 }
 0x747   : > { %9597 = vmatpush3.xpose.msk.msra.mxu1 %vm503_vm1, %v1533_v19  ;;  %9604 = vmatprep.mubr.msk.f32.mxu1 %vm10449_vm0, %v10448_v0  ;;  %v4315_v31 = vmul.f32 %v1987_v22, %v11119_v13 }
 0x748   : > { %9594 = vmatmul.mubr.msk.f32.vlgmr.msra.gmra.mxu0 %vm503_vm1, %v1904_v20  ;;  %v9320_v25 = vpop.f32.mrf.mxu1  ;;  %v2071_v26 = vpop.f32.mrf.mxu0  ;;  %9598 = vmatprep.subr.mxu1 %v10448_v0  ;;  %v4270_v20 = vrot.slane %v11111_v8, 1 }
 0x749   : > { %v4316_v28 = vmul.f32 %v4263_v24, %v2071_v26  ;;  %9608 = vmatpush3.xpose.msk.msra.mxu0 %vm503_vm1, %v1537_v23  ;;  %9615 = vmatprep.mubr.msk.f32.mxu0 %vm10449_vm0, %v10448_v0 }
 0x74a   : > { %v9331_v29 = vpop.f32.mrf.mxu0  ;;  %9609 = vmatprep.subr.mxu0 %v10448_v0 }
 0x74b   : > { %v4371_v32 = vrot.slane %v4316_v28, 7  ;;  %9599 = vmatpush3.xpose.msk.msra.mxu1 %vm503_vm1, %v1532_v27 }
 0x74c   : > { %9600 = vmatprep.subr.mxu1 %v10448_v0 }
 0x74d   : > { %v4373_v34 = vsel %vm4372_vm5, %v4371_v32, %v4315_v31  ;;  %9610 = vmatpush3.xpose.msk.msra.mxu0 %vm503_vm1, %v1536_v30  ;;  %v4271_v30 = vrot.slane %v11111_v8, 2 }
 0x74e   : > { %9611 = vmatprep.subr.mxu0 %v10448_v0 }
 0x74f   : > { %9601 = vmatpush3.xpose.msk.msra.mxu1 %vm503_vm1, %v1531_v33  ;;  %v4272_v33 = vrot.slane %v11111_v8, 3 }
 0x750   : > { %9602 = vmatprep.subr.mxu1 %v10448_v0 }
 0x751   : > { %9612 = vmatpush3.xpose.msk.msra.mxu0 %vm503_vm1, %v1535_v9 }
 0x752   : > { %9613 = vmatprep.subr.mxu0 %v10448_v0 }
 0x753   : > { %9603 = vmatpush3.xpose.msk.msra.mxu1 %vm503_vm1, %v1530_v35 }
 0x754   : > { %9618 = vmatprep.subr.mxu1 %v10448_v0 }
 0x755   : > { %9614 = vmatpush3.xpose.msk.msra.mxu0 %vm503_vm1, %v1534_v36 }
 0x756   : > { %v2155_v40 = vpop.f32.mrf.mxu1  ;;  %9605 = vmatmul.mubr.msk.f32.vlgmr.msra.gmra.mxu1 %vm503_vm1, %v1905_v37  ;;  %9629 = vmatprep.subr.mxu0 %v10448_v0 }
 0x757   : > { %v4317_v41 = vmul.f32 %v4264_v38, %v2155_v40  ;;  %9626 = vmatprep.mubr.msk.f32.mxu1 %vm10449_vm0, %v10448_v0 }
 0x758   : > { %v9342_v43 = vpop.f32.mrf.mxu1  ;;  %v2239_v44 = vpop.f32.mrf.mxu0  ;;  %9616 = vmatmul.mubr.msk.f32.vlgmr.msra.gmra.mxu0 %vm503_vm1, %v1906_v39 }
 0x759   : > { %v4374_v45 = vrot.slane %v4317_v41, 6  ;;  %v4318_v46 = vmul.f32 %v4265_v42, %v2239_v44  ;;  %9637 = vmatprep.mubr.msk.f32.mxu0 %vm10449_vm0, %v10448_v0  ;;  %v4273_v43 = vrot.slane %v11111_v8, 4  ;;  %v8692_v44 = vld [vmem:[%s11874_s1 + $0x38] sm:$0xff] }
 0x75a   : > { %v9353_v47 = vpop.f32.mrf.mxu0  ;;  %9630 = vmatpush3.msra.mxu0 %v8692_v44 }
 0x75b   : > { %v4376_v48 = vsel %vm4375_vm6, %v4374_v45, %v4373_v34  ;;  %v4377_v49 = vrot.slane %v4318_v46, 5  ;;  %v4274_v47 = vrot.slane %v11111_v8, 5  ;;  %9631 = vmatprep.subr.mxu0 %v10448_v0 }
 0x75d   : > { %v4379_v50 = vsel %vm4378_vm7, %v4377_v49, %v4376_v48  ;;  %v8691_v48 = vld [vmem:[%s11874_s1 + $0x30] sm:$0xff] }
 0x75e   : > { %9632 = vmatpush3.msra.mxu0 %v8691_v48 }
 0x75f   : > { %9633 = vmatprep.subr.mxu0 %v10448_v0 }
 0x766   : > { %v2323_v53 = vpop.f32.mrf.mxu1 }
 0x767   : > { %v4319_v57 = vmul.f32 %v4266_v51, %v2323_v53 }
 0x768   : > { %v9364_v59 = vpop.f32.mrf.mxu1  ;;  %v2407_v60 = vpop.f32.mrf.mxu0 }
 0x769   : > { %v4380_v61 = vrot.slane %v4319_v57, 4  ;;  %v4320_v62 = vmul.f32 %v4267_v58, %v2407_v60  ;;  %v8690_v59 = vld [vmem:[%s11874_s1 + $0x28] sm:$0xff] }
 0x76a   : > { %v9375_v63 = vpop.f32.mrf.mxu0  ;;  %9634 = vmatpush3.msra.mxu0 %v8690_v59 }
 0x76b   : > { %v4382_v1 = vsel %vm4381_vm8, %v4380_v61, %v4379_v50  ;;  %v4383_v2 = vrot.slane %v4320_v62, 3  ;;  %9635 = vmatprep.subr.mxu0 %v10448_v0 }
 0x76d   : > { %v4385_v55 = vsel %vm4384_vm9, %v4383_v2, %v4382_v1  ;;  %v4275_v1 = vrot.slane %v11111_v8, 6 }
 0x776   : > { %v2491_v4 = vpop.f32.mrf.mxu1 }
 0x777   : > { %v4321_v5 = vmul.f32 %v4268_v3, %v2491_v4  ;;  %v4276_v4 = vrot.slane %v11111_v8, 7 }
 0x778   : > { %v9386_v7 = vpop.f32.mrf.mxu1  ;;  %v2575_v10 = vpop.f32.mrf.mxu0 }
 0x779   : > { %v4386_v11 = vrot.slane %v4321_v5, 2  ;;  %v4322_v12 = vmul.f32 %v4269_v6, %v2575_v10 }
 0x77a   : > { %v9397_v14 = vpop.f32.mrf.mxu0 }
 0x77b   : > { %v4388_v15 = vsel %vm4387_vm10, %v4386_v11, %v4385_v55  ;;  %v4389_v17 = vrot.slane %v4322_v12, 1 }
 0x77d   : > { %v11191_v18 = vsel %vm4390_vm11, %v4389_v17, %v4388_v15 }
 0x786   : > { %v2659_v19 = vpop.f32.mrf.mxu1 }
 0x787   : > { %v4323_v27 = vmul.f32 %v11111_v8, %v2659_v19 }
 0x788   : > { %v9408_v22 = vpop.f32.mrf.mxu1  ;;  %v2743_v23 = vpop.f32.mrf.mxu0 }
 0x789   : > { %v4324_v25 = vmul.f32 %v4270_v20, %v2743_v23  ;;  %v4277_v22 = vrot.slane %v11131_v21, 1 }
 0x78a   : > { %v9419_v26 = vpop.f32.mrf.mxu0 }
 0x78b   : > { %v4392_v28 = vrot.slane %v4324_v25, 7 }
 0x78d   : > { %v4393_v29 = vsel %vm4372_vm5, %v4392_v28, %v4323_v27 }
 0x796   : > { %v2827_v31 = vpop.f32.mrf.mxu1 }
 0x797   : > { %v4325_v32 = vmul.f32 %v4271_v30, %v2827_v31 }
 0x798   : > { %v9430_v34 = vpop.f32.mrf.mxu1  ;;  %v2911_v9 = vpop.f32.mrf.mxu0 }
 0x799   : > { %v4394_v35 = vrot.slane %v4325_v32, 6  ;;  %v4326_v36 = vmul.f32 %v4272_v33, %v2911_v9 }
 0x79a   : > { %v9441_v37 = vpop.f32.mrf.mxu0 }
 0x79b   : > { %v4395_v39 = vsel %vm4375_vm6, %v4394_v35, %v4393_v29  ;;  %v4396_v40 = vrot.slane %v4326_v36, 5 }
 0x79d   : > { %v4397_v41 = vsel %vm4378_vm7, %v4396_v40, %v4395_v39 }
 0x7a6   : > { %v2995_v45 = vpop.f32.mrf.mxu1 }
 0x7a7   : > { %v4327_v46 = vmul.f32 %v4273_v43, %v2995_v45 }
 0x7a8   : > { %v9452_v49 = vpop.f32.mrf.mxu1  ;;  %v3079_v50 = vpop.f32.mrf.mxu0 }
 0x7a9   : > { %v4398_v53 = vrot.slane %v4327_v46, 4  ;;  %v4328_v57 = vmul.f32 %v4274_v47, %v3079_v50 }
 0x7aa   : > { %v9463_v60 = vpop.f32.mrf.mxu0 }
 0x7ab   : > { %v4399_v61 = vsel %vm4381_vm8, %v4398_v53, %v4397_v41  ;;  %v4400_v62 = vrot.slane %v4328_v57, 3  ;;  %v4278_v53 = vrot.slane %v11131_v21, 2  ;;  %v4279_v60 = vrot.slane %v11131_v21, 3 }
 0x7ad   : > { %v4401_v63 = vsel %vm4384_vm9, %v4400_v62, %v4399_v61  ;;  %v4280_v61 = vrot.slane %v11131_v21, 4 }
 0x7b6   : > { %v3163_v2 = vpop.f32.mrf.mxu1 }
 0x7b7   : > { %v4329_v55 = vmul.f32 %v4275_v1, %v3163_v2 }
 0x7b8   : > { %v9474_v5 = vpop.f32.mrf.mxu1  ;;  %v3247_v7 = vpop.f32.mrf.mxu0 }
 0x7b9   : > { %v4402_v10 = vrot.slane %v4329_v55, 2  ;;  %v4330_v11 = vmul.f32 %v4276_v4, %v3247_v7  ;;  %v4284_v55 = vrot.slane %v11123_v16, 1  ;;  %v4281_v5 = vrot.slane %v11131_v21, 5 }
 0x7ba   : > { %v9485_v12 = vpop.f32.mrf.mxu0  ;;  %v4282_v7 = vrot.slane %v11131_v21, 6 }
 0x7bb   : > { %v4403_v14 = vsel %vm4387_vm10, %v4402_v10, %v4401_v63  ;;  %v4404_v15 = vrot.slane %v4330_v11, 1 }
 0x7bd   : > { %v11234_v17 = vsel %vm4390_vm11, %v4404_v15, %v4403_v14 }
 0x7c6   : > { %v3331_v19 = vpop.f32.mrf.mxu1 }
 0x7c7   : > { %v4331_v28 = vmul.f32 %v3331_v19, %v11131_v21 }
 0x7c8   : > { %v9496_v23 = vpop.f32.mrf.mxu1  ;;  %v3415_v25 = vpop.f32.mrf.mxu0 }
 0x7c9   : > { %v4332_v26 = vmul.f32 %v4277_v22, %v3415_v25  ;;  %v4283_v23 = vrot.slane %v11131_v21, 7  ;;  %v4285_v25 = vrot.slane %v11123_v16, 2 }
 0x7ca   : > { %v9507_v27 = vpop.f32.mrf.mxu0 }
 0x7cb   : > { %v4406_v29 = vrot.slane %v4332_v26, 7 }
 0x7cd   : > { %v4407_v31 = vsel %vm4372_vm5, %v4406_v29, %v4331_v28  ;;  %v4286_v28 = vrot.slane %v11123_v16, 3 }
 0x7d6   : > { %v3499_v32 = vpop.f32.mrf.mxu1 }
 0x7d7   : > { %v4333_v59 = vmul.f32 %v4278_v53, %v3499_v32 }
 0x7d8   : > { %v9518_v34 = vpop.f32.mrf.mxu1  ;;  %v3583_v9 = vpop.f32.mrf.mxu0 }
 0x7d9   : > { %v4334_v62 = vmul.f32 %v4279_v60, %v3583_v9  ;;  %v4408_v63 = vrot.slane %v4333_v59, 6 }
 0x7da   : > { %v9529_v35 = vpop.f32.mrf.mxu0 }
 0x7db   : > { %v4410_v11 = vrot.slane %v4334_v62, 5  ;;  %v4409_v14 = vsel %vm4375_vm6, %v4408_v63, %v4407_v31  ;;  %v491_v63 = vld [vmem:[#allocation13] sm:$0xff] }
 0x7dd   : > { %v4411_v29 = vsel %vm4378_vm7, %v4410_v11, %v4409_v14  ;;  %v4594_v11 = vld [vmem:[#allocation5 + $0x28] sm:$0xff]  ;;  %v4593_v14 = vld [vmem:[#allocation5 + $0x20] sm:$0xff] }
 0x7e6   : > { %v3667_v36 = vpop.f32.mrf.mxu1 }
 0x7e7   : > { %v4335_v2 = vmul.f32 %v4280_v61, %v3667_v36 }
 0x7e8   : > { %v9540_v37 = vpop.f32.mrf.mxu1  ;;  %v3751_v39 = vpop.f32.mrf.mxu0 }
 0x7e9   : > { %v4336_v12 = vmul.f32 %v4281_v5, %v3751_v39  ;;  %v4412_v15 = vrot.slane %v4335_v2, 4  ;;  %v4596_v2 = vld [vmem:[#allocation5 + $0x38] sm:$0xff] }
 0x7ea   : > { %v9551_v40 = vpop.f32.mrf.mxu0 }
 0x7eb   : > { %v4414_v32 = vrot.slane %v4336_v12, 3  ;;  %v4413_v9 = vsel %vm4381_vm8, %v4412_v15, %v4411_v29  ;;  %v8689_v12 = vld [vmem:[%s11874_s1 + $0x20] sm:$0xff] }
 0x7ec   : > { %9636 = vmatpush3.msra.mxu0 %v8689_v12 }
 0x7ed   : > { %9651 = vmatprep.subr.mxu0 %v10448_v0 }
 0x7f6   : > { %v3835_v41 = vpop.f32.mrf.mxu1 }
 0x7f7   : > { %v4337_v19 = vmul.f32 %v4282_v7, %v3835_v41 }
 0x7f8   : > { %v9562_v44 = vpop.f32.mrf.mxu1  ;;  %v3919_v45 = vpop.f32.mrf.mxu0 }
 0x7f9   : > { %v4338_v34 = vmul.f32 %v4283_v23, %v3919_v45  ;;  %v4416_v35 = vrot.slane %v4337_v19, 2  ;;  %v4415_v45 = vsel %vm4384_vm9, %v4414_v32, %v4413_v9 }
 0x7fa   : > { %v9573_v46 = vpop.f32.mrf.mxu0 }
 0x7fb   : > { %v4417_v59 = vsel %vm4387_vm10, %v4416_v35, %v4415_v45 }
 0x806   : > { %v4003_v48 = vpop.f32.mrf.mxu1 }
 0x807   : > { %v4339_v36 = vmul.f32 %v11123_v16, %v4003_v48 }
 0x808   : > { %v9584_v49 = vpop.f32.mrf.mxu1  ;;  %v4087_v50 = vpop.f32.mrf.mxu0 }
 0x809   : > { %v4340_v10 = vmul.f32 %v4284_v55, %v4087_v50  ;;  %v4418_v49 = vrot.slane %v4338_v34, 1 }
 0x80a   : > { %v9595_v57 = vpop.f32.mrf.mxu0 }
 0x80b   : > { %v4420_v26 = vrot.slane %v4340_v10, 7  ;;  %v11282_v62 = vsel %vm4390_vm11, %v4418_v49, %v4417_v59  ;;  %v4595_v10 = vld [vmem:[#allocation5 + $0x30] sm:$0xff] }
 0x80d   : > { %v4421_v44 = vsel %vm4372_vm5, %v4420_v26, %v4339_v36  ;;  %v8693_v26 = vld [vmem:[#allocation2 + $0x1] ss:$0 sm:$0xff] }
 0x816   : > { %v4171_v27 = vpop.f32.mrf.mxu1 }
 0x817   : > { %v4341_v31 = vmul.f32 %v4285_v25, %v4171_v27  ;;  %v8695_v27 = vld [vmem:[#allocation7 + $0x1] ss:$0 sm:$0xff] }
 0x818   : > { %v9606_v37 = vpop.f32.mrf.mxu1  ;;  %v4255_v39 = vpop.f32.mrf.mxu0 }
 0x819   : > { %v4422_v40 = vrot.slane %v4341_v31, 6  ;;  %v4342_v41 = vmul.f32 %v4286_v28, %v4255_v39 }
 0x81a   : > { %v9617_v46 = vpop.f32.mrf.mxu0 }
 0x81b   : > { %v4423_v50 = vsel %vm4375_vm6, %v4422_v40, %v4421_v44  ;;  %v4424_v57 = vrot.slane %v4342_v41, 5 }
 0x81d   : > { %v11277_v48 = vsel %vm4378_vm7, %v4424_v57, %v4423_v50 }
 0x81e   : > { %9619 = vmatpush3.msk.msra.mxu1 %vm4433_vm12, %v11277_v48 }
 0x81f   : > { %9620 = vmatprep.subr.mxu1 %v10448_v0 }
 0x820   : > { %9621 = vmatpush3.msra.mxu1 %v11282_v62 }
 0x821   : > { %9622 = vmatprep.subr.mxu1 %v10448_v0 }
 0x822   : > { %9623 = vmatpush3.msra.mxu1 %v11234_v17 }
 0x823   : > { %9624 = vmatprep.subr.mxu1 %v10448_v0 }
 0x824   : > { %9625 = vmatpush3.msra.mxu1 %v11191_v18 }
 0x825   : > { %9627 = vmatmul.mubr.msk.f32.vlgmr.msra.gmra.mxu1 %vm4429_vm13, %v491_v63  ;;  %9640 = vmatprep.subr.mxu1 %v10448_v0 }
 0x826   : > { %9641 = vmatpush3.msra.mxu1 %v4596_v2  ;;  %9648 = vmatprep.mubr.msk.f32.mxu1 %vm10449_vm0, %v10448_v0 }
 0x827   : > { %9642 = vmatprep.subr.mxu1 %v10448_v0 }
 0x828   : > { %9643 = vmatpush3.msra.mxu1 %v4595_v10 }
 0x829   : > { %9644 = vmatprep.subr.mxu1 %v10448_v0 }
 0x82a   : > { %9645 = vmatpush3.msra.mxu1 %v4594_v11 }
 0x82b   : > { %9646 = vmatprep.subr.mxu1 %v10448_v0 }
 0x82c   : > { %9647 = vmatpush3.msra.mxu1 %v4593_v14 }
 0x82d   : > { %9656 = vmatprep.subr.mxu1 %v10448_v0 }
 0x8e5   : > { %v11300_v15 = vpop.f32.mrf.mxu1 }
 0x8e6   : > { %9638 = vmatmul.mubr.msk.f32.vlgmr.msra.gmra.mxu0 %vm503_vm1, %v11300_v15  ;;  %9649 = vmatmul.mubr.msk.f32.vlgmr.msra.gmra.mxu1 %vm503_vm1, %v11300_v15 }
 0x8e7   : > { %v9628_v19 = vpop.f32.mrf.mxu1  ;;  %9653 = vmatprep.mubr.msk.f32.mxu0 %vm10449_vm0, %v10448_v0  ;;  %9658 = vmatprep.mubr.msk.f32.mxu1 %vm10449_vm0, %v10448_v0 }
 0x9a6   : > { %v4588_v29 = vpop.f32.mrf.mxu0  ;;  %v4671_v32 = vpop.f32.mrf.mxu1 }
 0x9a7   : > { %v4589_v34 = vadd.f32 %v8693_v26, %v4588_v29  ;;  %v4672_v31 = vadd.f32 %v8695_v27, %v4671_v32 }
 0x9a8   : > { %v9639_v9 = vpop.f32.mrf.mxu0  ;;  %v9650_v35 = vpop.f32.mrf.mxu1 }
 0x9a9   : > { %v4685_v36 = vmul.f32 0.35355338, %v4589_v34  ;;  %4690 = vrot.lane.b32.xlu0 %v4672_v31, %s10451_s13  ;;  %9652 = vmatpush3.xpose.msk.msra.mxu0 %vm688_vm2, %v4672_v31 }
 0x9aa   : > { %4676 = vrot.lane.b32.xlu1 %v4589_v34, %s10451_s13  ;;  %9661 = vmatprep.subr.mxu0 %v10448_v0 }
 0x9ac   : > { %9654 = vmatmul.mubr.msk.f32.vlgmr.msra.gmra.mxu0 %vm688_vm2, %v4685_v36 }
 0x9ad   : > { %4692 = vrot.lane.b32.xlu0 %v4672_v31, %s10450_s29  ;;  %9663 = vmatprep.mubr.msk.f32.mxu0 %vm10449_vm0, %v10448_v0 }
 0x9ae   : > { %4679 = vrot.lane.b32.xlu1 %v4589_v34, %s10450_s29 }
 0x9b1   : > { %4694 = vrot.lane.b32.xlu0 %v4672_v31, %s10452_s24 }
 0x9b2   : > { %4682 = vrot.lane.b32.xlu1 %v4589_v34, %s10452_s24 }
 0xa1b   : > { %v4691_v37 = vpop.permute.xlu0 %4690 }
 0xa1c   : > { %v4677_v39 = vpop.permute.xlu1 %4676  ;;  %9657 = vmatpush3.xpose.msk.msra.mxu1 %vm688_vm2, %v4691_v37 }
 0xa1d   : > { %v4686_v40 = vmul.f32 0.35355338, %v4677_v39  ;;  %9666 = vmatprep.subr.mxu1 %v10448_v0 }
 0xa1f   : > { %v4693_v41 = vpop.permute.xlu0 %4692  ;;  %9659 = vmatmul.mubr.msk.f32.vlgmr.msra.gmra.mxu1 %vm688_vm2, %v4686_v40 }
 0xa20   : > { %v4680_v44 = vpop.permute.xlu1 %4679  ;;  %9662 = vmatpush3.xpose.msk.msra.mxu0 %vm688_vm2, %v4693_v41  ;;  %9668 = vmatprep.mubr.msk.f32.mxu1 %vm10449_vm0, %v10448_v0 }
 0xa21   : > { %v4687_v46 = vmul.f32 0.35355338, %v4680_v44  ;;  %9671 = vmatprep.subr.mxu0 %v10448_v0 }
 0xa23   : > { %v4695_v45 = vpop.permute.xlu0 %4694  ;;  %9664 = vmatmul.mubr.msk.f32.vlgmr.msra.gmra.mxu0 %vm688_vm2, %v4687_v46 }
 0xa24   : > { %v4683_v49 = vpop.permute.xlu1 %4682  ;;  %9667 = vmatpush3.xpose.msk.msra.mxu1 %vm688_vm2, %v4695_v45  ;;  %9672 = vmatpush3.msra.mxu0 %v11300_v15 }
 0xa25   : > { %v4688_v50 = vmul.f32 0.35355338, %v4683_v49  ;;  %9676 = vmatprep.subr.mxu1 %v10448_v0  ;;  %9673 = vmatprep.mubr.msk.f32.mxu0 %vm10449_vm0, %v10448_v0 }
 0xa26   : > { %9681 = vmatprep.subr.mxu0 %v10448_v0 }
 0xa27   : > { %9669 = vmatmul.mubr.msk.f32.vlgmr.msra.gmra.mxu1 %vm688_vm2, %v4688_v50 }
 0xa28   : > { %9678 = vmatprep.mubr.msk.f32.mxu1 %vm10449_vm0, %v10448_v0 }
 0xa6c   : > { %v4776_v57 = vpop.f32.mrf.mxu0 }
 0xa6d   : > { %v5005_v59 = vsel %vm688_vm2, %v4776_v57, -inf }
 0xa6e   : > { %5006 = vmax.xlane.f32.xlu0 %v5005_v59  ;;  %v9655_v63 = vpop.f32.mrf.mxu0 }
 0xadf   : > { %v4851_v2 = vpop.f32.mrf.mxu1 }
 0xae0   : > { %v5008_v10 = vsel %vm688_vm2, %v4851_v2, -inf }
 0xae1   : > { %5009 = vmax.xlane.f32.xlu1 %v5008_v10  ;;  %v9660_v11 = vpop.f32.mrf.mxu1 }
 0xae3   : > { %v4926_v12 = vpop.f32.mrf.mxu0 }
 0xae4   : > { %v5011_v14 = vsel %vm688_vm2, %v4926_v12, -inf }
 0xae5   : > { %5012 = vmax.xlane.f32.xlu0 %v5011_v14  ;;  %v9665_v19 = vpop.f32.mrf.mxu0 }
 0xae7   : > { %v5001_v26 = vpop.f32.mrf.mxu1 }
 0xae8   : > { %v5014_v27 = vsel %vm688_vm2, %v5001_v26, -inf }
 0xae9   : > { %v9670_v29 = vpop.f32.mrf.mxu1  ;;  %5015 = vmax.xlane.f32.xlu0 %v5014_v27 }
 0xaf2   : > { %4696 = vrot.lane.b32.xlu1 %v11300_v15, %s10451_s13 }
 0xaf7   : > { %v5007_v32 = vpop.xlane.xlu0 %5006 }
 0xaf8   : > { %v5017_v34 = vsub.f32 %v4776_v57, %v5007_v32 }
 0xafa   : > { %v5021_v31 = vmul.f32 1.442695, %v5017_v34 }
 0xafc   : > { %10157 = vpow2.f32 %v5021_v31 }
 0xb09   : > { %v10158_v9 = vpop.eup %10157 }
 0xb0a   : > { %v5029_v35 = vsel %vm688_vm2, %v10158_v9, 0.0 }
 0xb16   : > { %5030 = vadd.xlane.f32.xlu1 %v5029_v35 }
 0xb6a   : > { %v5010_v36 = vpop.xlane.xlu1 %5009 }
 0xb6b   : > { %v5018_v37 = vsub.f32 %v4851_v2, %v5010_v36 }
 0xb6d   : > { %v5023_v39 = vmul.f32 1.442695, %v5018_v37 }
 0xb6e   : > { %v4697_v40 = vpop.permute.xlu1 %4696  ;;  %v5013_v41 = vpop.xlane.xlu0 %5012 }
 0xb6f   : > { %10159 = vpow2.f32 %v5023_v39  ;;  %v5019_v44 = vsub.f32 %v4926_v12, %v5013_v41  ;;  %9677 = vmatpush3.msra.mxu1 %v4697_v40  ;;  %v10173_v39 = vld [vmem:[%s11882_s9] sm:$0xff] }
 0xb70   : > { %9686 = vmatprep.subr.mxu1 %v10448_v0 }
 0xb71   : > { %v5025_v46 = vmul.f32 1.442695, %v5019_v44  ;;  %v5360_v44 = vld [vmem:[#allocation8 + $0x38] sm:$0xff] }
 0xb72   : > { %v5016_v45 = vpop.xlane.xlu0 %5015 }
 0xb73   : > { %10161 = vpow2.f32 %v5025_v46  ;;  %v5020_v49 = vsub.f32 %v5001_v26, %v5016_v45  ;;  %v5359_v46 = vld [vmem:[#allocation8 + $0x30] sm:$0xff]  ;;  %v5358_v45 = vld [vmem:[#allocation8 + $0x28] sm:$0xff] }
 0xb75   : > { %v5027_v50 = vmul.f32 1.442695, %v5020_v49  ;;  %v5357_v49 = vld [vmem:[#allocation8 + $0x20] sm:$0xff] }
 0xb77   : > { %10163 = vpow2.f32 %v5027_v50 }
 0xb7c   : > { %v10160_v57 = vpop.eup %10159 }
 0xb7d   : > { %v5032_v59 = vsel %vm688_vm2, %v10160_v57, 0.0 }
 0xb7e   : > { %5033 = vadd.xlane.f32.xlu0 %v5032_v59 }
 0xb80   : > { %v10162_v63 = vpop.eup %10161 }
 0xb81   : > { %v5035_v2 = vsel %vm688_vm2, %v10162_v63, 0.0 }
 0xb82   : > { %5036 = vadd.xlane.f32.xlu1 %v5035_v2 }
 0xb84   : > { %v10164_v10 = vpop.eup %10163 }
 0xb85   : > { %v5038_v11 = vsel %vm688_vm2, %v10164_v10, 0.0 }
 0xb86   : > { %5039 = vadd.xlane.f32.xlu0 %v5038_v11  ;;  %v8276_v11 = vsel %vm503_vm1, %v11191_v18, 0.0 }
 0xb93   : > { %4702 = vrot.lane.b32.xlu1 %v11300_v15, %s10452_s24  ;;  %s11835_s24 = scalar_lea.hbm %s11884_s11, %s8856_s14 }
 0xb9c   : > { %4699 = vrot.lane.b32.xlu0 %v11300_v15, %s10450_s29 }
 0xb9f   : > { %v5031_v12 = vpop.xlane.xlu1 %5030 }
 0xba0   : > { %10165 = vrcp.f32 %v5031_v12  ;;  %v8279_v12 = vsel %vm503_vm1, %v11234_v17, 0.0  ;;  %v5450_v17 = vld [vmem:[#allocation11 + $0x3b8] sm:$0xff] }
 0xbad   : > { %v10166_v14 = vpop.eup %10165 }
 0xbae   : > { %v5042_v19 = vmul.f32 %v10166_v14, %v10158_v9  ;;  %v8282_v14 = vsel %vm503_vm1, %v11282_v62, 0.0  ;;  %v8709_v62 = vld [vmem:[#allocation10 + $0x1] ss:$0 sm:$0xff] }
 0xbb0   : > { %9674 = vmatmul.mubr.msk.f32.vlgmr.msra.gmra.mxu0 %vm688_vm2, %v5042_v19  ;;  %v8286_v19 = vsel %vm8285_vm14, %v11277_v48, 0.0  ;;  %v5449_v48 = vld [vmem:[#allocation11 + $0x3b0] sm:$0xff] }
 0xbb1   : > { %9683 = vmatprep.mubr.msk.f32.mxu0 %vm10449_vm0, %v10448_v0 }
 0xc07   : > { %v5034_v26 = vpop.xlane.xlu0 %5033 }
 0xc08   : > { %10167 = vrcp.f32 %v5034_v26 }
 0xc0b   : > { %v5037_v27 = vpop.xlane.xlu1 %5036 }
 0xc0c   : > { %10169 = vrcp.f32 %v5037_v27 }
 0xc0f   : > { %v5040_v29 = vpop.xlane.xlu0 %5039  ;;  %v4703_v31 = vpop.permute.xlu1 %4702 }
 0xc10   : > { %10171 = vrcp.f32 %v5040_v29 }
 0xc13   : > { %v4700_v32 = vpop.permute.xlu0 %4699 }
 0xc14   : > { %9682 = vmatpush3.msra.mxu0 %v4700_v32 }
 0xc15   : > { %v10168_v34 = vpop.eup %10167  ;;  %9691 = vmatprep.subr.mxu0 %v10448_v0 }
 0xc16   : > { %v5044_v15 = vmul.f32 %v10168_v34, %v10160_v57 }
 0xc18   : > { %9679 = vmatmul.mubr.msk.f32.vlgmr.msra.gmra.mxu1 %vm688_vm2, %v5044_v15 }
 0xc19   : > { %v10170_v9 = vpop.eup %10169  ;;  %9687 = vmatpush3.msra.mxu1 %v4703_v31  ;;  %9688 = vmatprep.mubr.msk.f32.mxu1 %vm10449_vm0, %v10448_v0 }
 0xc1a   : > { %v5046_v35 = vmul.f32 %v10170_v9, %v10162_v63 }
 0xc1c   : > { %9684 = vmatmul.mubr.msk.f32.vlgmr.msra.gmra.mxu0 %vm688_vm2, %v5046_v35  ;;  %v5446_v35 = vld [vmem:[#allocation11 + $0x398] sm:$0xff] }
 0xc1d   : > { %v10172_v36 = vpop.eup %10171  ;;  %9699 = vmatprep.mubr.msk.f32.mxu0 %vm10449_vm0, %v10448_v0  ;;  %9692 = vmatpush3.msra.mxu0 %v5360_v44  ;;  %v5448_v44 = vld [vmem:[#allocation11 + $0x3a8] sm:$0xff] }
 0xc1e   : > { %v5048_v37 = vmul.f32 %v10172_v36, %v10164_v10  ;;  %9693 = vmatprep.subr.mxu0 %v10448_v0  ;;  %v10174_v36 = vld [vmem:[%s11882_s9 + $0x8] sm:$0xff] }
 0xc1f   : > { %9694 = vmatpush3.msra.mxu0 %v5359_v46  ;;  %v5443_v46 = vld [vmem:[#allocation11 + $0x380] sm:$0xff] }
 0xc20   : > { %9689 = vmatmul.mubr.msk.f32.vlgmr.msra.gmra.mxu1 %vm688_vm2, %v5048_v37  ;;  %9695 = vmatprep.subr.mxu0 %v10448_v0  ;;  %v10175_v37 = vld [vmem:[%s11882_s9 + $0x10] sm:$0xff] }
 0xc21   : > { %9704 = vmatprep.mubr.msk.f32.mxu1 %vm688_vm2, %v10173_v39  ;;  %9696 = vmatpush3.msra.mxu0 %v5358_v45  ;;  %v5445_v39 = vld [vmem:[#allocation11 + $0x390] sm:$0xff]  ;;  %v5447_v45 = vld [vmem:[#allocation11 + $0x3a0] sm:$0xff] }
 0xc22   : > { %9697 = vmatprep.subr.mxu0 %v10448_v0 }
 0xc23   : > { %9698 = vmatpush3.msra.mxu0 %v5357_v49 }
 0xc24   : > { %9721 = vmatprep.subr.mxu0 %v10448_v0 }
 0xc70   : > { %v5118_v40 = vpop.f32.mrf.mxu0 }
 0xc72   : > { %v9675_v41 = vpop.f32.mrf.mxu0 }
 0xc73   : > { %v5444_v41 = vld [vmem:[#allocation11 + $0x388] sm:$0xff] }
 0xcd8   : > { %v5191_v50 = vpop.f32.mrf.mxu1 }
 0xcd9   : > { %5342 = vrot.lane.b32.xlu1 %v5191_v50, %s10454_s26  ;;  %s10457_s26 = smov [#allocation14]  }
 0xcda   : > { %v9680_v57 = vpop.f32.mrf.mxu1 }
 0xcdc   : > { %v5264_v59 = vpop.f32.mrf.mxu0 }
 0xcdd   : > { %5346 = vrot.lane.b32.xlu0 %v5264_v59, %s10453_s25  ;;  %s10359_s25 = scalar_lea.vmem %s8374_s19, 32 }
 0xcde   : > { %v9685_v63 = vpop.f32.mrf.mxu0  ;;  %p10360_p5 = scmp.ne.s32.totalorder %s8374_s19, %s10359_s25 }
 0xce0   : > { %v5337_v2 = vpop.f32.mrf.mxu1  ;;  %p10361_p0 = pnand %p10360_p5, %p11908_p6 }
 0xce1   : > { %5350 = vrot.lane.b32.xlu1 %v5337_v2, %s10455_s23  ;;  %v5454_v2 = vld [vmem:[#allocation11 + $0x3d8] sm:$0xff]  ;;  %s10363_s23 = sshll.u32 %s10457_s26, 4  ;;  %s10364_s23 = int_to_ptr.vmem [resolvable:$false] %s10363_s23 }
 0xce2   : > { %v9690_v10 = vpop.f32.mrf.mxu1  ;;  %p10362_p1 = pneg %p10361_p0  ;;  %s10365_s16 = scalar_lea.vmem %s10364_s23, 64 }
 0xce3   : > { %p10366_p3 = scmp.lt.s32.totalorder %s8374_s19, %s10364_s23  ;;  %p10367_p2 = scmp.lt.s32.totalorder %s10365_s16, %s10359_s25 }
 0xce5   : > { %p10368_p13 = por %p10367_p2, %p10366_p3 }
 0xce7   : > { %p10369_p4 = pnand %p10368_p13, %p10362_p1 }
 0xcfc   : > { %8277 = vadd.xlane.f32.xlu0 %v8276_v11  ;;  %v5458_v11 = vld [vmem:[#allocation11 + $0x3f8] sm:$0xff] }
 0xd05   : > { %8280 = vadd.xlane.f32.xlu1 %v8279_v12  ;;  %v5453_v12 = vld [vmem:[#allocation11 + $0x3d0] sm:$0xff] }
 0xd09   : > { %8283 = vadd.xlane.f32.xlu1 %v8282_v14  ;;  %v5457_v14 = vld [vmem:[#allocation11 + $0x3f0] sm:$0xff] }
 0xd0d   : > { %8287 = vadd.xlane.f32.xlu1 %v8286_v19  ;;  %v5452_v19 = vld [vmem:[#allocation11 + $0x3c8] sm:$0xff] }
 0xd4b   : > { %v5343_v26 = vpop.permute.xlu1 %5342 }
 0xd4c   : > { %v5353_v29 = vsel %vm688_vm2, %v5118_v40, %v5343_v26  ;;  %v10176_v40 = vld [vmem:[%s11882_s9 + $0x18] sm:$0xf]  ;;  %v5456_v26 = vld [vmem:[#allocation11 + $0x3e8] sm:$0xff] }
 0xd4f   : > { %v5347_v27 = vpop.permute.xlu0 %5346 }
 0xd50   : > { %v5354_v18 = vsel %vm1338_vm3, %v5353_v29, %v5347_v27  ;;  %v5451_v27 = vld [vmem:[#allocation11 + $0x3c0] sm:$0xff] }
 0xd51   : > { %v5455_v29 = vld [vmem:[#allocation11 + $0x3e0] sm:$0xff] }
 0xd53   : > { %v5351_v32 = vpop.permute.xlu1 %5350 }
 0xd54   : > { %v5355_v34 = vsel %vm1340_vm4, %v5354_v18, %v5351_v32  ;;  %v5462_v32 = vld [vmem:[#allocation11 + $0x418] sm:$0xff] }
 0xd55   : > { %9700 = vmatmul.mubr.msk.f32.vlgmr.msra.gmra.mxu0 %vm503_vm1, %v5355_v34 }
 0xd56   : > { %9729 = vmatprep.mubr.msk.f32.mxu0 %vm10449_vm0, %v10448_v0  ;;  %9722 = vmatpush3.xpose.msk.msra.mxu0 %vm503_vm1, %v5450_v17  ;;  %v5466_v17 = vld [vmem:[#allocation11 + $0x438] sm:$0xff] }
 0xd57   : > { %9723 = vmatprep.subr.mxu0 %v10448_v0 }
 0xd5a   : > { %9724 = vmatpush3.xpose.msk.msra.mxu0 %vm503_vm1, %v5449_v48  ;;  %v5461_v48 = vld [vmem:[#allocation11 + $0x410] sm:$0xff] }
 0xd5b   : > { %9725 = vmatprep.subr.mxu0 %v10448_v0 }
 0xd5e   : > { %9726 = vmatpush3.xpose.msk.msra.mxu0 %vm503_vm1, %v5448_v44 }
 0xd5f   : > { %9727 = vmatprep.subr.mxu0 %v10448_v0 }
 0xd62   : > { %9728 = vmatpush3.xpose.msk.msra.mxu0 %vm503_vm1, %v5447_v45  ;;  %v5469_v45 = vld [vmem:[#allocation11 + $0x450] sm:$0xff] }
 0xd63   : > { %9743 = vmatprep.subr.mxu0 %v10448_v0 }
 0xe15   : > { %v5438_v15 = vpop.f32.mrf.mxu0 }
 0xe16   : > { %v5439_v31 = vadd.f32 %v8709_v62, %v5438_v15  ;;  %v5465_v15 = vld [vmem:[#allocation11 + $0x430] sm:$0xff] }
 0xe17   : > { %v9701_v9 = vpop.f32.mrf.mxu0 }
 0xe18   : > { %9702 = vmatprep.subr.mxu1 %v5439_v31 }
 0xe19   : > { %9703 = vmatpush3.msra.mxu1 %v5439_v31  ;;  %v5460_v31 = vld [vmem:[#allocation11 + $0x408] sm:$0xff] }
 0xe1a   : > { %9705 = vmatmul.mubr.msk.f32.vlgmr.msra.gmra.mxu1 %vm688_vm2, %v10174_v36  ;;  %9710 = vmatprep.subr.mxu1 %v10448_v0  ;;  %v5459_v36 = vld [vmem:[#allocation11 + $0x400] sm:$0xff] }
 0xe1b   : > { %9707 = vmatprep.mubr.msk.f32.mxu1 %vm688_vm2, %v10175_v37  ;;  %9711 = vmatpush3.xpose.msk.msra.mxu1 %vm503_vm1, %v5446_v35  ;;  %v5464_v35 = vld [vmem:[#allocation11 + $0x428] sm:$0xff] }
 0xe1c   : > { %9712 = vmatprep.subr.mxu1 %v10448_v0 }
 0xe1e   : > { %9708 = vmatmul.mubr.msk.f32.gmra.mxu1 %vm688_vm2, %v10176_v40  ;;  %vm8357_vm2 = vcmask 222208  }
 0xe1f   : > { %9713 = vmatpush3.xpose.msk.msra.mxu1 %vm503_vm1, %v5445_v39  ;;  %9718 = vmatprep.mubr.msk.f32.mxu1 %vm10449_vm0, %v10448_v0  ;;  %v5463_v39 = vld [vmem:[#allocation11 + $0x420] sm:$0xff] }
 0xe20   : > { %9714 = vmatprep.subr.mxu1 %v10448_v0 }
 0xe23   : > { %9715 = vmatpush3.xpose.msk.msra.mxu1 %vm503_vm1, %v5444_v41  ;;  %v5470_v41 = vld [vmem:[#allocation11 + $0x458] sm:$0xff] }
 0xe24   : > { %9716 = vmatprep.subr.mxu1 %v10448_v0 }
 0xe27   : > { %9717 = vmatpush3.xpose.msk.msra.mxu1 %vm503_vm1, %v5443_v46  ;;  %v5474_v46 = vld [vmem:[#allocation11 + $0x478] sm:$0xff] }
 0xe28   : > { %9732 = vmatprep.subr.mxu1 %v10448_v0 }
 0xeda   : > { %v11420_v49 = vpop.f32.mrf.mxu1 }
 0xedc   : > { %v5621_v50 = vpop.f32.mrf.mxu1 }
 0xedd   : > { %v5651_v57 = vrot.slane %v5621_v50, %v10828_v56  ;;  %v5644_v62 = vcombine.high %v5621_v50, %v5621_v50  ;;  %v5473_v50 = vld [vmem:[#allocation11 + $0x470] sm:$0xff] }
 0xedf   : > { %v5659_v59 = vcombine.high %v5651_v57, %v5651_v57  ;;  %v5667_v63 = vrot.slane %v5651_v57, %v10828_v56  ;;  %v5658_v9 = vrot.slane %v5644_v62, %v10828_v56  ;;  %v5468_v57 = vld [vmem:[#allocation11 + $0x448] sm:$0xff]  ;;  %v5486_v62 = vld [vmem:[#allocation11 + $0x4d8] sm:$0xff] }
 0xee1   : > { %v5681_v10 = vrot.slane %v5659_v59, %v10828_v56  ;;  %9719 = vmatmul.mubr.msk.f32.vlgmr.msra.gmra.mxu1 %vm503_vm1, %v5667_v63  ;;  %v5689_v18 = vcombine.high %v5667_v63, %v5667_v63  ;;  %v5660_v37 = vcombine.high %v5658_v9, %v5658_v9  ;;  %v5674_v40 = vrot.slane %v5658_v9, %v10828_v56  ;;  %v5472_v59 = vld [vmem:[#allocation11 + $0x468] sm:$0xff]  ;;  %v5467_v63 = vld [vmem:[#allocation11 + $0x440] sm:$0xff]  ;;  %v5485_v9 = vld [vmem:[#allocation11 + $0x4d0] sm:$0xff] }
 0xee2   : > { %9733 = vmatpush3.xpose.msk.msra.mxu1 %vm503_vm1, %v5454_v2  ;;  %9740 = vmatprep.mubr.msk.f32.mxu1 %vm10449_vm0, %v10448_v0  ;;  %v5471_v2 = vld [vmem:[#allocation11 + $0x460] sm:$0xff] }
 0xee3   : > { %9730 = vmatmul.mubr.msk.f32.vlgmr.msra.gmra.mxu0 %vm503_vm1, %v5681_v10  ;;  %9734 = vmatprep.subr.mxu1 %v10448_v0  ;;  %v5691_v34 = vcombine.high %v5681_v10, %v5681_v10  ;;  %v5688_v44 = vrot.slane %v5660_v37, %v10828_v56  ;;  %v5690_v10 = vcombine.high %v5674_v40, %v5674_v40  ;;  %v5488_v37 = vld [vmem:[#allocation11 + $0x4e8] sm:$0xff] }
 0xee4   : > { %9744 = vmatpush3.xpose.msk.msra.mxu0 %vm503_vm1, %v5458_v11  ;;  %9751 = vmatprep.mubr.msk.f32.mxu0 %vm10449_vm0, %v10448_v0  ;;  %v5478_v11 = vld [vmem:[#allocation11 + $0x498] sm:$0xff] }
 0xee5   : > { %9745 = vmatprep.subr.mxu0 %v10448_v0 }
 0xee6   : > { %9735 = vmatpush3.xpose.msk.msra.mxu1 %vm503_vm1, %v5453_v12  ;;  %v5692_v12 = vcombine.high %v5688_v44, %v5688_v44 }
 0xee7   : > { %9736 = vmatprep.subr.mxu1 %v10448_v0 }
 0xee8   : > { %9746 = vmatpush3.xpose.msk.msra.mxu0 %vm503_vm1, %v5457_v14  ;;  %v5482_v14 = vld [vmem:[#allocation11 + $0x4b8] sm:$0xff] }
 0xee9   : > { %9747 = vmatprep.subr.mxu0 %v10448_v0 }
 0xeea   : > { %9737 = vmatpush3.xpose.msk.msra.mxu1 %vm503_vm1, %v5452_v19  ;;  %v5477_v19 = vld [vmem:[#allocation11 + $0x490] sm:$0xff] }
 0xeeb   : > { %9738 = vmatprep.subr.mxu1 %v10448_v0 }
 0xeec   : > { %9748 = vmatpush3.xpose.msk.msra.mxu0 %vm503_vm1, %v5456_v26  ;;  %v5481_v26 = vld [vmem:[#allocation11 + $0x4b0] sm:$0xff] }
 0xeed   : > { %9749 = vmatprep.subr.mxu0 %v10448_v0 }
 0xeee   : > { %9739 = vmatpush3.xpose.msk.msra.mxu1 %vm503_vm1, %v5451_v27  ;;  %v5476_v27 = vld [vmem:[#allocation11 + $0x488] sm:$0xff] }
 0xeef   : > { %9754 = vmatprep.subr.mxu1 %v10448_v0 }
 0xef0   : > { %9750 = vmatpush3.xpose.msk.msra.mxu0 %vm503_vm1, %v5455_v29  ;;  %v5700_v29 = vrot.slane %v11420_v49, %v10828_v56 }
 0xef1   : > { %9741 = vmatmul.mubr.msk.f32.vlgmr.msra.gmra.mxu1 %vm503_vm1, %v5689_v18  ;;  %9765 = vmatprep.subr.mxu0 %v10448_v0  ;;  %v5480_v18 = vld [vmem:[#allocation11 + $0x4a8] sm:$0xff] }
 0xef2   : > { %9755 = vmatpush3.xpose.msk.msra.mxu1 %vm503_vm1, %v5462_v32  ;;  %9762 = vmatprep.mubr.msk.f32.mxu1 %vm10449_vm0, %v10448_v0  ;;  %v5475_v32 = vld [vmem:[#allocation11 + $0x480] sm:$0xff] }
 0xef3   : > { %9752 = vmatmul.mubr.msk.f32.vlgmr.msra.gmra.mxu0 %vm503_vm1, %v5691_v34  ;;  %9756 = vmatprep.subr.mxu1 %v10448_v0  ;;  %v5708_v34 = vcombine.high %v5700_v29, %v5700_v29 }
 0xef4   : > { %9766 = vmatpush3.xpose.msk.msra.mxu0 %vm503_vm1, %v5466_v17  ;;  %9773 = vmatprep.mubr.msk.f32.mxu0 %vm10449_vm0, %v10448_v0  ;;  %v5479_v17 = vld [vmem:[#allocation11 + $0x4a0] sm:$0xff] }
 0xef5   : > { %9767 = vmatprep.subr.mxu0 %v10448_v0 }
 0xef6   : > { %9757 = vmatpush3.xpose.msk.msra.mxu1 %vm503_vm1, %v5461_v48  ;;  %v5716_v48 = vrot.slane %v5700_v29, %v10828_v56  ;;  %v5501_v29 = vld [vmem:[#allocation11 + $0x550] sm:$0xff] }
 0xef7   : > { %9758 = vmatprep.subr.mxu1 %v10448_v0 }
 0xef8   : > { %9768 = vmatpush3.xpose.msk.msra.mxu0 %vm503_vm1, %v5465_v15  ;;  %v5730_v15 = vrot.slane %v5708_v34, %v10828_v56  ;;  %v5504_v34 = vld [vmem:[#allocation11 + $0x568] sm:$0xff] }
 0xef9   : > { %9769 = vmatprep.subr.mxu0 %v10448_v0 }
 0xefa   : > { %9759 = vmatpush3.xpose.msk.msra.mxu1 %vm503_vm1, %v5460_v31  ;;  %v5490_v31 = vld [vmem:[#allocation11 + $0x4f8] sm:$0xff] }
 0xefb   : > { %9760 = vmatprep.subr.mxu1 %v10448_v0 }
 0xefc   : > { %9770 = vmatpush3.xpose.msk.msra.mxu0 %vm503_vm1, %v5464_v35  ;;  %v5489_v35 = vld [vmem:[#allocation11 + $0x4f0] sm:$0xff] }
 0xefd   : > { %9771 = vmatprep.subr.mxu0 %v10448_v0 }
 0xefe   : > { %9761 = vmatpush3.xpose.msk.msra.mxu1 %vm503_vm1, %v5459_v36  ;;  %v5484_v36 = vld [vmem:[#allocation11 + $0x4c8] sm:$0xff] }
 0xeff   : > { %9776 = vmatprep.subr.mxu1 %v10448_v0 }
 0xf00   : > { %9772 = vmatpush3.xpose.msk.msra.mxu0 %vm503_vm1, %v5463_v39  ;;  %v5483_v39 = vld [vmem:[#allocation11 + $0x4c0] sm:$0xff] }
 0xf01   : > { %9763 = vmatmul.mubr.msk.f32.vlgmr.msra.gmra.mxu1 %vm503_vm1, %v5674_v40  ;;  %9787 = vmatprep.subr.mxu0 %v10448_v0  ;;  %v5487_v40 = vld [vmem:[#allocation11 + $0x4e0] sm:$0xff] }
 0xf02   : > { %9777 = vmatpush3.xpose.msk.msra.mxu1 %vm503_vm1, %v5470_v41  ;;  %9784 = vmatprep.mubr.msk.f32.mxu1 %vm10449_vm0, %v10448_v0  ;;  %v5738_v41 = vcombine.high %v5716_v48, %v5716_v48 }
 0xf03   : > { %9774 = vmatmul.mubr.msk.f32.vlgmr.msra.gmra.mxu0 %vm503_vm1, %v5688_v44  ;;  %9778 = vmatprep.subr.mxu1 %v10448_v0  ;;  %v5494_v44 = vld [vmem:[#allocation11 + $0x518] sm:$0xff] }
 0xf04   : > { %9788 = vmatpush3.xpose.msk.msra.mxu0 %vm503_vm1, %v5474_v46  ;;  %9795 = vmatprep.mubr.msk.f32.mxu0 %vm10449_vm0, %v10448_v0  ;;  %v5740_v46 = vcombine.high %v5730_v15, %v5730_v15 }
 0xf05   : > { %9789 = vmatprep.subr.mxu0 %v10448_v0 }
 0xf06   : > { %9779 = vmatpush3.xpose.msk.msra.mxu1 %vm503_vm1, %v5469_v45  ;;  %v5498_v45 = vld [vmem:[#allocation11 + $0x538] sm:$0xff] }
 0xf07   : > { %9780 = vmatprep.subr.mxu1 %v10448_v0 }
 0xf08   : > { %9790 = vmatpush3.xpose.msk.msra.mxu0 %vm503_vm1, %v5473_v50  ;;  %v5493_v50 = vld [vmem:[#allocation11 + $0x510] sm:$0xff] }
 0xf09   : > { %9791 = vmatprep.subr.mxu0 %v10448_v0 }
 0xf0a   : > { %9781 = vmatpush3.xpose.msk.msra.mxu1 %vm503_vm1, %v5468_v57  ;;  %v5693_v57 = vcombine.high %v11420_v49, %v11420_v49  ;;  %v5491_v49 = vld [vmem:[#allocation11 + $0x500] sm:$0xff] }
 0xf0b   : > { %9782 = vmatprep.subr.mxu1 %v10448_v0 }
 0xf0c   : > { %9792 = vmatpush3.xpose.msk.msra.mxu0 %vm503_vm1, %v5472_v59  ;;  %v5497_v59 = vld [vmem:[#allocation11 + $0x530] sm:$0xff] }
 0xf0d   : > { %9793 = vmatprep.subr.mxu0 %v10448_v0 }
 0xf0e   : > { %9783 = vmatpush3.xpose.msk.msra.mxu1 %vm503_vm1, %v5467_v63  ;;  %v5492_v63 = vld [vmem:[#allocation11 + $0x508] sm:$0xff] }
 0xf0f   : > { %9798 = vmatprep.subr.mxu1 %v10448_v0 }
 0xf10   : > { %9794 = vmatpush3.xpose.msk.msra.mxu0 %vm503_vm1, %v5471_v2  ;;  %v5707_v2 = vrot.slane %v5693_v57, %v10828_v56  ;;  %v5511_v57 = vld [vmem:[#allocation11 + $0x5a0] sm:$0xff] }
 0xf11   : > { %9785 = vmatmul.mubr.msk.f32.vlgmr.msra.gmra.mxu1 %vm503_vm1, %v5690_v10  ;;  %9809 = vmatprep.subr.mxu0 %v10448_v0  ;;  %v5496_v10 = vld [vmem:[#allocation11 + $0x528] sm:$0xff] }
 0xf12   : > { %9799 = vmatpush3.xpose.msk.msra.mxu1 %vm503_vm1, %v5478_v11  ;;  %9806 = vmatprep.mubr.msk.f32.mxu1 %vm10449_vm0, %v10448_v0  ;;  %v5709_v11 = vcombine.high %v5707_v2, %v5707_v2 }
 0xf13   : > { %9796 = vmatmul.mubr.msk.f32.vlgmr.msra.gmra.mxu0 %vm503_vm1, %v5692_v12  ;;  %9800 = vmatprep.subr.mxu1 %v10448_v0  ;;  %v5495_v12 = vld [vmem:[#allocation11 + $0x520] sm:$0xff] }
 0xf14   : > { %9810 = vmatpush3.xpose.msk.msra.mxu0 %vm503_vm1, %v5482_v14  ;;  %9817 = vmatprep.mubr.msk.f32.mxu0 %vm10449_vm0, %v10448_v0  ;;  %v5723_v14 = vrot.slane %v5707_v2, %v10828_v56  ;;  %v5522_v2 = vld [vmem:[#allocation11 + $0x5f8] sm:$0xff] }
 0xf15   : > { %9811 = vmatprep.subr.mxu0 %v10448_v0 }
 0xf16   : > { %9801 = vmatpush3.xpose.msk.msra.mxu1 %vm503_vm1, %v5477_v19  ;;  %v5502_v19 = vld [vmem:[#allocation11 + $0x558] sm:$0xff] }
 0xf17   : > { %9802 = vmatprep.subr.mxu1 %v10448_v0 }
 0xf18   : > { %9812 = vmatpush3.xpose.msk.msra.mxu0 %vm503_vm1, %v5481_v26  ;;  %v5737_v26 = vrot.slane %v5709_v11, %v10828_v56  ;;  %v5516_v11 = vld [vmem:[#allocation11 + $0x5c8] sm:$0xff] }
 0xf19   : > { %9813 = vmatprep.subr.mxu0 %v10448_v0 }
 0xf1a   : > { %9803 = vmatpush3.xpose.msk.msra.mxu1 %vm503_vm1, %v5476_v27  ;;  %v5506_v27 = vld [vmem:[#allocation11 + $0x578] sm:$0xff] }
 0xf1b   : > { %9804 = vmatprep.subr.mxu1 %v10448_v0 }
 0xf1c   : > { %9814 = vmatpush3.xpose.msk.msra.mxu0 %vm503_vm1, %v5480_v18  ;;  %v5505_v18 = vld [vmem:[#allocation11 + $0x570] sm:$0xff] }
 0xf1d   : > { %9815 = vmatprep.subr.mxu0 %v10448_v0 }
 0xf1e   : > { %9805 = vmatpush3.xpose.msk.msra.mxu1 %vm503_vm1, %v5475_v32  ;;  %v5500_v32 = vld [vmem:[#allocation11 + $0x548] sm:$0xff] }
 0xf1f   : > { %9820 = vmatprep.subr.mxu1 %v10448_v0 }
 0xf20   : > { %9816 = vmatpush3.xpose.msk.msra.mxu0 %vm503_vm1, %v5479_v17  ;;  %v5499_v17 = vld [vmem:[#allocation11 + $0x540] sm:$0xff] }
 0xf21   : > { %9807 = vmatmul.mubr.msk.f32.vlgmr.msra.gmra.mxu1 %vm503_vm1, %v5716_v48  ;;  %9831 = vmatprep.subr.mxu0 %v10448_v0  ;;  %v5503_v48 = vld [vmem:[#allocation11 + $0x560] sm:$0xff] }
 0xf22   : > { %9821 = vmatpush3.xpose.msk.msra.mxu1 %vm503_vm1, %v5486_v62  ;;  %9828 = vmatprep.mubr.msk.f32.mxu1 %vm10449_vm0, %v10448_v0  ;;  %v5739_v62 = vcombine.high %v5723_v14, %v5723_v14 }
 0xf23   : > { %9818 = vmatmul.mubr.msk.f32.vlgmr.msra.gmra.mxu0 %vm503_vm1, %v5730_v15  ;;  %9822 = vmatprep.subr.mxu1 %v10448_v0  ;;  %v5510_v15 = vld [vmem:[#allocation11 + $0x598] sm:$0xff] }
 0xf24   : > { %9832 = vmatpush3.xpose.msk.msra.mxu0 %vm503_vm1, %v5490_v31  ;;  %9839 = vmatprep.mubr.msk.f32.mxu0 %vm10449_vm0, %v10448_v0  ;;  %v11590_v31 = vpop.f32.mrf.mxu1 }
 0xf25   : > { %9833 = vmatprep.subr.mxu0 %v10448_v0 }
 0xf26   : > { %9823 = vmatpush3.xpose.msk.msra.mxu1 %vm503_vm1, %v5485_v9  ;;  %v5741_v9 = vcombine.high %v5737_v26, %v5737_v26 }
 0xf27   : > { %9824 = vmatprep.subr.mxu1 %v10448_v0 }
 0xf28   : > { %9834 = vmatpush3.xpose.msk.msra.mxu0 %vm503_vm1, %v5489_v35  ;;  %v5514_v35 = vld [vmem:[#allocation11 + $0x5b8] sm:$0xff] }
 0xf29   : > { %9835 = vmatprep.subr.mxu0 %v10448_v0 }
 0xf2a   : > { %9825 = vmatpush3.xpose.msk.msra.mxu1 %vm503_vm1, %v5484_v36  ;;  %v5509_v36 = vld [vmem:[#allocation11 + $0x590] sm:$0xff] }
 0xf2b   : > { %9826 = vmatprep.subr.mxu1 %v10448_v0 }
 0xf2c   : > { %9836 = vmatpush3.xpose.msk.msra.mxu0 %vm503_vm1, %v5488_v37  ;;  %v11600_v37 = vpop.f32.mrf.mxu1 }
 0xf2d   : > { %9837 = vmatprep.subr.mxu0 %v10448_v0 }
 0xf2e   : > { %9827 = vmatpush3.xpose.msk.msra.mxu1 %vm503_vm1, %v5483_v39  ;;  %v5513_v39 = vld [vmem:[#allocation11 + $0x5b0] sm:$0xff] }
 0xf2f   : > { %9842 = vmatprep.subr.mxu1 %v10448_v0 }
 0xf30   : > { %9838 = vmatpush3.xpose.msk.msra.mxu0 %vm503_vm1, %v5487_v40  ;;  %v5508_v40 = vld [vmem:[#allocation11 + $0x588] sm:$0xff] }
 0xf31   : > { %9829 = vmatmul.mubr.msk.f32.vlgmr.msra.gmra.mxu1 %vm503_vm1, %v5738_v41  ;;  %9853 = vmatprep.subr.mxu0 %v10448_v0  ;;  %v5749_v41 = vrot.slane %v11600_v37, %v10828_v56 }
 0xf32   : > { %9843 = vmatpush3.xpose.msk.msra.mxu1 %vm503_vm1, %v5494_v44  ;;  %9850 = vmatprep.mubr.msk.f32.mxu1 %vm10449_vm0, %v10448_v0  ;;  %v5512_v44 = vld [vmem:[#allocation11 + $0x5a8] sm:$0xff] }
 0xf33   : > { %9840 = vmatmul.mubr.msk.f32.vlgmr.msra.gmra.mxu0 %vm503_vm1, %v5740_v46  ;;  %9844 = vmatprep.subr.mxu1 %v10448_v0  ;;  %v5757_v46 = vcombine.high %v5749_v41, %v5749_v41 }
 0xf34   : > { %9854 = vmatpush3.xpose.msk.msra.mxu0 %vm503_vm1, %v5498_v45  ;;  %9861 = vmatprep.mubr.msk.f32.mxu0 %vm10449_vm0, %v10448_v0  ;;  %v5507_v45 = vld [vmem:[#allocation11 + $0x580] sm:$0xff] }
 0xf35   : > { %9855 = vmatprep.subr.mxu0 %v10448_v0 }
 0xf36   : > { %9845 = vmatpush3.xpose.msk.msra.mxu1 %vm503_vm1, %v5493_v50  ;;  %v5765_v50 = vrot.slane %v5749_v41, %v10828_v56  ;;  %v5538_v41 = vld [vmem:[#allocation11 + $0x678] sm:$0xff] }
 0xf37   : > { %9846 = vmatprep.subr.mxu1 %v10448_v0 }
 0xf38   : > { %9856 = vmatpush3.xpose.msk.msra.mxu0 %vm503_vm1, %v5497_v59  ;;  %v5779_v59 = vrot.slane %v5757_v46, %v10828_v56  ;;  %v5537_v46 = vld [vmem:[#allocation11 + $0x670] sm:$0xff] }
 0xf39   : > { %9857 = vmatprep.subr.mxu0 %v10448_v0 }
 0xf3a   : > { %9847 = vmatpush3.xpose.msk.msra.mxu1 %vm503_vm1, %v5492_v63  ;;  %v5518_v63 = vld [vmem:[#allocation11 + $0x5d8] sm:$0xff] }
 0xf3b   : > { %9848 = vmatprep.subr.mxu1 %v10448_v0 }
 0xf3c   : > { %9858 = vmatpush3.xpose.msk.msra.mxu0 %vm503_vm1, %v5496_v10  ;;  %v5517_v10 = vld [vmem:[#allocation11 + $0x5d0] sm:$0xff] }
 0xf3d   : > { %9859 = vmatprep.subr.mxu0 %v10448_v0 }
 0xf3e   : > { %9849 = vmatpush3.xpose.msk.msra.mxu1 %vm503_vm1, %v5491_v49  ;;  %v5521_v49 = vld [vmem:[#allocation11 + $0x5f0] sm:$0xff] }
 0xf3f   : > { %9864 = vmatprep.subr.mxu1 %v10448_v0 }
 0xf40   : > { %9860 = vmatpush3.xpose.msk.msra.mxu0 %vm503_vm1, %v5495_v12  ;;  %v5520_v12 = vld [vmem:[#allocation11 + $0x5e8] sm:$0xff] }
 0xf41   : > { %9851 = vmatmul.mubr.msk.f32.vlgmr.msra.gmra.mxu1 %vm503_vm1, %v5723_v14  ;;  %9875 = vmatprep.subr.mxu0 %v10448_v0  ;;  %v5515_v14 = vld [vmem:[#allocation11 + $0x5c0] sm:$0xff] }
 0xf42   : > { %9865 = vmatpush3.xpose.msk.msra.mxu1 %vm503_vm1, %v5502_v19  ;;  %9872 = vmatprep.mubr.msk.f32.mxu1 %vm10449_vm0, %v10448_v0  ;;  %v5519_v19 = vld [vmem:[#allocation11 + $0x5e0] sm:$0xff] }
 0xf43   : > { %9862 = vmatmul.mubr.msk.f32.vlgmr.msra.gmra.mxu0 %vm503_vm1, %v5737_v26  ;;  %9866 = vmatprep.subr.mxu1 %v10448_v0  ;;  %v5787_v26 = vcombine.high %v5765_v50, %v5765_v50 }
 0xf44   : > { %9876 = vmatpush3.xpose.msk.msra.mxu0 %vm503_vm1, %v5506_v27  ;;  %9883 = vmatprep.mubr.msk.f32.mxu0 %vm10449_vm0, %v10448_v0  ;;  %v5526_v27 = vld [vmem:[#allocation11 + $0x618] sm:$0xff] }
 0xf45   : > { %9877 = vmatprep.subr.mxu0 %v10448_v0 }
 0xf46   : > { %9867 = vmatpush3.xpose.msk.msra.mxu1 %vm503_vm1, %v5501_v29  ;;  %v5789_v29 = vcombine.high %v5779_v59, %v5779_v59 }
 0xf47   : > { %9868 = vmatprep.subr.mxu1 %v10448_v0 }
 0xf48   : > { %9878 = vmatpush3.xpose.msk.msra.mxu0 %vm503_vm1, %v5505_v18  ;;  %v5530_v18 = vld [vmem:[#allocation11 + $0x638] sm:$0xff] }
 0xf49   : > { %9879 = vmatprep.subr.mxu0 %v10448_v0 }
 0xf4a   : > { %9869 = vmatpush3.xpose.msk.msra.mxu1 %vm503_vm1, %v5500_v32  ;;  %v5525_v32 = vld [vmem:[#allocation11 + $0x610] sm:$0xff] }
 0xf4b   : > { %9870 = vmatprep.subr.mxu1 %v10448_v0 }
 0xf4c   : > { %9880 = vmatpush3.xpose.msk.msra.mxu0 %vm503_vm1, %v5504_v34  ;;  %v5742_v34 = vcombine.high %v11600_v37, %v11600_v37 }
 0xf4d   : > { %9881 = vmatprep.subr.mxu0 %v10448_v0 }
 0xf4e   : > { %9871 = vmatpush3.xpose.msk.msra.mxu1 %vm503_vm1, %v5499_v17  ;;  %v5529_v17 = vld [vmem:[#allocation11 + $0x630] sm:$0xff] }
 0xf4f   : > { %9886 = vmatprep.subr.mxu1 %v10448_v0 }
 0xf50   : > { %9882 = vmatpush3.xpose.msk.msra.mxu0 %vm503_vm1, %v5503_v48  ;;  %v5524_v48 = vld [vmem:[#allocation11 + $0x608] sm:$0xff] }
 0xf51   : > { %9873 = vmatmul.mubr.msk.f32.vlgmr.msra.gmra.mxu1 %vm503_vm1, %v5739_v62  ;;  %9897 = vmatprep.subr.mxu0 %v10448_v0  ;;  %v5756_v62 = vrot.slane %v5742_v34, %v10828_v56 }
 0xf52   : > { %9887 = vmatpush3.xpose.msk.msra.mxu1 %vm503_vm1, %v5510_v15  ;;  %9894 = vmatprep.mubr.msk.f32.mxu1 %vm10449_vm0, %v10448_v0  ;;  %v5528_v15 = vld [vmem:[#allocation11 + $0x628] sm:$0xff] }
 0xf53   : > { %9884 = vmatmul.mubr.msk.f32.vlgmr.msra.gmra.mxu0 %vm503_vm1, %v5741_v9  ;;  %9888 = vmatprep.subr.mxu1 %v10448_v0  ;;  %v5523_v9 = vld [vmem:[#allocation11 + $0x600] sm:$0xff]  ;;  %v5772_v37 = vrot.slane %v5756_v62, %v10828_v56 }
 0xf54   : > { %9898 = vmatpush3.xpose.msk.msra.mxu0 %vm503_vm1, %v5514_v35  ;;  %9905 = vmatprep.mubr.msk.f32.mxu0 %vm10449_vm0, %v10448_v0  ;;  %v5758_v35 = vcombine.high %v5756_v62, %v5756_v62 }
 0xf55   : > { %9899 = vmatprep.subr.mxu0 %v10448_v0 }
 0xf56   : > { %9889 = vmatpush3.xpose.msk.msra.mxu1 %vm503_vm1, %v5509_v36  ;;  %v5527_v36 = vld [vmem:[#allocation11 + $0x620] sm:$0xff] }
 0xf57   : > { %9890 = vmatprep.subr.mxu1 %v10448_v0 }
 0xf58   : > { %9900 = vmatpush3.xpose.msk.msra.mxu0 %vm503_vm1, %v5513_v39  ;;  %v5534_v39 = vld [vmem:[#allocation11 + $0x658] sm:$0xff] }
 0xf59   : > { %9901 = vmatprep.subr.mxu0 %v10448_v0 }
 0xf5a   : > { %9891 = vmatpush3.xpose.msk.msra.mxu1 %vm503_vm1, %v5508_v40  ;;  %v5786_v40 = vrot.slane %v5758_v35, %v10828_v56  ;;  %v5553_v35 = vld [vmem:[#allocation11 + $0x6f0] sm:$0xff] }
 0xf5b   : > { %9892 = vmatprep.subr.mxu1 %v10448_v0 }
 0xf5c   : > { %9902 = vmatpush3.xpose.msk.msra.mxu0 %vm503_vm1, %v5512_v44  ;;  %v5533_v44 = vld [vmem:[#allocation11 + $0x650] sm:$0xff] }
 0xf5d   : > { %9903 = vmatprep.subr.mxu0 %v10448_v0 }
 0xf5e   : > { %9893 = vmatpush3.xpose.msk.msra.mxu1 %vm503_vm1, %v5507_v45  ;;  %v5532_v45 = vld [vmem:[#allocation11 + $0x648] sm:$0xff] }
 0xf5f   : > { %9908 = vmatprep.subr.mxu1 %v10448_v0 }
 0xf60   : > { %9904 = vmatpush3.xpose.msk.msra.mxu0 %vm503_vm1, %v5511_v57  ;;  %v5531_v57 = vld [vmem:[#allocation11 + $0x640] sm:$0xff] }
 0xf61   : > { %9895 = vmatmul.mubr.msk.f32.vlgmr.msra.gmra.mxu1 %vm503_vm1, %v5765_v50  ;;  %9919 = vmatprep.subr.mxu0 %v10448_v0  ;;  %v5536_v50 = vld [vmem:[#allocation11 + $0x668] sm:$0xff] }
 0xf62   : > { %9909 = vmatpush3.xpose.msk.msra.mxu1 %vm503_vm1, %v5518_v63  ;;  %9916 = vmatprep.mubr.msk.f32.mxu1 %vm10449_vm0, %v10448_v0  ;;  %v5788_v63 = vcombine.high %v5772_v37, %v5772_v37 }
 0xf63   : > { %9906 = vmatmul.mubr.msk.f32.vlgmr.msra.gmra.mxu0 %vm503_vm1, %v5779_v59  ;;  %9910 = vmatprep.subr.mxu1 %v10448_v0  ;;  %v5535_v59 = vld [vmem:[#allocation11 + $0x660] sm:$0xff] }
 0xf64   : > { %9920 = vmatpush3.xpose.msk.msra.mxu0 %vm503_vm1, %v5522_v2  ;;  %9927 = vmatprep.mubr.msk.f32.mxu0 %vm10449_vm0, %v10448_v0  ;;  %v5542_v2 = vld [vmem:[#allocation11 + $0x698] sm:$0xff] }
 0xf65   : > { %9921 = vmatprep.subr.mxu0 %v10448_v0 }
 0xf66   : > { %9911 = vmatpush3.xpose.msk.msra.mxu1 %vm503_vm1, %v5517_v10  ;;  %v5790_v10 = vcombine.high %v5786_v40, %v5786_v40 }
 0xf67   : > { %9912 = vmatprep.subr.mxu1 %v10448_v0 }
 0xf68   : > { %9922 = vmatpush3.xpose.msk.msra.mxu0 %vm503_vm1, %v5521_v49  ;;  %v5546_v49 = vld [vmem:[#allocation11 + $0x6b8] sm:$0xff] }
 0xf69   : > { %9923 = vmatprep.subr.mxu0 %v10448_v0 }
 0xf6a   : > { %9913 = vmatpush3.xpose.msk.msra.mxu1 %vm503_vm1, %v5516_v11  ;;  %v5541_v11 = vld [vmem:[#allocation11 + $0x690] sm:$0xff] }
 0xf6b   : > { %9914 = vmatprep.subr.mxu1 %v10448_v0 }
 0xf6c   : > { %9924 = vmatpush3.xpose.msk.msra.mxu0 %vm503_vm1, %v5520_v12  ;;  %v5545_v12 = vld [vmem:[#allocation11 + $0x6b0] sm:$0xff] }
 0xf6d   : > { %9925 = vmatprep.subr.mxu0 %v10448_v0 }
 0xf6e   : > { %9915 = vmatpush3.xpose.msk.msra.mxu1 %vm503_vm1, %v5515_v14  ;;  %v5540_v14 = vld [vmem:[#allocation11 + $0x688] sm:$0xff] }
 0xf6f   : > { %9930 = vmatprep.subr.mxu1 %v10448_v0 }
 0xf70   : > { %9926 = vmatpush3.xpose.msk.msra.mxu0 %vm503_vm1, %v5519_v19  ;;  %v5797_v19 = vrot.slane %v11590_v31, %v10828_v56  ;;  %v5550_v31 = vld [vmem:[#allocation11 + $0x6d8] sm:$0xff] }
 0xf71   : > { %9917 = vmatmul.mubr.msk.f32.vlgmr.msra.gmra.mxu1 %vm503_vm1, %v5787_v26  ;;  %9941 = vmatprep.subr.mxu0 %v10448_v0  ;;  %v5544_v26 = vld [vmem:[#allocation11 + $0x6a8] sm:$0xff] }
 0xf72   : > { %9931 = vmatpush3.xpose.msk.msra.mxu1 %vm503_vm1, %v5526_v27  ;;  %9938 = vmatprep.mubr.msk.f32.mxu1 %vm10449_vm0, %v10448_v0  ;;  %v5539_v27 = vld [vmem:[#allocation11 + $0x680] sm:$0xff] }
 0xf73   : > { %9928 = vmatmul.mubr.msk.f32.vlgmr.msra.gmra.mxu0 %vm503_vm1, %v5789_v29  ;;  %9932 = vmatprep.subr.mxu1 %v10448_v0  ;;  %v5798_v29 = vcombine.high %v5797_v19, %v5797_v19 }
 0xf74   : > { %9942 = vmatpush3.xpose.msk.msra.mxu0 %vm503_vm1, %v5530_v18  ;;  %9949 = vmatprep.mubr.msk.f32.mxu0 %vm10449_vm0, %v10448_v0  ;;  %v5543_v18 = vld [vmem:[#allocation11 + $0x6a0] sm:$0xff] }
 0xf75   : > { %9943 = vmatprep.subr.mxu0 %v10448_v0  ;;  %v5812_v34 = vrot.slane %v5798_v29, %v10828_v56 }
 0xf76   : > { %9933 = vmatpush3.xpose.msk.msra.mxu1 %vm503_vm1, %v5525_v32  ;;  %v5805_v32 = vrot.slane %v5797_v19, %v10828_v56 }
 0xf77   : > { %9934 = vmatprep.subr.mxu1 %v10448_v0 }
 0xf78   : > { %9944 = vmatpush3.xpose.msk.msra.mxu0 %vm503_vm1, %v5529_v17 }
 0xf79   : > { %9945 = vmatprep.subr.mxu0 %v10448_v0 }
 0xf7a   : > { %9935 = vmatpush3.xpose.msk.msra.mxu1 %vm503_vm1, %v5524_v48  ;;  %v5554_v48 = vld [vmem:[#allocation11 + $0x6f8] sm:$0xff] }
 0xf7b   : > { %9936 = vmatprep.subr.mxu1 %v10448_v0 }
 0xf7c   : > { %9946 = vmatpush3.xpose.msk.msra.mxu0 %vm503_vm1, %v5528_v15 }
 0xf7d   : > { %9947 = vmatprep.subr.mxu0 %v10448_v0 }
 0xf7e   : > { %9937 = vmatpush3.xpose.msk.msra.mxu1 %vm503_vm1, %v5523_v9  ;;  %v5549_v9 = vld [vmem:[#allocation11 + $0x6d0] sm:$0xff] }
 0xf7f   : > { %9952 = vmatprep.subr.mxu1 %v10448_v0 }
 0xf80   : > { %9948 = vmatpush3.xpose.msk.msra.mxu0 %vm503_vm1, %v5527_v36  ;;  %v5548_v36 = vld [vmem:[#allocation11 + $0x6c8] sm:$0xff] }
 0xf81   : > { %9939 = vmatmul.mubr.msk.f32.vlgmr.msra.gmra.mxu1 %vm503_vm1, %v5772_v37  ;;  %9963 = vmatprep.subr.mxu0 %v10448_v0  ;;  %v5552_v37 = vld [vmem:[#allocation11 + $0x6e8] sm:$0xff] }
 0xf82   : > { %9953 = vmatpush3.xpose.msk.msra.mxu1 %vm503_vm1, %v5534_v39  ;;  %9960 = vmatprep.mubr.msk.f32.mxu1 %vm10449_vm0, %v10448_v0  ;;  %v5547_v39 = vld [vmem:[#allocation11 + $0x6c0] sm:$0xff] }
 0xf83   : > { %9950 = vmatmul.mubr.msk.f32.vlgmr.msra.gmra.mxu0 %vm503_vm1, %v5786_v40  ;;  %9954 = vmatprep.subr.mxu1 %v10448_v0  ;;  %v5551_v40 = vld [vmem:[#allocation11 + $0x6e0] sm:$0xff] }
 0xf84   : > { %9964 = vmatpush3.xpose.msk.msra.mxu0 %vm503_vm1, %v5538_v41  ;;  %9971 = vmatprep.mubr.msk.f32.mxu0 %vm10449_vm0, %v10448_v0  ;;  %v5813_v41 = vcombine.high %v5805_v32, %v5805_v32 }
 0xf85   : > { %9965 = vmatprep.subr.mxu0 %v10448_v0 }
 0xf86   : > { %9955 = vmatpush3.xpose.msk.msra.mxu1 %vm503_vm1, %v5533_v44  ;;  %v5814_v44 = vcombine.high %v5812_v34, %v5812_v34 }
 0xf87   : > { %9956 = vmatprep.subr.mxu1 %v10448_v0 }
 0xf88   : > { %9966 = vmatpush3.xpose.msk.msra.mxu0 %vm503_vm1, %v5537_v46 }
 0xf89   : > { %9967 = vmatprep.subr.mxu0 %v10448_v0 }
 0xf8a   : > { %9957 = vmatpush3.xpose.msk.msra.mxu1 %vm503_vm1, %v5532_v45 }
 0xf8b   : > { %9958 = vmatprep.subr.mxu1 %v10448_v0 }
 0xf8c   : > { %9968 = vmatpush3.xpose.msk.msra.mxu0 %vm503_vm1, %v5536_v50 }
 0xf8d   : > { %9969 = vmatprep.subr.mxu0 %v10448_v0 }
 0xf8e   : > { %9959 = vmatpush3.xpose.msk.msra.mxu1 %vm503_vm1, %v5531_v57 }
 0xf8f   : > { %9974 = vmatprep.subr.mxu1 %v10448_v0 }
 0xf90   : > { %9970 = vmatpush3.xpose.msk.msra.mxu0 %vm503_vm1, %v5535_v59 }
 0xf91   : > { %9961 = vmatmul.mubr.msk.f32.vlgmr.msra.gmra.mxu1 %vm503_vm1, %v5788_v63  ;;  %9985 = vmatprep.subr.mxu0 %v10448_v0 }
 0xf92   : > { %9975 = vmatpush3.xpose.msk.msra.mxu1 %vm503_vm1, %v5542_v2  ;;  %9982 = vmatprep.mubr.msk.f32.mxu1 %vm10449_vm0, %v10448_v0 }
 0xf93   : > { %9972 = vmatmul.mubr.msk.f32.vlgmr.msra.gmra.mxu0 %vm503_vm1, %v5790_v10  ;;  %9976 = vmatprep.subr.mxu1 %v10448_v0 }
 0xf94   : > { %9986 = vmatpush3.xpose.msk.msra.mxu0 %vm503_vm1, %v5546_v49  ;;  %9993 = vmatprep.mubr.msk.f32.mxu0 %vm10449_vm0, %v10448_v0 }
 0xf95   : > { %9987 = vmatprep.subr.mxu0 %v10448_v0 }
 0xf96   : > { %9977 = vmatpush3.xpose.msk.msra.mxu1 %vm503_vm1, %v5541_v11 }
 0xf97   : > { %9978 = vmatprep.subr.mxu1 %v10448_v0 }
 0xf98   : > { %9988 = vmatpush3.xpose.msk.msra.mxu0 %vm503_vm1, %v5545_v12 }
 0xf99   : > { %9989 = vmatprep.subr.mxu0 %v10448_v0 }
 0xf9a   : > { %9979 = vmatpush3.xpose.msk.msra.mxu1 %vm503_vm1, %v5540_v14 }
 0xf9b   : > { %9980 = vmatprep.subr.mxu1 %v10448_v0 }
 0xf9c   : > { %9990 = vmatpush3.xpose.msk.msra.mxu0 %vm503_vm1, %v5544_v26 }
 0xf9d   : > { %9991 = vmatprep.subr.mxu0 %v10448_v0 }
 0xf9e   : > { %9981 = vmatpush3.xpose.msk.msra.mxu1 %vm503_vm1, %v5539_v27 }
 0xf9f   : > { %9996 = vmatprep.subr.mxu1 %v10448_v0 }
 0xfa0   : > { %9992 = vmatpush3.xpose.msk.msra.mxu0 %vm503_vm1, %v5543_v18 }
 0xfa1   : > { %9983 = vmatmul.mubr.msk.f32.vlgmr.msra.gmra.mxu1 %vm503_vm1, %v5805_v32  ;;  %v5895_v17 = vpop.f32.mrf.mxu1  ;;  %10007 = vmatprep.subr.mxu0 %v10448_v0 }
 0xfa2   : > { %9997 = vmatpush3.xpose.msk.msra.mxu1 %vm503_vm1, %v5550_v31  ;;  %10004 = vmatprep.mubr.msk.f32.mxu1 %vm10449_vm0, %v10448_v0  ;;  %v8167_v26 = vmul.f32 %v5895_v17, %v11119_v13 }
 0xfa3   : > { %9994 = vmatmul.mubr.msk.f32.vlgmr.msra.gmra.mxu0 %vm503_vm1, %v5812_v34  ;;  %v9720_v62 = vpop.f32.mrf.mxu1  ;;  %v5979_v15 = vpop.f32.mrf.mxu0  ;;  %9998 = vmatprep.subr.mxu1 %v10448_v0 }
 0xfa4   : > { %10008 = vmatpush3.xpose.msk.msra.mxu0 %vm503_vm1, %v5554_v48  ;;  %10015 = vmatprep.mubr.msk.f32.mxu0 %vm10449_vm0, %v10448_v0  ;;  %vm8327_vm0 = vcmask 195712  }
 0xfa5   : > { %v9731_v56 = vpop.f32.mrf.mxu0  ;;  %10009 = vmatprep.subr.mxu0 %v10448_v0 }
 0xfa6   : > { %9999 = vmatpush3.xpose.msk.msra.mxu1 %vm503_vm1, %v5549_v9 }
 0xfa7   : > { %10000 = vmatprep.subr.mxu1 %v10448_v0 }
 0xfa8   : > { %10010 = vmatpush3.xpose.msk.msra.mxu0 %vm503_vm1, %v5553_v35 }
 0xfa9   : > { %10011 = vmatprep.subr.mxu0 %v10448_v0 }
 0xfaa   : > { %10001 = vmatpush3.xpose.msk.msra.mxu1 %vm503_vm1, %v5548_v36 }
 0xfab   : > { %10002 = vmatprep.subr.mxu1 %v10448_v0 }
 0xfac   : > { %10012 = vmatpush3.xpose.msk.msra.mxu0 %vm503_vm1, %v5552_v37 }
 0xfad   : > { %10013 = vmatprep.subr.mxu0 %v10448_v0  ;;  %v8168_v0 = vmul.f32 %v5979_v15, %v4263_v24 }
 0xfae   : > { %10003 = vmatpush3.xpose.msk.msra.mxu1 %vm503_vm1, %v5547_v39 }
 0xfaf   : > { %v8223_v11 = vrot.slane %v8168_v0, 7 }
 0xfb0   : > { %10014 = vmatpush3.xpose.msk.msra.mxu0 %vm503_vm1, %v5551_v40 }
 0xfb1   : > { %v6063_v46 = vpop.f32.mrf.mxu1  ;;  %10005 = vmatmul.mubr.msk.f32.vlgmr.msra.gmra.mxu1 %vm503_vm1, %v5813_v41  ;;  %v8224_v27 = vsel %vm4372_vm5, %v8223_v11, %v8167_v26 }
 0xfb2   : > { %v8169_v49 = vmul.f32 %v6063_v46, %v4264_v38 }
 0xfb3   : > { %v9742_v45 = vpop.f32.mrf.mxu1  ;;  %v6147_v50 = vpop.f32.mrf.mxu0  ;;  %10016 = vmatmul.mubr.msk.f32.vlgmr.msra.gmra.mxu0 %vm503_vm1, %v5814_v44 }
 0xfb4   : > { %v8170_v12 = vmul.f32 %v6147_v50, %v4265_v42  ;;  %v8225_v14 = vrot.slane %v8169_v49, 6 }
 0xfb5   : > { %v9753_v57 = vpop.f32.mrf.mxu0 }
 0xfb6   : > { %v8227_v29 = vrot.slane %v8170_v12, 5  ;;  %v8226_v18 = vsel %vm4375_vm6, %v8225_v14, %v8224_v27 }
 0xfb8   : > { %v8228_v38 = vsel %vm4378_vm7, %v8227_v29, %v8226_v18 }
 0xfc1   : > { %v6231_v59 = vpop.f32.mrf.mxu1 }
 0xfc2   : > { %v8171_v19 = vmul.f32 %v6231_v59, %v4266_v51 }
 0xfc3   : > { %v9764_v63 = vpop.f32.mrf.mxu1  ;;  %v6315_v2 = vpop.f32.mrf.mxu0 }
 0xfc4   : > { %v8172_v24 = vmul.f32 %v6315_v2, %v4267_v58  ;;  %v8229_v32 = vrot.slane %v8171_v19, 4 }
 0xfc5   : > { %v9775_v10 = vpop.f32.mrf.mxu0 }
 0xfc6   : > { %v8231_v31 = vrot.slane %v8172_v24, 3  ;;  %v8230_v42 = vsel %vm4381_vm8, %v8229_v32, %v8228_v38 }
 0xfc8   : > { %v8232_v58 = vsel %vm4384_vm9, %v8231_v31, %v8230_v42 }
 0xfd1   : > { %v6399_v34 = vpop.f32.mrf.mxu1 }
 0xfd2   : > { %v8173_v51 = vmul.f32 %v6399_v34, %v4268_v3 }
 0xfd3   : > { %v9786_v48 = vpop.f32.mrf.mxu1  ;;  %v6483_v17 = vpop.f32.mrf.mxu0 }
 0xfd4   : > { %v8233_v62 = vrot.slane %v8173_v51, 2  ;;  %v8174_v15 = vmul.f32 %v6483_v17, %v4269_v6 }
 0xfd5   : > { %v9797_v9 = vpop.f32.mrf.mxu0 }
 0xfd6   : > { %v8235_v56 = vrot.slane %v8174_v15, 1  ;;  %v8234_v35 = vsel %vm4387_vm10, %v8233_v62, %v8232_v58 }
 0xfd8   : > { %v8236_v36 = vsel %vm4390_vm11, %v8235_v56, %v8234_v35 }
 0xfd9   : > { %v8289_v37 = vsel %vm503_vm1, %v8236_v36, 0.0 }
 0xfda   : > { %8290 = vadd.xlane.f32.xlu0 %v8289_v37 }
 0xfe1   : > { %v6567_v39 = vpop.f32.mrf.mxu1 }
 0xfe2   : > { %v8175_v12 = vmul.f32 %v11111_v8, %v6567_v39 }
 0xfe3   : > { %v9808_v40 = vpop.f32.mrf.mxu1  ;;  %v6651_v3 = vpop.f32.mrf.mxu0 }
 0xfe4   : > { %v8176_v59 = vmul.f32 %v6651_v3, %v4270_v20 }
 0xfe5   : > { %v9819_v41 = vpop.f32.mrf.mxu0 }
 0xfe6   : > { %v8237_v0 = vrot.slane %v8176_v59, 7 }
 0xfe8   : > { %v8238_v14 = vsel %vm4372_vm5, %v8237_v0, %v8175_v12 }
 0xff1   : > { %v6735_v44 = vpop.f32.mrf.mxu1 }
 0xff2   : > { %v8177_v2 = vmul.f32 %v6735_v44, %v4271_v30 }
 0xff3   : > { %v9830_v46 = vpop.f32.mrf.mxu1  ;;  %v6819_v45 = vpop.f32.mrf.mxu0 }
 0xff4   : > { %v8178_v10 = vmul.f32 %v6819_v45, %v4272_v33  ;;  %v8239_v49 = vrot.slane %v8177_v2, 6 }
 0xff5   : > { %v9841_v13 = vpop.f32.mrf.mxu0 }
 0xff6   : > { %v8241_v19 = vrot.slane %v8178_v10, 5  ;;  %v8240_v26 = vsel %vm4375_vm6, %v8239_v49, %v8238_v14 }
 0xff8   : > { %v8242_v30 = vsel %vm4378_vm7, %v8241_v19, %v8240_v26 }
0x1001   : > { %v6903_v6 = vpop.f32.mrf.mxu1 }
0x1002   : > { %v8179_v11 = vmul.f32 %v6903_v6, %v4273_v43 }
0x1003   : > { %v9852_v50 = vpop.f32.mrf.mxu1  ;;  %v6987_v57 = vpop.f32.mrf.mxu0 }
0x1004   : > { %v8180_v20 = vmul.f32 %v6987_v57, %v4274_v47  ;;  %v8243_v27 = vrot.slane %v8179_v11, 4 }
0x1005   : > { %v9863_v63 = vpop.f32.mrf.mxu0 }
0x1006   : > { %v8245_v29 = vrot.slane %v8180_v20, 3  ;;  %v8244_v33 = vsel %vm4381_vm8, %v8243_v27, %v8242_v30 }
0x1008   : > { %v8246_v47 = vsel %vm4384_vm9, %v8245_v29, %v8244_v33 }
0x1011   : > { %v7071_v24 = vpop.f32.mrf.mxu1 }
0x1012   : > { %v8181_v43 = vmul.f32 %v7071_v24, %v4275_v1 }
0x1013   : > { %v9874_v18 = vpop.f32.mrf.mxu1  ;;  %v7155_v32 = vpop.f32.mrf.mxu0 }
0x1014   : > { %v8247_v38 = vrot.slane %v8181_v43, 2  ;;  %v8182_v31 = vmul.f32 %v7155_v32, %v4276_v4 }
0x1015   : > { %v9885_v34 = vpop.f32.mrf.mxu0 }
0x1016   : > { %v8249_v42 = vrot.slane %v8182_v31, 1  ;;  %v8248_v51 = vsel %vm4387_vm10, %v8247_v38, %v8246_v47 }
0x1018   : > { %v8250_v48 = vsel %vm4390_vm11, %v8249_v42, %v8248_v51 }
0x1019   : > { %v8292_v17 = vsel %vm503_vm1, %v8250_v48, 0.0  ;;  %v8278_v48 = vpop.xlane.xlu0 %8277 }
0x101a   : > { %8293 = vadd.xlane.f32.xlu0 %v8292_v17  ;;  %v8281_v17 = vpop.xlane.xlu1 %8280 }
0x1021   : > { %v7239_v62 = vpop.f32.mrf.mxu1 }
0x1022   : > { %v8183_v13 = vmul.f32 %v7239_v62, %v11131_v21  ;;  %v8310_v62 = vand.u32 127, %v1740_v52 }
0x1023   : > { %v9896_v15 = vpop.f32.mrf.mxu1  ;;  %v7323_v1 = vpop.f32.mrf.mxu0 }
0x1024   : > { %v8184_v39 = vmul.f32 %v7323_v1, %v4277_v22  ;;  %v8284_v1 = vpop.xlane.xlu1 %8283 }
0x1025   : > { %v9907_v58 = vpop.f32.mrf.mxu0 }
0x1026   : > { %v8251_v41 = vrot.slane %v8184_v39, 7  ;;  %v8329_v58 = vadd.s32 4294967272, %v8310_v62 }
0x1028   : > { %v8252_v6 = vsel %vm4372_vm5, %v8251_v41, %v8183_v13  ;;  %v8332_v52 = vsub.s32 %v8329_v58, %v10823_v54 }
0x1031   : > { %v7407_v9 = vpop.f32.mrf.mxu1 }
0x1032   : > { %v8185_v3 = vmul.f32 %v7407_v9, %v4278_v53 }
0x1033   : > { %v9918_v56 = vpop.f32.mrf.mxu1  ;;  %v7491_v35 = vpop.f32.mrf.mxu0 }
0x1034   : > { %v8186_v44 = vmul.f32 %v7491_v35, %v4279_v60  ;;  %v8253_v46 = vrot.slane %v8185_v3, 6 }
0x1035   : > { %v9929_v8 = vpop.f32.mrf.mxu0 }
0x1036   : > { %v8255_v50 = vrot.slane %v8186_v44, 5  ;;  %v8254_v57 = vsel %vm4375_vm6, %v8253_v46, %v8252_v6  ;;  %v8313_v8 = vsub.s32 %v8310_v62, %v10823_v54 }
0x1038   : > { %v8256_v53 = vsel %vm4378_vm7, %v8255_v50, %v8254_v57  ;;  %v8314_v41 = vrot.slane %v8278_v48, %v8313_v8 }
0x1041   : > { %v7575_v4 = vpop.f32.mrf.mxu1 }
0x1042   : > { %v8187_v45 = vmul.f32 %v7575_v4, %v4280_v61 }
0x1043   : > { %v9940_v36 = vpop.f32.mrf.mxu1  ;;  %v7659_v37 = vpop.f32.mrf.mxu0 }
0x1044   : > { %v8188_v22 = vmul.f32 %v7659_v37, %v4281_v5  ;;  %v8257_v59 = vrot.slane %v8187_v45, 4  ;;  %v8288_v36 = vpop.xlane.xlu1 %8287 }
0x1045   : > { %v9951_v40 = vpop.f32.mrf.mxu0  ;;  %v8333_v44 = vrot.slane %v8288_v36, %v8332_v52 }
0x1046   : > { %v8259_v63 = vrot.slane %v8188_v22, 3  ;;  %v8258_v60 = vsel %vm4381_vm8, %v8257_v59, %v8256_v53 }
0x1048   : > { %v8260_v5 = vsel %vm4384_vm9, %v8259_v63, %v8258_v60 }
0x1051   : > { %v7743_v2 = vpop.f32.mrf.mxu1 }
0x1052   : > { %v8189_v61 = vmul.f32 %v7743_v2, %v4282_v7 }
0x1053   : > { %v9962_v0 = vpop.f32.mrf.mxu1  ;;  %v7827_v10 = vpop.f32.mrf.mxu0 }
0x1054   : > { %v8261_v49 = vrot.slane %v8189_v61, 2  ;;  %v8190_v11 = vmul.f32 %v7827_v10, %v4283_v23 }
0x1055   : > { %v9973_v12 = vpop.f32.mrf.mxu0 }
0x1056   : > { %v8263_v14 = vrot.slane %v8190_v11, 1  ;;  %v8262_v19 = vsel %vm4387_vm10, %v8261_v49, %v8260_v5 }
0x1058   : > { %v8264_v20 = vsel %vm4390_vm11, %v8263_v14, %v8262_v19 }
0x1059   : > { %v8295_v26 = vsel %vm503_vm1, %v8264_v20, 0.0  ;;  %vm8334_vm1 = vcmask 261312  }
0x105a   : > { %8296 = vadd.xlane.f32.xlu0 %v8295_v26 }
0x1061   : > { %v7911_v27 = vpop.f32.mrf.mxu1 }
0x1062   : > { %v8191_v43 = vmul.f32 %v11123_v16, %v7911_v27  ;;  %v8315_v16 = vadd.s32 4294967288, %v8310_v62 }
0x1063   : > { %v9984_v30 = vpop.f32.mrf.mxu1  ;;  %v7995_v7 = vpop.f32.mrf.mxu0 }
0x1064   : > { %v8192_v24 = vmul.f32 %v7995_v7, %v4284_v55  ;;  %v8291_v15 = vpop.xlane.xlu0 %8290  ;;  %v8318_v56 = vsub.s32 %v8315_v16, %v10823_v54 }
0x1065   : > { %v9995_v29 = vpop.f32.mrf.mxu0  ;;  %v8339_v46 = vrot.slane %v8291_v15, %v8313_v8 }
0x1066   : > { %v8265_v21 = vrot.slane %v8192_v24, 7  ;;  %v8319_v37 = vrot.slane %v8281_v17, %v8318_v56 }
0x1068   : > { %v8266_v47 = vsel %vm4372_vm5, %v8265_v21, %v8191_v43  ;;  %v8321_v13 = vsel %vm8320_vm15, %v8319_v37, %v8314_v41 }
0x1071   : > { %v8079_v23 = vpop.f32.mrf.mxu1 }
0x1072   : > { %v8193_v33 = vmul.f32 %v8079_v23, %v4285_v25 }
0x1073   : > { %v10006_v18 = vpop.f32.mrf.mxu1  ;;  %v8163_v32 = vpop.f32.mrf.mxu0 }
0x1074   : > { %v8267_v38 = vrot.slane %v8193_v33, 6  ;;  %v8194_v31 = vmul.f32 %v8163_v32, %v4286_v28  ;;  %v8322_v28 = vadd.s32 4294967280, %v8310_v62 }
0x1075   : > { %v10017_v34 = vpop.f32.mrf.mxu0 }
0x1076   : > { %v8269_v42 = vrot.slane %v8194_v31, 5  ;;  %v8268_v55 = vsel %vm4375_vm6, %v8267_v38, %v8266_v47  ;;  %v8325_v35 = vsub.s32 %v8322_v28, %v10823_v54 }
0x1078   : > { %v8270_v51 = vsel %vm4378_vm7, %v8269_v42, %v8268_v55  ;;  %v8326_v40 = vrot.slane %v8284_v1, %v8325_v35 }
0x1079   : > { %v8298_v25 = vsel %vm8285_vm14, %v8270_v51, 0.0 }
0x107a   : > { %8299 = vadd.xlane.f32.xlu0 %v8298_v25  ;;  %v8328_v50 = vsel %vm8327_vm0, %v8326_v40, %v8321_v13 }
0x107b   : > { %v8335_v57 = vsel %vm8334_vm1, %v8333_v44, %v8328_v50 }
0x10a3   : > { %v8294_v9 = vpop.xlane.xlu0 %8293 }
0x10a4   : > { %v8343_v39 = vrot.slane %v8294_v9, %v8318_v56 }
0x10a6   : > { %v8344_v54 = vsel %vm8320_vm15, %v8343_v39, %v8339_v46 }
0x10e3   : > { %v8297_v4 = vpop.xlane.xlu0 %8296 }
0x10e4   : > { %v8348_v3 = vrot.slane %v8297_v4, %v8325_v35 }
0x10e6   : > { %v8349_v22 = vsel %vm8327_vm0, %v8348_v3, %v8344_v54 }
0x1103   : > { %v8300_v45 = vpop.xlane.xlu0 %8299 }
0x1104   : > { %v8353_v6 = vrot.slane %v8300_v45, %v8332_v52 }
0x1106   : > { %v8354_v59 = vsel %vm8334_vm1, %v8353_v6, %v8349_v22 }
0x1107   : > { %v8355_v53 = vsel %vm4372_vm5, %v8354_v59, %v8335_v57 }
0x1108   : > { %8358 = vst.msk [vmem:[%s477_s12] sm:$0x3] %vm8357_vm2, %v8355_v53 }
0x1109   : > { %10372 = shalt.err (!%p10369_p4)
}
0x110a   : > { %s10373_s15 = scalar_lea.hbm %s11835_s24, 32  ;;  %s10377_s14 = scalar_lea.hbm %s11884_s11, 64 }
0x110b   : > { %p10374_p10 = scmp.ne.s32.totalorder %s11835_s24, %s10373_s15  ;;  %p10378_p8 = scmp.lt.s32.totalorder %s11835_s24, %s11884_s11 }
0x110c   : > { %p10379_p9 = scmp.lt.s32.totalorder %s10377_s14, %s10373_s15 }
0x110d   : > { %p10375_p7 = pnand %p10374_p10, %p11908_p6 }
0x110e   : > { %p10380_p11 = por %p10379_p9, %p10378_p8 }
0x110f   : > { %p10376_p12 = pneg %p10375_p7 }
0x1111   : > { %p10381_p5 = pnand %p10380_p11, %p10376_p12 }
0x1113   : > { %10384 = shalt.err (!%p10381_p5)
}
0x1114   : > { %10046 = dma.vmem_to_hbm [thread:$0]  (%p11908_p6), %s8374_s19, 32, %s11835_s24, %s8360_s21  }
0x1115 PF: > { %p10088_p0 = scmp.ge.s32.totalorder %s10435_s20, 2  ;;  %s8385_s13 = sand.u32 1, %s10423_s17  }
0x1116   : > { %p11909_p1 = scmp.ne.s32.totalorder %s11895_s28, 0  ;;  %s8386_s25 = scalar_lea.sflag [#allocation4], %s8385_s13 }
0x1118   : > { %p10071_p3 = pnand %p10088_p0, %p11909_p1 }
0x111a   : > { %p10072_p2 = pneg %p10071_p3 }
0x111c   : > { %10418 = dma.done.wait (%p10072_p2), %s8386_s25, 32  }
0x111d   : > { %10420 = vsyncadd (%p10072_p2), %s8386_s25, 4294967264  ;;  %s11910_s20 = sld [smem:[#allocation21_spill]]  ;;  %s11913_s17 = smov %s10427_s18 }
0x111e   : > { %s11911_s26 = sld [smem:[#allocation20_spill]] }
0x111f   : > { %s11912_s19 = sld [smem:[#allocation22_spill]] }
0x1123   : > { %p25_p13 = scmp.ge.s32.totalorder %s11910_s20, 4  }
0x1124   : > { %s11914_s18 = smov %s11911_s26 }
0x1125   :  { %27 = sbr.rel (!%p25_p13) target bundleno = 7 (0x7), region = 135 }
0x112a   :  { %8391 = vsyncpa [#allocation3], 1 }
0x112b   :  { %8393 = vsyncpa [#allocation3 + $0x1], 1 }
0x112c   :  { %8394 = vsyncpa [#allocation6], 1 }
0x112d   :  { %8395 = vsyncpa [#allocation9], 1 }
0x112e   :  { %8396 = vsyncpa [#allocation12], 1 }
0x112f   :  { %8397 = vsyncpa [#allocation4], 1 }
0x1130   :  { %8399 = vsyncpa [#allocation4 + $0x1], 1 }

</bundles_post_ra>
